<compile_context>
chip_gen: v5e
topology: v5e:2x2
jax: 0.10.0
libtpu: 0.0.40
codegen_flags: <defaults>
</compile_context>

<pallas_src>
import math

import jax
import jax.numpy as jnp
from jax import lax
from jax.experimental import pallas as pl
from jax.experimental.pallas import tpu as pltpu

# ---------------- configuration (matches module defaults, small sizes) --------------
EDGE_FEATURES = 32
NODE_FEATURES = 32
NUM_POS_EMB = 16          # num_positional_embeddings
NUM_RBF = 16
TOP_K = 8                 # small top_k so L >= K at small shapes
NORM_EPS = 1e-6           # Normalize epsilon
RBF_SIGMA = (20.0 - 0.0) / NUM_RBF


def _round_up(x, m):
    return ((x + m - 1) // m) * m


def _pad_rows(x, n_rows):
    if x.shape[0] == n_rows:
        return x
    pad = [(0, n_rows - x.shape[0])] + [(0, 0)] * (x.ndim - 1)
    return jnp.pad(x, pad)


# ---------------------------- small JAX helpers (glue) ------------------------------
def _normalize(x, axis=-1, eps=1e-12):
    # torch.nn.functional.normalize semantics: x / max(||x||, eps)
    return x / jnp.maximum(jnp.linalg.norm(x, axis=axis, keepdims=True), eps)


def gather_nodes(nodes, idx):
    # nodes (B, L, C), idx (B, L, K) -> (B, L, K, C)
    return jax.vmap(lambda n, e: n[e])(nodes, idx)


def _quaternions(R):
    # R (..., 3, 3) -> Q (..., 4)
    Rxx, Ryy, Rzz = R[..., 0, 0], R[..., 1, 1], R[..., 2, 2]
    magnitudes = 0.5 * jnp.sqrt(jnp.abs(1.0 + jnp.stack(
        [Rxx - Ryy - Rzz, -Rxx + Ryy - Rzz, -Rxx - Ryy + Rzz], axis=-1)))
    signs = jnp.sign(jnp.stack(
        [R[..., 2, 1] - R[..., 1, 2],
         R[..., 0, 2] - R[..., 2, 0],
         R[..., 1, 0] - R[..., 0, 1]], axis=-1))
    xyz = signs * magnitudes
    w = jnp.sqrt(jnp.maximum(1.0 + Rxx + Ryy + Rzz, 0.0))[..., None] / 2.0
    Q = jnp.concatenate([xyz, w], axis=-1)
    return Q / jnp.maximum(jnp.linalg.norm(Q, axis=-1, keepdims=True), 1e-12)


def _dihedrals(X, eps=1e-7):
    # X (B, L, 4, 3) -> dihedral node features (B, L, 6)
    B, L = X.shape[0], X.shape[1]
    Xb = X[:, :, :3, :].reshape(B, 3 * L, 3)
    dX = Xb[:, 1:, :] - Xb[:, :-1, :]
    U = _normalize(dX)
    u_2, u_1, u_0 = U[:, :-2], U[:, 1:-1], U[:, 2:]
    n_2 = _normalize(jnp.cross(u_2, u_1))
    n_1 = _normalize(jnp.cross(u_1, u_0))
    cosD = jnp.clip(jnp.sum(n_2 * n_1, -1), -1.0 + eps, 1.0 - eps)
    D = jnp.sign(jnp.sum(u_2 * n_1, -1)) * jnp.arccos(cosD)
    D = jnp.pad(D, ((0, 0), (1, 2)))
    D = D.reshape(B, L, 3)
    return jnp.concatenate([jnp.cos(D), jnp.sin(D)], axis=2)


def _orientations_coarse(X, E_idx, eps=1e-6):
    # X (B, L, 3) CA coords, E_idx (B, L, K) -> AD_features (B,L,3), O_features (B,L,K,7)
    B, L, _ = X.shape
    K = E_idx.shape[2]
    dX = X[:, 1:, :] - X[:, :-1, :]
    U = _normalize(dX)
    u_2, u_1, u_0 = U[:, :-2], U[:, 1:-1], U[:, 2:]
    n_2 = _normalize(jnp.cross(u_2, u_1))
    n_1 = _normalize(jnp.cross(u_1, u_0))
    cosA = jnp.clip(-jnp.sum(u_1 * u_0, -1), -1.0 + eps, 1.0 - eps)
    A = jnp.arccos(cosA)
    cosD = jnp.clip(jnp.sum(n_2 * n_1, -1), -1.0 + eps, 1.0 - eps)
    Dang = jnp.sign(jnp.sum(u_2 * n_1, -1)) * jnp.arccos(cosD)
    AD_features = jnp.stack(
        [jnp.cos(A), jnp.sin(A) * jnp.cos(Dang), jnp.sin(A) * jnp.sin(Dang)], axis=2)
    AD_features = jnp.pad(AD_features, ((0, 0), (1, 2), (0, 0)))

    o_1 = _normalize(u_2 - u_1)
    O = jnp.stack([o_1, n_2, jnp.cross(o_1, n_2)], axis=2)     # (B, L-3, 3, 3)
    O = O.reshape(B, L - 3, 9)
    O = jnp.pad(O, ((0, 0), (1, 2), (0, 0)))                   # (B, L, 9)

    O_neighbors = gather_nodes(O, E_idx)                       # (B, L, K, 9)
    X_neighbors = gather_nodes(X, E_idx)                       # (B, L, K, 3)

    Om = O.reshape(B, L, 3, 3)
    On = O_neighbors.reshape(B, L, K, 3, 3)
    dXn = X_neighbors - X[:, :, None, :]
    dU = jnp.matmul(Om[:, :, None], dXn[..., None])[..., 0]    # (B, L, K, 3)
    dU = _normalize(dU)
    Rm = jnp.matmul(jnp.swapaxes(Om[:, :, None], -1, -2), On)  # (B, L, K, 3, 3)
    Q = _quaternions(Rm)
    O_features = jnp.concatenate([dU, Q], axis=-1)             # (B, L, K, 7)
    return AD_features, O_features


# ----------- Pallas kernel 1: fused masked distances + top-k neighbours -------------
def masked_dist_topk(X_ca, mask, top_k, eps=1e-6, row_tile=256):
    """Masked CA-CA distances + smallest-K neighbour indices, fused in one kernel.

    Returns E_idx (B, L, K) int32 and D_max (B, L, 1) f32 (per-row masked max
    distance, used to reconstruct the reference's exact D_adjust values outside).
    The distance matrix only ever exists as 8-row register-resident sub-slabs.
    """
    B, L, _ = X_ca.shape
    K = int(top_k)
    assert K <= L
    SUB = 8
    TI = min(row_tile, _round_up(L, SUB))
    Lp = _round_up(L, TI)                       # pad columns/rows; padded mask = 0

    maskf = mask.astype(jnp.float32)
    if Lp != L:
        X_ca = jnp.pad(X_ca, ((0, 0), (0, Lp - L), (0, 0)))
        maskf = jnp.pad(maskf, ((0, 0), (0, Lp - L)))
    X_t = jnp.swapaxes(X_ca, 1, 2)              # (B, 3, Lp) pre-transposed
    m_col = maskf[:, :, None]                   # (B, Lp, 1)
    m_row = maskf[:, None, :]                   # (B, 1, Lp)

    # Packed selection key: low `nbits` mantissa bits of the non-negative f32
    # distance are replaced by the column index -> one cross-lane min per k gives
    # the argmin; ties resolve to the smallest column (matches reference topk).
    nbits = max(1, int(Lp - 1).bit_length())
    hi_mask = -(1 << nbits)                     # python ints; weak-typed with int32
    lo_mask = (1 << nbits) - 1
    n_sub = TI // SUB

    def kernel(xi_ref, xt_ref, mi_ref, mr_ref, ei_ref, dmax_ref):
        kk = lax.broadcasted_iota(jnp.int32, (1, K), 1)

        @pl.loop(0, n_sub)
        def _(s):
            r0 = pl.multiple_of(s * SUB, SUB)
            xs = xi_ref[pl.ds(r0, SUB), :]                         # (8, 3)
            ms = mi_ref[pl.ds(r0, SUB), :]                         # (8, 1)
            xt = xt_ref[...]                                       # (3, Lp)
            mj = mr_ref[...]                                       # (1, Lp)

            # Direct-difference distances: 3 VPU broadcast FMA passes, no MXU
            # expansion, no cancellation.
            d0 = xs[:, 0:1] - xt[0:1, :]
            d1 = xs[:, 1:2] - xt[1:2, :]
            d2 = xs[:, 2:3] - xt[2:3, :]
            dist2 = d0 * d0 + d1 * d1 + d2 * d2                    # (8, Lp)
            m2 = ms * mj
            D = m2 * jnp.sqrt(dist2 + eps)
            dmax = jnp.max(D, axis=-1, keepdims=True)              # (8, 1)
            d_adj = D + (1.0 - m2) * dmax                          # reference D_adjust

            col = lax.broadcasted_iota(jnp.int32, (SUB, Lp), 1)
            key_i = (pltpu.bitcast(d_adj, jnp.int32) & hi_mask) | col
            key = pltpu.bitcast(key_i, jnp.float32)                # vreg-resident (8, Lp)

            idx_acc = jnp.zeros((SUB, K), jnp.int32)
            for k in range(K):                                     # one XLU reduce per k
                kmin = jnp.min(key, axis=-1, keepdims=True)        # (8, 1)
                idx = pltpu.bitcast(kmin, jnp.int32) & lo_mask     # (8, 1)
                idx_acc = jnp.where(kk == k, idx, idx_acc)
                key = jnp.where(key == kmin, jnp.inf, key)         # keys unique -> pop one

            ei_ref[pl.ds(r0, SUB), :] = idx_acc
            dmax_ref[pl.ds(r0, SUB), :] = dmax

    ei, dmax = pl.pallas_call(
        kernel,
        out_shape=(jax.ShapeDtypeStruct((B, Lp, K), jnp.int32),
                   jax.ShapeDtypeStruct((B, Lp, 1), jnp.float32)),
        grid=(B, Lp // TI),
        in_specs=[pl.BlockSpec((None, TI, 3), lambda b, i: (b, i, 0)),
                  pl.BlockSpec((None, 3, Lp), lambda b, i: (b, 0, 0)),
                  pl.BlockSpec((None, TI, 1), lambda b, i: (b, i, 0)),
                  pl.BlockSpec((None, 1, Lp), lambda b, i: (b, 0, 0))],
        out_specs=(pl.BlockSpec((None, TI, K), lambda b, i: (b, i, 0)),
                   pl.BlockSpec((None, TI, 1), lambda b, i: (b, i, 0))),
        compiler_params=pltpu.CompilerParams(
            dimension_semantics=("parallel", "parallel")),
    )(X_ca, X_t, m_col, m_row)
    return ei[:, :L, :], dmax[:, :L, :]


def _exact_neighbor_dists(X_ca, mask, E_idx, D_max, eps=1e-6):
    # Exact D_adjust values at the selected neighbours (same direct-difference form
    # as the PyTorch reference); O(B*L*K), trivial next to the kernel work.
    X_nb = gather_nodes(X_ca, E_idx)                           # (B, L, K, 3)
    m_nb = gather_nodes(mask[..., None], E_idx)[..., 0]        # (B, L, K)
    m2 = mask[:, :, None] * m_nb
    d2 = jnp.sum((X_nb - X_ca[:, :, None, :]) ** 2, axis=-1)
    return m2 * jnp.sqrt(d2 + eps) + (1.0 - m2) * D_max


# --------------- lane-dense (block-diagonal) embed + Normalize helpers --------------
def _block_diag(w, g):
    f, c = w.shape
    out = jnp.zeros((g * f, g * c), w.dtype)
    for i in range(g):
        out = out.at[i * f:(i + 1) * f, i * c:(i + 1) * c].set(w)
    return out


def _group_select(g, width):
    # (g, g*width): row i is 1 over columns [i*width, (i+1)*width)  (lane expansion via MXU)
    cols = jnp.arange(g * width, dtype=jnp.int32) // width
    return (cols[None, :] == jnp.arange(g, dtype=jnp.int32)[:, None]).astype(jnp.float32)


def _group_sum(g, c):
    # (g*c, g*c) block matrix of ones: h @ G = per-c-lane-group sums
    grp = jnp.arange(g * c, dtype=jnp.int32) // c
    return (grp[:, None] == grp[None, :]).astype(jnp.float32)


# --------------- Pallas kernel 2: fused edge featurize + Linear + Normalize ---------
def edge_embed_norm(d_off, D_n, O_feat, freq, rbf_mu, W, b, gain, bias_n, row_tile=2048):
    # d_off, D_n: (B, L, K); O_feat: (B, L, K, 7) -> E (B, L, K, C)
    B, L, K = d_off.shape
    Fo = O_feat.shape[-1]                      # 7
    C = W.shape[1]
    G = max(1, 128 // C)                       # edge rows packed per lane-dense out row
    OUT_W = G * C                              # 128 for C=32 -> unmasked full-width stores
    R = B * L * K

    # No zero-padded packed stream: three refs whose group reshape is a free view.
    d = d_off.reshape(R, 1).astype(jnp.float32)
    dn = D_n.reshape(R, 1).astype(jnp.float32)
    o = O_feat.reshape(R, Fo).astype(jnp.float32)

    Rg = -(-R // G)
    T = min(row_tile, _round_up(Rg, 8))        # grouped rows per tile (raise on v6e if desired)
    Rgp = _round_up(Rg, T)
    Rp = Rgp * G
    d, dn, o = _pad_rows(d, Rp), _pad_rows(dn, Rp), _pad_rows(o, Rp)
    dg = d.reshape(Rgp, G)                     # contiguous (free) group reshapes
    dng = dn.reshape(Rgp, G)
    og = o.reshape(Rgp, G * Fo)

    # torch feature order: [cos(angles)(8) | sin(angles)(8) | RBF(16) | O(7)]
    nc = NUM_POS_EMB // 2
    Wc, Ws = W[0:nc], W[nc:2 * nc]
    Wr, Wo = W[2 * nc:2 * nc + NUM_RBF], W[2 * nc + NUM_RBF:]
    wc_bd, ws_bd = _block_diag(Wc, G), _block_diag(Ws, G)
    wr_bd, wo_bd = _block_diag(Wr, G), _block_diag(Wo, G)
    sel_c = _group_select(G, nc)               # (G, G*8)
    sel_r = _group_select(G, NUM_RBF)          # (G, G*16)
    gsum = _group_sum(G, C)                    # (OUT_W, OUT_W)
    freq_t = jnp.tile(freq.reshape(1, nc), (1, G))
    mu_t = jnp.tile(rbf_mu.reshape(1, NUM_RBF), (1, G))
    b_t = jnp.tile(b.reshape(1, C), (1, G))
    g_t = jnp.tile(gain.reshape(1, C), (1, G))
    bn_t = jnp.tile(bias_n.reshape(1, C), (1, G))

    def kernel(d_ref, dn_ref, o_ref, selc_ref, selr_ref, wc_ref, ws_ref, wr_ref,
               wo_ref, gs_ref, f_ref, mu_ref, b_ref, g_ref, bn_ref, out_ref):
        # lane-expand the per-edge scalars into their feature groups via tiny matmuls
        ang = jnp.dot(d_ref[...], selc_ref[...],
                      preferred_element_type=jnp.float32) * f_ref[...]
        z = (jnp.dot(dn_ref[...], selr_ref[...],
                     preferred_element_type=jnp.float32) - mu_ref[...]) * (1.0 / RBF_SIGMA)
        rbf = jnp.exp(-(z * z))
        h = (jnp.dot(jnp.cos(ang), wc_ref[...], preferred_element_type=jnp.float32)
             + jnp.dot(jnp.sin(ang), ws_ref[...], preferred_element_type=jnp.float32)
             + jnp.dot(rbf, wr_ref[...], preferred_element_type=jnp.float32)
             + jnp.dot(o_ref[...], wo_ref[...], preferred_element_type=jnp.float32)
             + b_ref[...])
        # Normalize per C-lane group (mean / unbiased var via block-ones matmul).
        mu_h = jnp.dot(h, gs_ref[...], preferred_element_type=jnp.float32) * (1.0 / C)
        xc = h - mu_h
        var = jnp.dot(xc * xc, gs_ref[...],
                      preferred_element_type=jnp.float32) * (1.0 / (C - 1))
        inv = pl.reciprocal(jnp.sqrt(var + NORM_EPS) + NORM_EPS, approx=True)
        out_ref[...] = (g_ref[...] * inv) * xc + bn_ref[...]      # lane-dense 128-wide store

    out = pl.pallas_call(
        kernel,
        out_shape=jax.ShapeDtypeStruct((Rgp, OUT_W), jnp.float32),
        grid=(Rgp // T,),
        in_specs=[pl.BlockSpec((T, G), lambda i: (i, 0)),
                  pl.BlockSpec((T, G), lambda i: (i, 0)),
                  pl.BlockSpec((T, G * Fo), lambda i: (i, 0)),
                  pl.BlockSpec((G, G * nc), lambda i: (0, 0)),
                  pl.BlockSpec((G, G * NUM_RBF), lambda i: (0, 0)),
                  pl.BlockSpec((G * nc, OUT_W), lambda i: (0, 0)),
                  pl.BlockSpec((G * nc, OUT_W), lambda i: (0, 0)),
                  pl.BlockSpec((G * NUM_RBF, OUT_W), lambda i: (0, 0)),
                  pl.BlockSpec((G * Fo, OUT_W), lambda i: (0, 0)),
                  pl.BlockSpec((OUT_W, OUT_W), lambda i: (0, 0)),
                  pl.BlockSpec((1, G * nc), lambda i: (0, 0)),
                  pl.BlockSpec((1, G * NUM_RBF), lambda i: (0, 0)),
                  pl.BlockSpec((1, OUT_W), lambda i: (0, 0)),
                  pl.BlockSpec((1, OUT_W), lambda i: (0, 0)),
                  pl.BlockSpec((1, OUT_W), lambda i: (0, 0))],
        out_specs=pl.BlockSpec((T, OUT_W), lambda i: (i, 0)),
        compiler_params=pltpu.CompilerParams(dimension_semantics=("parallel",)),
    )(dg, dng, og, sel_c, sel_r, wc_bd, ws_bd, wr_bd, wo_bd, gsum,
      freq_t, mu_t, b_t, g_t, bn_t)
    # (Rgp, G*C) -> (Rp, C) is a free contiguous reshape (byte-identical layout).
    return out.reshape(Rp, C)[:R].reshape(B, L, K, C)


# ------------------- Pallas kernel 3: node Linear + Normalize -----------------------
def node_embed_norm(V, W, b, gain, bias_n, row_tile=2048):
    # V (B, L, F) -> (B, L, C), lane-dense output via the same block-diagonal packing.
    B, L, F = V.shape
    C = W.shape[1]
    G = max(1, 128 // C)
    OUT_W = G * C
    R = B * L
    x = V.reshape(R, F).astype(jnp.float32)

    Rg = -(-R // G)
    T = min(row_tile, _round_up(Rg, 8))
    Rgp = _round_up(Rg, T)
    Rp = Rgp * G
    x = _pad_rows(x, Rp).reshape(Rgp, G * F)

    w_bd = _block_diag(W, G)
    gsum = _group_sum(G, C)
    b_t = jnp.tile(b.reshape(1, C), (1, G))
    g_t = jnp.tile(gain.reshape(1, C), (1, G))
    bn_t = jnp.tile(bias_n.reshape(1, C), (1, G))

    def kernel(x_ref, w_ref, gs_ref, b_ref, g_ref, bn_ref, out_ref):
        h = jnp.dot(x_ref[...], w_ref[...], preferred_element_type=jnp.float32) + b_ref[...]
        mu_h = jnp.dot(h, gs_ref[...], preferred_element_type=jnp.float32) * (1.0 / C)
        xc = h - mu_h
        var = jnp.dot(xc * xc, gs_ref[...],
                      preferred_element_type=jnp.float32) * (1.0 / (C - 1))
        inv = pl.reciprocal(jnp.sqrt(var + NORM_EPS) + NORM_EPS, approx=True)
        out_ref[...] = (g_ref[...] * inv) * xc + bn_ref[...]

    out = pl.pallas_call(
        kernel,
        out_shape=jax.ShapeDtypeStruct((Rgp, OUT_W), jnp.float32),
        grid=(Rgp // T,),
        in_specs=[pl.BlockSpec((T, G * F), lambda i: (i, 0)),
                  pl.BlockSpec((G * F, OUT_W), lambda i: (0, 0)),
                  pl.BlockSpec((OUT_W, OUT_W), lambda i: (0, 0)),
                  pl.BlockSpec((1, OUT_W), lambda i: (0, 0)),
                  pl.BlockSpec((1, OUT_W), lambda i: (0, 0)),
                  pl.BlockSpec((1, OUT_W), lambda i: (0, 0))],
        out_specs=pl.BlockSpec((T, OUT_W), lambda i: (i, 0)),
        compiler_params=pltpu.CompilerParams(dimension_semantics=("parallel",)),
    )(x, w_bd, gsum, b_t, g_t, bn_t)
    return out.reshape(Rp, C)[:R].reshape(B, L, C)


# ------------------------------ ProteinFeatures forward -----------------------------
def protein_features_forward(params, X, mask, top_k=TOP_K):
    # features_type == 'full', eval mode (augment_eps=0; dropout unused in this branch)
    X_ca = X[:, :, 1, :]
    maskf = mask.astype(jnp.float32)

    # _dist: masked distances + smallest-k neighbour indices fused in Pallas;
    # exact neighbour distance values reconstructed from E_idx + per-row D_max.
    E_idx, D_max = masked_dist_topk(X_ca, maskf, top_k)
    D_neighbors = _exact_neighbor_dists(X_ca, maskf, E_idx, D_max)

    # orientation features (small 3x3 algebra, JAX glue)
    _AD_features, O_features = _orientations_coarse(X_ca, E_idx)

    # positional-encoding offsets d = E_idx - i
    ii = jnp.arange(X.shape[1], dtype=jnp.float32)[None, :, None]
    d_off = E_idx.astype(jnp.float32) - ii

    # node dihedral features
    V_raw = _dihedrals(X)

    # fused edge kernel: pos-enc + RBF + linear + normalize (lane-dense output)
    E = edge_embed_norm(d_off, D_neighbors, O_features,
                        params["freq"], params["rbf_mu"],
                        params["We"], params["be"], params["ge"], params["bne"])
    # node kernel: linear + normalize (lane-dense output)
    V = node_embed_norm(V_raw, params["Wv"], params["bv"], params["gv"], params["bnv"])
    return V, E, E_idx


def init_params(key):
    k1, k2, k3, k4 = jax.random.split(key, 4)
    edge_in = NUM_POS_EMB + NUM_RBF + 7     # 39 for 'full'
    node_in = 6
    params = {
        "We": 0.1 * jax.random.normal(k1, (edge_in, EDGE_FEATURES), jnp.float32),
        "be": 0.01 * jax.random.normal(k2, (EDGE_FEATURES,), jnp.float32),
        "ge": jnp.ones((EDGE_FEATURES,), jnp.float32),
        "bne": jnp.zeros((EDGE_FEATURES,), jnp.float32),
        "Wv": 0.1 * jax.random.normal(k3, (node_in, NODE_FEATURES), jnp.float32),
        "bv": 0.01 * jax.random.normal(k4, (NODE_FEATURES,), jnp.float32),
        "gv": jnp.ones((NODE_FEATURES,), jnp.float32),
        "bnv": jnp.zeros((NODE_FEATURES,), jnp.float32),
        "freq": jnp.exp(jnp.arange(0, NUM_POS_EMB, 2, dtype=jnp.float32)
                        * -(math.log(10000.0) / NUM_POS_EMB)),
        "rbf_mu": jnp.linspace(0.0, 20.0, NUM_RBF).astype(jnp.float32),
    }
    return params


# TODO(synk): 'hbonds'/'coarse'/'dist' feature branches and nn.Dropout / augment_eps
# (train-time only) are not exercised; only the default 'full' eval path is implemented.

if __name__ == "__main__":
    key = jax.random.PRNGKey(0)
    kp, kx = jax.random.split(key)
    params = init_params(kp)

    B, L = 2, 16
    X = 3.0 * jax.random.normal(kx, (B, L, 4, 3), jnp.float32)   # (batch, residue, atom, xyz)
    mask = jnp.ones((B, L), jnp.float32)

    V, E, E_idx = jax.jit(protein_features_forward)(params, X, mask)
    jax.block_until_ready((V, E, E_idx))

    assert V.shape == (B, L, NODE_FEATURES)
    assert E.shape == (B, L, TOP_K, EDGE_FEATURES)
    assert E_idx.shape == (B, L, TOP_K)
    assert bool(jnp.all(jnp.isfinite(V))) and bool(jnp.all(jnp.isfinite(E)))
    assert bool(jnp.all((E_idx >= 0) & (E_idx < L)))
    print("KERNEL_OK")
</pallas_src>

<mosaic_0001>
module attributes {stable_mosaic.version = 11 : i64} {
  func.func @kernel(%arg0: i32, %arg1: i32, %arg2: memref<1x16x3xf32, #tpu.memory_space<vmem>>, %arg3: memref<1x3x16xf32, #tpu.memory_space<vmem>>, %arg4: memref<1x16x1xf32, #tpu.memory_space<vmem>>, %arg5: memref<1x1x16xf32, #tpu.memory_space<vmem>>, %arg6: memref<1x16x8xi32, #tpu.memory_space<vmem>>, %arg7: memref<1x16x1xf32, #tpu.memory_space<vmem>>) attributes {dimension_semantics = [#tpu.dimension_semantics<parallel>, #tpu.dimension_semantics<parallel>], iteration_bounds = array<i64: 2, 1>, scalar_prefetch = 0 : i64, scratch_operands = 0 : i64, tpu.core_type = #tpu.core_type<tc>, window_params = [{transform_indices = @transform_0, window_bounds = array<i64: 1, 16, 3>}, {transform_indices = @transform_1, window_bounds = array<i64: 1, 3, 16>}, {transform_indices = @transform_2, window_bounds = array<i64: 1, 16, 1>}, {transform_indices = @transform_3, window_bounds = array<i64: 1, 1, 16>}, {transform_indices = @transform_4, window_bounds = array<i64: 1, 16, 8>}, {transform_indices = @transform_5, window_bounds = array<i64: 1, 16, 1>}]} {
    %0 = tpu.iota {dimensions = array<i32: 1>} : vector<1x8xi32>
    %c0_i32 = arith.constant 0 : i32
    %c2_i32 = arith.constant 2 : i32
    %1 = arith.addi %c0_i32, %c2_i32 : i32
    %c1_i32 = arith.constant 1 : i32
    scf.for %arg8 = %c0_i32 to %1 step %c1_i32  : i32 {
      %c1_i32_1 = arith.constant 1 : i32
      %2 = arith.muli %arg8, %c1_i32_1 : i32
      %c0_i32_2 = arith.constant 0 : i32
      %3 = arith.addi %c0_i32_2, %2 : i32
      %c8_i32 = arith.constant 8 : i32
      %4 = arith.muli %3, %c8_i32 : i32
      %5 = tpu.assume_multiple %4, 8 : i32
      %c0 = arith.constant 0 : index
      %6 = arith.index_cast %5 : i32 to index
      %c0_3 = arith.constant 0 : index
      %7 = vector.load %arg2[%c0, %6, %c0_3] : memref<1x16x3xf32, #tpu.memory_space<vmem>>, vector<1x8x3xf32>
      %8 = vector.shape_cast %7 : vector<1x8x3xf32> to vector<8x3xf32>
      %c0_4 = arith.constant 0 : index
      %9 = arith.index_cast %5 : i32 to index
      %c0_5 = arith.constant 0 : index
      %10 = vector.load %arg4[%c0_4, %9, %c0_5] : memref<1x16x1xf32, #tpu.memory_space<vmem>>, vector<1x8x1xf32>
      %11 = vector.shape_cast %10 : vector<1x8x1xf32> to vector<8x1xf32>
      %c0_6 = arith.constant 0 : index
      %c0_7 = arith.constant 0 : index
      %c0_8 = arith.constant 0 : index
      %12 = vector.load %arg3[%c0_6, %c0_7, %c0_8] : memref<1x3x16xf32, #tpu.memory_space<vmem>>, vector<1x3x16xf32>
      %13 = vector.shape_cast %12 : vector<1x3x16xf32> to vector<3x16xf32>
      %c0_9 = arith.constant 0 : index
      %c0_10 = arith.constant 0 : index
      %c0_11 = arith.constant 0 : index
      %14 = vector.load %arg5[%c0_9, %c0_10, %c0_11] : memref<1x1x16xf32, #tpu.memory_space<vmem>>, vector<1x1x16xf32>
      %15 = vector.shape_cast %14 : vector<1x1x16xf32> to vector<1x16xf32>
      %16 = vector.extract_strided_slice %8 {offsets = [0, 0], sizes = [8, 1], strides = [1, 1]} : vector<8x3xf32> to vector<8x1xf32>
      %17 = vector.extract_strided_slice %13 {offsets = [0, 0], sizes = [1, 16], strides = [1, 1]} : vector<3x16xf32> to vector<1x16xf32>
      %18 = vector.broadcast %16 : vector<8x1xf32> to vector<8x16xf32>
      %19 = vector.broadcast %17 : vector<1x16xf32> to vector<8x16xf32>
      %20 = arith.subf %18, %19 : vector<8x16xf32>
      %21 = vector.extract_strided_slice %8 {offsets = [0, 1], sizes = [8, 1], strides = [1, 1]} : vector<8x3xf32> to vector<8x1xf32>
      %22 = vector.extract_strided_slice %13 {offsets = [1, 0], sizes = [1, 16], strides = [1, 1]} : vector<3x16xf32> to vector<1x16xf32>
      %23 = vector.broadcast %21 : vector<8x1xf32> to vector<8x16xf32>
      %24 = vector.broadcast %22 : vector<1x16xf32> to vector<8x16xf32>
      %25 = arith.subf %23, %24 : vector<8x16xf32>
      %26 = vector.extract_strided_slice %8 {offsets = [0, 2], sizes = [8, 1], strides = [1, 1]} : vector<8x3xf32> to vector<8x1xf32>
      %27 = vector.extract_strided_slice %13 {offsets = [2, 0], sizes = [1, 16], strides = [1, 1]} : vector<3x16xf32> to vector<1x16xf32>
      %28 = vector.broadcast %26 : vector<8x1xf32> to vector<8x16xf32>
      %29 = vector.broadcast %27 : vector<1x16xf32> to vector<8x16xf32>
      %30 = arith.subf %28, %29 : vector<8x16xf32>
      %31 = arith.mulf %20, %20 : vector<8x16xf32>
      %32 = arith.mulf %25, %25 : vector<8x16xf32>
      %33 = arith.addf %31, %32 : vector<8x16xf32>
      %34 = arith.mulf %30, %30 : vector<8x16xf32>
      %35 = arith.addf %33, %34 : vector<8x16xf32>
      %36 = vector.broadcast %11 : vector<8x1xf32> to vector<8x16xf32>
      %37 = vector.broadcast %15 : vector<1x16xf32> to vector<8x16xf32>
      %38 = arith.mulf %36, %37 : vector<8x16xf32>
      %cst = arith.constant 9.99999997E-7 : f32
      %39 = vector.broadcast %cst : f32 to vector<8x16xf32>
      %40 = arith.addf %35, %39 : vector<8x16xf32>
      %41 = math.sqrt %40 : vector<8x16xf32>
      %42 = arith.mulf %38, %41 : vector<8x16xf32>
      %cst_12 = arith.constant dense<0xFF800000> : vector<8xf32>
      %43 = vector.multi_reduction <maximumf>, %42, %cst_12 [1] : vector<8x16xf32> to vector<8xf32>
      %44 = vector.shape_cast %43 : vector<8xf32> to vector<8x1xf32>
      %cst_13 = arith.constant 1.000000e+00 : f32
      %45 = vector.broadcast %cst_13 : f32 to vector<8x16xf32>
      %46 = arith.subf %45, %38 : vector<8x16xf32>
      %47 = vector.broadcast %44 : vector<8x1xf32> to vector<8x16xf32>
      %48 = arith.mulf %46, %47 : vector<8x16xf32>
      %49 = arith.addf %42, %48 : vector<8x16xf32>
      %50 = tpu.iota {dimensions = array<i32: 1>} : vector<8x16xi32>
      %51 = tpu.bitcast %49 : vector<8x16xf32> -> vector<8x16xi32>
      %c-16_i32 = arith.constant -16 : i32
      %52 = vector.broadcast %c-16_i32 : i32 to vector<8x16xi32>
      %53 = arith.andi %51, %52 : vector<8x16xi32>
      %54 = arith.ori %53, %50 : vector<8x16xi32>
      %55 = tpu.bitcast %54 : vector<8x16xi32> -> vector<8x16xf32>
      %c0_i32_14 = arith.constant 0 : i32
      %56 = vector.broadcast %c0_i32_14 : i32 to vector<8x8xi32>
      %cst_15 = arith.constant dense<0x7F800000> : vector<8xf32>
      %57 = vector.multi_reduction <minimumf>, %55, %cst_15 [1] : vector<8x16xf32> to vector<8xf32>
      %58 = vector.shape_cast %57 : vector<8xf32> to vector<8x1xf32>
      %59 = tpu.bitcast %58 : vector<8x1xf32> -> vector<8x1xi32>
      %c15_i32 = arith.constant 15 : i32
      %60 = vector.broadcast %c15_i32 : i32 to vector<8x1xi32>
      %61 = arith.andi %59, %60 : vector<8x1xi32>
      %c0_i32_16 = arith.constant 0 : i32
      %62 = vector.broadcast %c0_i32_16 : i32 to vector<1x8xi32>
      %63 = arith.cmpi eq, %0, %62 : vector<1x8xi32>
      %64 = vector.shape_cast %63 : vector<1x8xi1> to vector<1x8xi1>
      %65 = vector.broadcast %64 : vector<1x8xi1> to vector<8x8xi1>
      %66 = vector.shape_cast %61 : vector<8x1xi32> to vector<8x1xi32>
      %67 = vector.broadcast %66 : vector<8x1xi32> to vector<8x8xi32>
      %68 = arith.select %65, %67, %56 : vector<8x8xi1>, vector<8x8xi32>
      %69 = vector.broadcast %58 : vector<8x1xf32> to vector<8x16xf32>
      %70 = arith.cmpf oeq, %55, %69 : vector<8x16xf32>
      %cst_17 = arith.constant 0x7F800000 : f32
      %71 = vector.broadcast %cst_17 : f32 to vector<8x16xf32>
      %72 = arith.select %70, %71, %55 : vector<8x16xi1>, vector<8x16xf32>
      %cst_18 = arith.constant dense<0x7F800000> : vector<8xf32>
      %73 = vector.multi_reduction <minimumf>, %72, %cst_18 [1] : vector<8x16xf32> to vector<8xf32>
      %74 = vector.shape_cast %73 : vector<8xf32> to vector<8x1xf32>
      %75 = tpu.bitcast %74 : vector<8x1xf32> -> vector<8x1xi32>
      %c15_i32_19 = arith.constant 15 : i32
      %76 = vector.broadcast %c15_i32_19 : i32 to vector<8x1xi32>
      %77 = arith.andi %75, %76 : vector<8x1xi32>
      %c1_i32_20 = arith.constant 1 : i32
      %78 = vector.broadcast %c1_i32_20 : i32 to vector<1x8xi32>
      %79 = arith.cmpi eq, %0, %78 : vector<1x8xi32>
      %80 = vector.shape_cast %79 : vector<1x8xi1> to vector<1x8xi1>
      %81 = vector.broadcast %80 : vector<1x8xi1> to vector<8x8xi1>
      %82 = vector.shape_cast %77 : vector<8x1xi32> to vector<8x1xi32>
      %83 = vector.broadcast %82 : vector<8x1xi32> to vector<8x8xi32>
      %84 = arith.select %81, %83, %68 : vector<8x8xi1>, vector<8x8xi32>
      %85 = vector.broadcast %74 : vector<8x1xf32> to vector<8x16xf32>
      %86 = arith.cmpf oeq, %72, %85 : vector<8x16xf32>
      %cst_21 = arith.constant 0x7F800000 : f32
      %87 = vector.broadcast %cst_21 : f32 to vector<8x16xf32>
      %88 = arith.select %86, %87, %72 : vector<8x16xi1>, vector<8x16xf32>
      %cst_22 = arith.constant dense<0x7F800000> : vector<8xf32>
      %89 = vector.multi_reduction <minimumf>, %88, %cst_22 [1] : vector<8x16xf32> to vector<8xf32>
      %90 = vector.shape_cast %89 : vector<8xf32> to vector<8x1xf32>
      %91 = tpu.bitcast %90 : vector<8x1xf32> -> vector<8x1xi32>
      %c15_i32_23 = arith.constant 15 : i32
      %92 = vector.broadcast %c15_i32_23 : i32 to vector<8x1xi32>
      %93 = arith.andi %91, %92 : vector<8x1xi32>
      %c2_i32_24 = arith.constant 2 : i32
      %94 = vector.broadcast %c2_i32_24 : i32 to vector<1x8xi32>
      %95 = arith.cmpi eq, %0, %94 : vector<1x8xi32>
      %96 = vector.shape_cast %95 : vector<1x8xi1> to vector<1x8xi1>
      %97 = vector.broadcast %96 : vector<1x8xi1> to vector<8x8xi1>
      %98 = vector.shape_cast %93 : vector<8x1xi32> to vector<8x1xi32>
      %99 = vector.broadcast %98 : vector<8x1xi32> to vector<8x8xi32>
      %100 = arith.select %97, %99, %84 : vector<8x8xi1>, vector<8x8xi32>
      %101 = vector.broadcast %90 : vector<8x1xf32> to vector<8x16xf32>
      %102 = arith.cmpf oeq, %88, %101 : vector<8x16xf32>
      %cst_25 = arith.constant 0x7F800000 : f32
      %103 = vector.broadcast %cst_25 : f32 to vector<8x16xf32>
      %104 = arith.select %102, %103, %88 : vector<8x16xi1>, vector<8x16xf32>
      %cst_26 = arith.constant dense<0x7F800000> : vector<8xf32>
      %105 = vector.multi_reduction <minimumf>, %104, %cst_26 [1] : vector<8x16xf32> to vector<8xf32>
      %106 = vector.shape_cast %105 : vector<8xf32> to vector<8x1xf32>
      %107 = tpu.bitcast %106 : vector<8x1xf32> -> vector<8x1xi32>
      %c15_i32_27 = arith.constant 15 : i32
      %108 = vector.broadcast %c15_i32_27 : i32 to vector<8x1xi32>
      %109 = arith.andi %107, %108 : vector<8x1xi32>
      %c3_i32 = arith.constant 3 : i32
      %110 = vector.broadcast %c3_i32 : i32 to vector<1x8xi32>
      %111 = arith.cmpi eq, %0, %110 : vector<1x8xi32>
      %112 = vector.shape_cast %111 : vector<1x8xi1> to vector<1x8xi1>
      %113 = vector.broadcast %112 : vector<1x8xi1> to vector<8x8xi1>
      %114 = vector.shape_cast %109 : vector<8x1xi32> to vector<8x1xi32>
      %115 = vector.broadcast %114 : vector<8x1xi32> to vector<8x8xi32>
      %116 = arith.select %113, %115, %100 : vector<8x8xi1>, vector<8x8xi32>
      %117 = vector.broadcast %106 : vector<8x1xf32> to vector<8x16xf32>
      %118 = arith.cmpf oeq, %104, %117 : vector<8x16xf32>
      %cst_28 = arith.constant 0x7F800000 : f32
      %119 = vector.broadcast %cst_28 : f32 to vector<8x16xf32>
      %120 = arith.select %118, %119, %104 : vector<8x16xi1>, vector<8x16xf32>
      %cst_29 = arith.constant dense<0x7F800000> : vector<8xf32>
      %121 = vector.multi_reduction <minimumf>, %120, %cst_29 [1] : vector<8x16xf32> to vector<8xf32>
      %122 = vector.shape_cast %121 : vector<8xf32> to vector<8x1xf32>
      %123 = tpu.bitcast %122 : vector<8x1xf32> -> vector<8x1xi32>
      %c15_i32_30 = arith.constant 15 : i32
      %124 = vector.broadcast %c15_i32_30 : i32 to vector<8x1xi32>
      %125 = arith.andi %123, %124 : vector<8x1xi32>
      %c4_i32 = arith.constant 4 : i32
      %126 = vector.broadcast %c4_i32 : i32 to vector<1x8xi32>
      %127 = arith.cmpi eq, %0, %126 : vector<1x8xi32>
      %128 = vector.shape_cast %127 : vector<1x8xi1> to vector<1x8xi1>
      %129 = vector.broadcast %128 : vector<1x8xi1> to vector<8x8xi1>
      %130 = vector.shape_cast %125 : vector<8x1xi32> to vector<8x1xi32>
      %131 = vector.broadcast %130 : vector<8x1xi32> to vector<8x8xi32>
      %132 = arith.select %129, %131, %116 : vector<8x8xi1>, vector<8x8xi32>
      %133 = vector.broadcast %122 : vector<8x1xf32> to vector<8x16xf32>
      %134 = arith.cmpf oeq, %120, %133 : vector<8x16xf32>
      %cst_31 = arith.constant 0x7F800000 : f32
      %135 = vector.broadcast %cst_31 : f32 to vector<8x16xf32>
      %136 = arith.select %134, %135, %120 : vector<8x16xi1>, vector<8x16xf32>
      %cst_32 = arith.constant dense<0x7F800000> : vector<8xf32>
      %137 = vector.multi_reduction <minimumf>, %136, %cst_32 [1] : vector<8x16xf32> to vector<8xf32>
      %138 = vector.shape_cast %137 : vector<8xf32> to vector<8x1xf32>
      %139 = tpu.bitcast %138 : vector<8x1xf32> -> vector<8x1xi32>
      %c15_i32_33 = arith.constant 15 : i32
      %140 = vector.broadcast %c15_i32_33 : i32 to vector<8x1xi32>
      %141 = arith.andi %139, %140 : vector<8x1xi32>
      %c5_i32 = arith.constant 5 : i32
      %142 = vector.broadcast %c5_i32 : i32 to vector<1x8xi32>
      %143 = arith.cmpi eq, %0, %142 : vector<1x8xi32>
      %144 = vector.shape_cast %143 : vector<1x8xi1> to vector<1x8xi1>
      %145 = vector.broadcast %144 : vector<1x8xi1> to vector<8x8xi1>
      %146 = vector.shape_cast %141 : vector<8x1xi32> to vector<8x1xi32>
      %147 = vector.broadcast %146 : vector<8x1xi32> to vector<8x8xi32>
      %148 = arith.select %145, %147, %132 : vector<8x8xi1>, vector<8x8xi32>
      %149 = vector.broadcast %138 : vector<8x1xf32> to vector<8x16xf32>
      %150 = arith.cmpf oeq, %136, %149 : vector<8x16xf32>
      %cst_34 = arith.constant 0x7F800000 : f32
      %151 = vector.broadcast %cst_34 : f32 to vector<8x16xf32>
      %152 = arith.select %150, %151, %136 : vector<8x16xi1>, vector<8x16xf32>
      %cst_35 = arith.constant dense<0x7F800000> : vector<8xf32>
      %153 = vector.multi_reduction <minimumf>, %152, %cst_35 [1] : vector<8x16xf32> to vector<8xf32>
      %154 = vector.shape_cast %153 : vector<8xf32> to vector<8x1xf32>
      %155 = tpu.bitcast %154 : vector<8x1xf32> -> vector<8x1xi32>
      %c15_i32_36 = arith.constant 15 : i32
      %156 = vector.broadcast %c15_i32_36 : i32 to vector<8x1xi32>
      %157 = arith.andi %155, %156 : vector<8x1xi32>
      %c6_i32 = arith.constant 6 : i32
      %158 = vector.broadcast %c6_i32 : i32 to vector<1x8xi32>
      %159 = arith.cmpi eq, %0, %158 : vector<1x8xi32>
      %160 = vector.shape_cast %159 : vector<1x8xi1> to vector<1x8xi1>
      %161 = vector.broadcast %160 : vector<1x8xi1> to vector<8x8xi1>
      %162 = vector.shape_cast %157 : vector<8x1xi32> to vector<8x1xi32>
      %163 = vector.broadcast %162 : vector<8x1xi32> to vector<8x8xi32>
      %164 = arith.select %161, %163, %148 : vector<8x8xi1>, vector<8x8xi32>
      %165 = vector.broadcast %154 : vector<8x1xf32> to vector<8x16xf32>
      %166 = arith.cmpf oeq, %152, %165 : vector<8x16xf32>
      %cst_37 = arith.constant 0x7F800000 : f32
      %167 = vector.broadcast %cst_37 : f32 to vector<8x16xf32>
      %168 = arith.select %166, %167, %152 : vector<8x16xi1>, vector<8x16xf32>
      %cst_38 = arith.constant dense<0x7F800000> : vector<8xf32>
      %169 = vector.multi_reduction <minimumf>, %168, %cst_38 [1] : vector<8x16xf32> to vector<8xf32>
      %170 = vector.shape_cast %169 : vector<8xf32> to vector<8x1xf32>
      %171 = tpu.bitcast %170 : vector<8x1xf32> -> vector<8x1xi32>
      %c15_i32_39 = arith.constant 15 : i32
      %172 = vector.broadcast %c15_i32_39 : i32 to vector<8x1xi32>
      %173 = arith.andi %171, %172 : vector<8x1xi32>
      %c7_i32 = arith.constant 7 : i32
      %174 = vector.broadcast %c7_i32 : i32 to vector<1x8xi32>
      %175 = arith.cmpi eq, %0, %174 : vector<1x8xi32>
      %176 = vector.shape_cast %175 : vector<1x8xi1> to vector<1x8xi1>
      %177 = vector.broadcast %176 : vector<1x8xi1> to vector<8x8xi1>
      %178 = vector.shape_cast %173 : vector<8x1xi32> to vector<8x1xi32>
      %179 = vector.broadcast %178 : vector<8x1xi32> to vector<8x8xi32>
      %180 = arith.select %177, %179, %164 : vector<8x8xi1>, vector<8x8xi32>
      %c0_40 = arith.constant 0 : index
      %181 = arith.index_cast %5 : i32 to index
      %c0_41 = arith.constant 0 : index
      %182 = vector.load %arg6[%c0_40, %181, %c0_41] : memref<1x16x8xi32, #tpu.memory_space<vmem>>, vector<1x8x8xi32>
      %183 = vector.shape_cast %182 : vector<1x8x8xi32> to vector<8x8xi32>
      %184 = vector.shape_cast %180 : vector<8x8xi32> to vector<1x8x8xi32>
      tpu.vector_store %arg6[%c0_40, %181, %c0_41], %184 {strides = array<i32>} : memref<1x16x8xi32, #tpu.memory_space<vmem>>, vector<1x8x8xi32>,
      %c0_42 = arith.constant 0 : index
      %185 = arith.index_cast %5 : i32 to index
      %c0_43 = arith.constant 0 : index
      %186 = vector.load %arg7[%c0_42, %185, %c0_43] : memref<1x16x1xf32, #tpu.memory_space<vmem>>, vector<1x8x1xf32>
      %187 = vector.shape_cast %186 : vector<1x8x1xf32> to vector<8x1xf32>
      %188 = vector.shape_cast %44 : vector<8x1xf32> to vector<1x8x1xf32>
      tpu.vector_store %arg7[%c0_42, %185, %c0_43], %188 {strides = array<i32>} : memref<1x16x1xf32, #tpu.memory_space<vmem>>, vector<1x8x1xf32>,
    }
    %c2_i32_0 = arith.constant 2 : i32
    return
  }
  func.func @transform_0(%arg0: i32, %arg1: i32) -> (i32, i32, i32) {
    %c0_i32 = arith.constant 0 : i32
    %c0_i32_0 = arith.constant 0 : i32
    return %arg0, %arg1, %c0_i32 : i32, i32, i32
  }
  func.func @transform_1(%arg0: i32, %arg1: i32) -> (i32, i32, i32) {
    %c0_i32 = arith.constant 0 : i32
    %c0_i32_0 = arith.constant 0 : i32
    %c0_i32_1 = arith.constant 0 : i32
    return %arg0, %c0_i32, %c0_i32_0 : i32, i32, i32
  }
  func.func @transform_2(%arg0: i32, %arg1: i32) -> (i32, i32, i32) {
    %c0_i32 = arith.constant 0 : i32
    %c0_i32_0 = arith.constant 0 : i32
    return %arg0, %arg1, %c0_i32 : i32, i32, i32
  }
  func.func @transform_3(%arg0: i32, %arg1: i32) -> (i32, i32, i32) {
    %c0_i32 = arith.constant 0 : i32
    %c0_i32_0 = arith.constant 0 : i32
    %c0_i32_1 = arith.constant 0 : i32
    return %arg0, %c0_i32, %c0_i32_0 : i32, i32, i32
  }
  func.func @transform_4(%arg0: i32, %arg1: i32) -> (i32, i32, i32) {
    %c0_i32 = arith.constant 0 : i32
    %c0_i32_0 = arith.constant 0 : i32
    return %arg0, %arg1, %c0_i32 : i32, i32, i32
  }
  func.func @transform_5(%arg0: i32, %arg1: i32) -> (i32, i32, i32) {
    %c0_i32 = arith.constant 0 : i32
    %c0_i32_0 = arith.constant 0 : i32
    return %arg0, %arg1, %c0_i32 : i32, i32, i32
  }
}

module attributes {stable_mosaic.version = 11 : i64} {
  func.func @kernel(%arg0: i32, %arg1: memref<64x4xf32, #tpu.memory_space<vmem>>, %arg2: memref<64x4xf32, #tpu.memory_space<vmem>>, %arg3: memref<64x28xf32, #tpu.memory_space<vmem>>, %arg4: memref<4x32xf32, #tpu.memory_space<vmem>>, %arg5: memref<4x64xf32, #tpu.memory_space<vmem>>, %arg6: memref<32x128xf32, #tpu.memory_space<vmem>>, %arg7: memref<32x128xf32, #tpu.memory_space<vmem>>, %arg8: memref<64x128xf32, #tpu.memory_space<vmem>>, %arg9: memref<28x128xf32, #tpu.memory_space<vmem>>, %arg10: memref<128x128xf32, #tpu.memory_space<vmem>>, %arg11: memref<1x32xf32, #tpu.memory_space<vmem>>, %arg12: memref<1x64xf32, #tpu.memory_space<vmem>>, %arg13: memref<1x128xf32, #tpu.memory_space<vmem>>, %arg14: memref<1x128xf32, #tpu.memory_space<vmem>>, %arg15: memref<1x128xf32, #tpu.memory_space<vmem>>, %arg16: memref<64x128xf32, #tpu.memory_space<vmem>>) attributes {dimension_semantics = [#tpu.dimension_semantics<parallel>], iteration_bounds = array<i64: 1>, scalar_prefetch = 0 : i64, scratch_operands = 0 : i64, tpu.core_type = #tpu.core_type<tc>, window_params = [{transform_indices = @transform_0, window_bounds = array<i64: 64, 4>}, {transform_indices = @transform_1, window_bounds = array<i64: 64, 4>}, {transform_indices = @transform_2, window_bounds = array<i64: 64, 28>}, {pipeline_mode = #tpu.pipeline_mode<synchronous>, transform_indices = @transform_3, window_bounds = array<i64: 4, 32>}, {pipeline_mode = #tpu.pipeline_mode<synchronous>, transform_indices = @transform_4, window_bounds = array<i64: 4, 64>}, {pipeline_mode = #tpu.pipeline_mode<synchronous>, transform_indices = @transform_5, window_bounds = array<i64: 32, 128>}, {pipeline_mode = #tpu.pipeline_mode<synchronous>, transform_indices = @transform_6, window_bounds = array<i64: 32, 128>}, {pipeline_mode = #tpu.pipeline_mode<synchronous>, transform_indices = @transform_7, window_bounds = array<i64: 64, 128>}, {pipeline_mode = #tpu.pipeline_mode<synchronous>, transform_indices = @transform_8, window_bounds = array<i64: 28, 128>}, {pipeline_mode = #tpu.pipeline_mode<synchronous>, transform_indices = @transform_9, window_bounds = array<i64: 128, 128>}, {pipeline_mode = #tpu.pipeline_mode<synchronous>, transform_indices = @transform_10, window_bounds = array<i64: 1, 32>}, {pipeline_mode = #tpu.pipeline_mode<synchronous>, transform_indices = @transform_11, window_bounds = array<i64: 1, 64>}, {pipeline_mode = #tpu.pipeline_mode<synchronous>, transform_indices = @transform_12, window_bounds = array<i64: 1, 128>}, {pipeline_mode = #tpu.pipeline_mode<synchronous>, transform_indices = @transform_13, window_bounds = array<i64: 1, 128>}, {pipeline_mode = #tpu.pipeline_mode<synchronous>, transform_indices = @transform_14, window_bounds = array<i64: 1, 128>}, {transform_indices = @transform_15, window_bounds = array<i64: 64, 128>}]} {
    %c0 = arith.constant 0 : index
    %c0_0 = arith.constant 0 : index
    %0 = vector.load %arg1[%c0, %c0_0] : memref<64x4xf32, #tpu.memory_space<vmem>>, vector<64x4xf32>
    %c0_1 = arith.constant 0 : index
    %c0_2 = arith.constant 0 : index
    %1 = vector.load %arg4[%c0_1, %c0_2] : memref<4x32xf32, #tpu.memory_space<vmem>>, vector<4x32xf32>
    %cst = arith.constant dense<0.000000e+00> : vector<64x32xf32>
    %2 = tpu.matmul %0, %1, %cst {dimension_numbers = #tpu.dot_dimension_numbers<[1], [0], [0], [1], [0, 0, 1, 1], [], []>} : vector<64x4xf32>, vector<4x32xf32>, vector<64x32xf32> -> vector<64x32xf32>
    %c0_3 = arith.constant 0 : index
    %c0_4 = arith.constant 0 : index
    %3 = vector.load %arg11[%c0_3, %c0_4] : memref<1x32xf32, #tpu.memory_space<vmem>>, vector<1x32xf32>
    %4 = vector.broadcast %3 : vector<1x32xf32> to vector<64x32xf32>
    %5 = arith.mulf %2, %4 : vector<64x32xf32>
    %c0_5 = arith.constant 0 : index
    %c0_6 = arith.constant 0 : index
    %6 = vector.load %arg2[%c0_5, %c0_6] : memref<64x4xf32, #tpu.memory_space<vmem>>, vector<64x4xf32>
    %c0_7 = arith.constant 0 : index
    %c0_8 = arith.constant 0 : index
    %7 = vector.load %arg5[%c0_7, %c0_8] : memref<4x64xf32, #tpu.memory_space<vmem>>, vector<4x64xf32>
    %cst_9 = arith.constant dense<0.000000e+00> : vector<64x64xf32>
    %8 = tpu.matmul %6, %7, %cst_9 {dimension_numbers = #tpu.dot_dimension_numbers<[1], [0], [0], [1], [0, 0, 1, 1], [], []>} : vector<64x4xf32>, vector<4x64xf32>, vector<64x64xf32> -> vector<64x64xf32>
    %c0_10 = arith.constant 0 : index
    %c0_11 = arith.constant 0 : index
    %9 = vector.load %arg12[%c0_10, %c0_11] : memref<1x64xf32, #tpu.memory_space<vmem>>, vector<1x64xf32>
    %10 = vector.broadcast %9 : vector<1x64xf32> to vector<64x64xf32>
    %11 = arith.subf %8, %10 : vector<64x64xf32>
    %cst_12 = arith.constant 8.000000e-01 : f32
    %12 = vector.broadcast %cst_12 : f32 to vector<64x64xf32>
    %13 = arith.mulf %11, %12 : vector<64x64xf32>
    %14 = arith.mulf %13, %13 : vector<64x64xf32>
    %cst_13 = arith.constant 0.000000e+00 : f32
    %15 = vector.broadcast %cst_13 : f32 to vector<64x64xf32>
    %16 = arith.subf %15, %14 : vector<64x64xf32>
    %17 = math.exp %16 : vector<64x64xf32>
    %18 = math.cos %5 : vector<64x32xf32>
    %c0_14 = arith.constant 0 : index
    %c0_15 = arith.constant 0 : index
    %19 = vector.load %arg6[%c0_14, %c0_15] : memref<32x128xf32, #tpu.memory_space<vmem>>, vector<32x128xf32>
    %cst_16 = arith.constant dense<0.000000e+00> : vector<64x128xf32>
    %20 = tpu.matmul %18, %19, %cst_16 {dimension_numbers = #tpu.dot_dimension_numbers<[1], [0], [0], [1], [0, 0, 1, 1], [], []>} : vector<64x32xf32>, vector<32x128xf32>, vector<64x128xf32> -> vector<64x128xf32>
    %21 = math.sin %5 : vector<64x32xf32>
    %c0_17 = arith.constant 0 : index
    %c0_18 = arith.constant 0 : index
    %22 = vector.load %arg7[%c0_17, %c0_18] : memref<32x128xf32, #tpu.memory_space<vmem>>, vector<32x128xf32>
    %cst_19 = arith.constant dense<0.000000e+00> : vector<64x128xf32>
    %23 = tpu.matmul %21, %22, %cst_19 {dimension_numbers = #tpu.dot_dimension_numbers<[1], [0], [0], [1], [0, 0, 1, 1], [], []>} : vector<64x32xf32>, vector<32x128xf32>, vector<64x128xf32> -> vector<64x128xf32>
    %24 = arith.addf %20, %23 : vector<64x128xf32>
    %c0_20 = arith.constant 0 : index
    %c0_21 = arith.constant 0 : index
    %25 = vector.load %arg8[%c0_20, %c0_21] : memref<64x128xf32, #tpu.memory_space<vmem>>, vector<64x128xf32>
    %cst_22 = arith.constant dense<0.000000e+00> : vector<64x128xf32>
    %26 = tpu.matmul %17, %25, %cst_22 {dimension_numbers = #tpu.dot_dimension_numbers<[1], [0], [0], [1], [0, 0, 1, 1], [], []>} : vector<64x64xf32>, vector<64x128xf32>, vector<64x128xf32> -> vector<64x128xf32>
    %27 = arith.addf %24, %26 : vector<64x128xf32>
    %c0_23 = arith.constant 0 : index
    %c0_24 = arith.constant 0 : index
    %28 = vector.load %arg3[%c0_23, %c0_24] : memref<64x28xf32, #tpu.memory_space<vmem>>, vector<64x28xf32>
    %c0_25 = arith.constant 0 : index
    %c0_26 = arith.constant 0 : index
    %29 = vector.load %arg9[%c0_25, %c0_26] : memref<28x128xf32, #tpu.memory_space<vmem>>, vector<28x128xf32>
    %cst_27 = arith.constant dense<0.000000e+00> : vector<64x128xf32>
    %30 = tpu.matmul %28, %29, %cst_27 {dimension_numbers = #tpu.dot_dimension_numbers<[1], [0], [0], [1], [0, 0, 1, 1], [], []>} : vector<64x28xf32>, vector<28x128xf32>, vector<64x128xf32> -> vector<64x128xf32>
    %31 = arith.addf %27, %30 : vector<64x128xf32>
    %c0_28 = arith.constant 0 : index
    %c0_29 = arith.constant 0 : index
    %32 = vector.load %arg13[%c0_28, %c0_29] : memref<1x128xf32, #tpu.memory_space<vmem>>, vector<1x128xf32>
    %33 = vector.broadcast %32 : vector<1x128xf32> to vector<64x128xf32>
    %34 = arith.addf %31, %33 : vector<64x128xf32>
    %c0_30 = arith.constant 0 : index
    %c0_31 = arith.constant 0 : index
    %35 = vector.load %arg10[%c0_30, %c0_31] : memref<128x128xf32, #tpu.memory_space<vmem>>, vector<128x128xf32>
    %cst_32 = arith.constant dense<0.000000e+00> : vector<64x128xf32>
    %36 = tpu.matmul %34, %35, %cst_32 {dimension_numbers = #tpu.dot_dimension_numbers<[1], [0], [0], [1], [0, 0, 1, 1], [], []>} : vector<64x128xf32>, vector<128x128xf32>, vector<64x128xf32> -> vector<64x128xf32>
    %cst_33 = arith.constant 3.125000e-02 : f32
    %37 = vector.broadcast %cst_33 : f32 to vector<64x128xf32>
    %38 = arith.mulf %36, %37 : vector<64x128xf32>
    %39 = arith.subf %34, %38 : vector<64x128xf32>
    %40 = arith.mulf %39, %39 : vector<64x128xf32>
    %c0_34 = arith.constant 0 : index
    %c0_35 = arith.constant 0 : index
    %41 = vector.load %arg10[%c0_34, %c0_35] : memref<128x128xf32, #tpu.memory_space<vmem>>, vector<128x128xf32>
    %cst_36 = arith.constant dense<0.000000e+00> : vector<64x128xf32>
    %42 = tpu.matmul %40, %41, %cst_36 {dimension_numbers = #tpu.dot_dimension_numbers<[1], [0], [0], [1], [0, 0, 1, 1], [], []>} : vector<64x128xf32>, vector<128x128xf32>, vector<64x128xf32> -> vector<64x128xf32>
    %cst_37 = arith.constant 0.0322580636 : f32
    %43 = vector.broadcast %cst_37 : f32 to vector<64x128xf32>
    %44 = arith.mulf %42, %43 : vector<64x128xf32>
    %cst_38 = arith.constant 9.99999997E-7 : f32
    %45 = vector.broadcast %cst_38 : f32 to vector<64x128xf32>
    %46 = arith.addf %44, %45 : vector<64x128xf32>
    %47 = math.sqrt %46 : vector<64x128xf32>
    %cst_39 = arith.constant 9.99999997E-7 : f32
    %48 = vector.broadcast %cst_39 : f32 to vector<64x128xf32>
    %49 = arith.addf %47, %48 : vector<64x128xf32>
    %50 = tpu.reciprocal %49 {approx = true} : vector<64x128xf32> -> vector<64x128xf32>
    %c0_40 = arith.constant 0 : index
    %c0_41 = arith.constant 0 : index
    %51 = vector.load %arg14[%c0_40, %c0_41] : memref<1x128xf32, #tpu.memory_space<vmem>>, vector<1x128xf32>
    %52 = vector.broadcast %51 : vector<1x128xf32> to vector<64x128xf32>
    %53 = arith.mulf %52, %50 : vector<64x128xf32>
    %54 = arith.mulf %53, %39 : vector<64x128xf32>
    %c0_42 = arith.constant 0 : index
    %c0_43 = arith.constant 0 : index
    %55 = vector.load %arg15[%c0_42, %c0_43] : memref<1x128xf32, #tpu.memory_space<vmem>>, vector<1x128xf32>
    %56 = vector.broadcast %55 : vector<1x128xf32> to vector<64x128xf32>
    %57 = arith.addf %54, %56 : vector<64x128xf32>
    %c0_44 = arith.constant 0 : index
    %c0_45 = arith.constant 0 : index
    %58 = vector.load %arg16[%c0_44, %c0_45] : memref<64x128xf32, #tpu.memory_space<vmem>>, vector<64x128xf32>
    tpu.vector_store %arg16[%c0_44, %c0_45], %57 {strides = array<i32>} : memref<64x128xf32, #tpu.memory_space<vmem>>, vector<64x128xf32>,
    return
  }
  func.func @transform_0(%arg0: i32) -> (i32, i32) {
    %c0_i32 = arith.constant 0 : i32
    %c0_i32_0 = arith.constant 0 : i32
    return %arg0, %c0_i32 : i32, i32
  }
  func.func @transform_1(%arg0: i32) -> (i32, i32) {
    %c0_i32 = arith.constant 0 : i32
    %c0_i32_0 = arith.constant 0 : i32
    return %arg0, %c0_i32 : i32, i32
  }
  func.func @transform_2(%arg0: i32) -> (i32, i32) {
    %c0_i32 = arith.constant 0 : i32
    %c0_i32_0 = arith.constant 0 : i32
    return %arg0, %c0_i32 : i32, i32
  }
  func.func @transform_3(%arg0: i32) -> (i32, i32) {
    %c0_i32 = arith.constant 0 : i32
    %c0_i32_0 = arith.constant 0 : i32
    %c0_i32_1 = arith.constant 0 : i32
    return %c0_i32, %c0_i32_0 : i32, i32
  }
  func.func @transform_4(%arg0: i32) -> (i32, i32) {
    %c0_i32 = arith.constant 0 : i32
    %c0_i32_0 = arith.constant 0 : i32
    %c0_i32_1 = arith.constant 0 : i32
    return %c0_i32, %c0_i32_0 : i32, i32
  }
  func.func @transform_5(%arg0: i32) -> (i32, i32) {
    %c0_i32 = arith.constant 0 : i32
    %c0_i32_0 = arith.constant 0 : i32
    %c0_i32_1 = arith.constant 0 : i32
    return %c0_i32, %c0_i32_0 : i32, i32
  }
  func.func @transform_6(%arg0: i32) -> (i32, i32) {
    %c0_i32 = arith.constant 0 : i32
    %c0_i32_0 = arith.constant 0 : i32
    %c0_i32_1 = arith.constant 0 : i32
    return %c0_i32, %c0_i32_0 : i32, i32
  }
  func.func @transform_7(%arg0: i32) -> (i32, i32) {
    %c0_i32 = arith.constant 0 : i32
    %c0_i32_0 = arith.constant 0 : i32
    %c0_i32_1 = arith.constant 0 : i32
    return %c0_i32, %c0_i32_0 : i32, i32
  }
  func.func @transform_8(%arg0: i32) -> (i32, i32) {
    %c0_i32 = arith.constant 0 : i32
    %c0_i32_0 = arith.constant 0 : i32
    %c0_i32_1 = arith.constant 0 : i32
    return %c0_i32, %c0_i32_0 : i32, i32
  }
  func.func @transform_9(%arg0: i32) -> (i32, i32) {
    %c0_i32 = arith.constant 0 : i32
    %c0_i32_0 = arith.constant 0 : i32
    %c0_i32_1 = arith.constant 0 : i32
    return %c0_i32, %c0_i32_0 : i32, i32
  }
  func.func @transform_10(%arg0: i32) -> (i32, i32) {
    %c0_i32 = arith.constant 0 : i32
    %c0_i32_0 = arith.constant 0 : i32
    %c0_i32_1 = arith.constant 0 : i32
    return %c0_i32, %c0_i32_0 : i32, i32
  }
  func.func @transform_11(%arg0: i32) -> (i32, i32) {
    %c0_i32 = arith.constant 0 : i32
    %c0_i32_0 = arith.constant 0 : i32
    %c0_i32_1 = arith.constant 0 : i32
    return %c0_i32, %c0_i32_0 : i32, i32
  }
  func.func @transform_12(%arg0: i32) -> (i32, i32) {
    %c0_i32 = arith.constant 0 : i32
    %c0_i32_0 = arith.constant 0 : i32
    %c0_i32_1 = arith.constant 0 : i32
    return %c0_i32, %c0_i32_0 : i32, i32
  }
  func.func @transform_13(%arg0: i32) -> (i32, i32) {
    %c0_i32 = arith.constant 0 : i32
    %c0_i32_0 = arith.constant 0 : i32
    %c0_i32_1 = arith.constant 0 : i32
    return %c0_i32, %c0_i32_0 : i32, i32
  }
  func.func @transform_14(%arg0: i32) -> (i32, i32) {
    %c0_i32 = arith.constant 0 : i32
    %c0_i32_0 = arith.constant 0 : i32
    %c0_i32_1 = arith.constant 0 : i32
    return %c0_i32, %c0_i32_0 : i32, i32
  }
  func.func @transform_15(%arg0: i32) -> (i32, i32) {
    %c0_i32 = arith.constant 0 : i32
    %c0_i32_0 = arith.constant 0 : i32
    return %arg0, %c0_i32 : i32, i32
  }
}

module attributes {stable_mosaic.version = 11 : i64} {
  func.func @kernel(%arg0: i32, %arg1: memref<8x24xf32, #tpu.memory_space<vmem>>, %arg2: memref<24x128xf32, #tpu.memory_space<vmem>>, %arg3: memref<128x128xf32, #tpu.memory_space<vmem>>, %arg4: memref<1x128xf32, #tpu.memory_space<vmem>>, %arg5: memref<1x128xf32, #tpu.memory_space<vmem>>, %arg6: memref<1x128xf32, #tpu.memory_space<vmem>>, %arg7: memref<8x128xf32, #tpu.memory_space<vmem>>) attributes {dimension_semantics = [#tpu.dimension_semantics<parallel>], iteration_bounds = array<i64: 1>, scalar_prefetch = 0 : i64, scratch_operands = 0 : i64, tpu.core_type = #tpu.core_type<tc>, window_params = [{transform_indices = @transform_0, window_bounds = array<i64: 8, 24>}, {pipeline_mode = #tpu.pipeline_mode<synchronous>, transform_indices = @transform_1, window_bounds = array<i64: 24, 128>}, {pipeline_mode = #tpu.pipeline_mode<synchronous>, transform_indices = @transform_2, window_bounds = array<i64: 128, 128>}, {pipeline_mode = #tpu.pipeline_mode<synchronous>, transform_indices = @transform_3, window_bounds = array<i64: 1, 128>}, {pipeline_mode = #tpu.pipeline_mode<synchronous>, transform_indices = @transform_4, window_bounds = array<i64: 1, 128>}, {pipeline_mode = #tpu.pipeline_mode<synchronous>, transform_indices = @transform_5, window_bounds = array<i64: 1, 128>}, {transform_indices = @transform_6, window_bounds = array<i64: 8, 128>}]} {
    %c0 = arith.constant 0 : index
    %c0_0 = arith.constant 0 : index
    %0 = vector.load %arg1[%c0, %c0_0] : memref<8x24xf32, #tpu.memory_space<vmem>>, vector<8x24xf32>
    %c0_1 = arith.constant 0 : index
    %c0_2 = arith.constant 0 : index
    %1 = vector.load %arg2[%c0_1, %c0_2] : memref<24x128xf32, #tpu.memory_space<vmem>>, vector<24x128xf32>
    %cst = arith.constant dense<0.000000e+00> : vector<8x128xf32>
    %2 = tpu.matmul %0, %1, %cst {dimension_numbers = #tpu.dot_dimension_numbers<[1], [0], [0], [1], [0, 0, 1, 1], [], []>} : vector<8x24xf32>, vector<24x128xf32>, vector<8x128xf32> -> vector<8x128xf32>
    %c0_3 = arith.constant 0 : index
    %c0_4 = arith.constant 0 : index
    %3 = vector.load %arg4[%c0_3, %c0_4] : memref<1x128xf32, #tpu.memory_space<vmem>>, vector<1x128xf32>
    %4 = vector.broadcast %3 : vector<1x128xf32> to vector<8x128xf32>
    %5 = arith.addf %2, %4 : vector<8x128xf32>
    %c0_5 = arith.constant 0 : index
    %c0_6 = arith.constant 0 : index
    %6 = vector.load %arg3[%c0_5, %c0_6] : memref<128x128xf32, #tpu.memory_space<vmem>>, vector<128x128xf32>
    %cst_7 = arith.constant dense<0.000000e+00> : vector<8x128xf32>
    %7 = tpu.matmul %5, %6, %cst_7 {dimension_numbers = #tpu.dot_dimension_numbers<[1], [0], [0], [1], [0, 0, 1, 1], [], []>} : vector<8x128xf32>, vector<128x128xf32>, vector<8x128xf32> -> vector<8x128xf32>
    %cst_8 = arith.constant 3.125000e-02 : f32
    %8 = vector.broadcast %cst_8 : f32 to vector<8x128xf32>
    %9 = arith.mulf %7, %8 : vector<8x128xf32>
    %10 = arith.subf %5, %9 : vector<8x128xf32>
    %11 = arith.mulf %10, %10 : vector<8x128xf32>
    %c0_9 = arith.constant 0 : index
    %c0_10 = arith.constant 0 : index
    %12 = vector.load %arg3[%c0_9, %c0_10] : memref<128x128xf32, #tpu.memory_space<vmem>>, vector<128x128xf32>
    %cst_11 = arith.constant dense<0.000000e+00> : vector<8x128xf32>
    %13 = tpu.matmul %11, %12, %cst_11 {dimension_numbers = #tpu.dot_dimension_numbers<[1], [0], [0], [1], [0, 0, 1, 1], [], []>} : vector<8x128xf32>, vector<128x128xf32>, vector<8x128xf32> -> vector<8x128xf32>
    %cst_12 = arith.constant 0.0322580636 : f32
    %14 = vector.broadcast %cst_12 : f32 to vector<8x128xf32>
    %15 = arith.mulf %13, %14 : vector<8x128xf32>
    %cst_13 = arith.constant 9.99999997E-7 : f32
    %16 = vector.broadcast %cst_13 : f32 to vector<8x128xf32>
    %17 = arith.addf %15, %16 : vector<8x128xf32>
    %18 = math.sqrt %17 : vector<8x128xf32>
    %cst_14 = arith.constant 9.99999997E-7 : f32
    %19 = vector.broadcast %cst_14 : f32 to vector<8x128xf32>
    %20 = arith.addf %18, %19 : vector<8x128xf32>
    %21 = tpu.reciprocal %20 {approx = true} : vector<8x128xf32> -> vector<8x128xf32>
    %c0_15 = arith.constant 0 : index
    %c0_16 = arith.constant 0 : index
    %22 = vector.load %arg5[%c0_15, %c0_16] : memref<1x128xf32, #tpu.memory_space<vmem>>, vector<1x128xf32>
    %23 = vector.broadcast %22 : vector<1x128xf32> to vector<8x128xf32>
    %24 = arith.mulf %23, %21 : vector<8x128xf32>
    %25 = arith.mulf %24, %10 : vector<8x128xf32>
    %c0_17 = arith.constant 0 : index
    %c0_18 = arith.constant 0 : index
    %26 = vector.load %arg6[%c0_17, %c0_18] : memref<1x128xf32, #tpu.memory_space<vmem>>, vector<1x128xf32>
    %27 = vector.broadcast %26 : vector<1x128xf32> to vector<8x128xf32>
    %28 = arith.addf %25, %27 : vector<8x128xf32>
    %c0_19 = arith.constant 0 : index
    %c0_20 = arith.constant 0 : index
    %29 = vector.load %arg7[%c0_19, %c0_20] : memref<8x128xf32, #tpu.memory_space<vmem>>, vector<8x128xf32>
    tpu.vector_store %arg7[%c0_19, %c0_20], %28 {strides = array<i32>} : memref<8x128xf32, #tpu.memory_space<vmem>>, vector<8x128xf32>,
    return
  }
  func.func @transform_0(%arg0: i32) -> (i32, i32) {
    %c0_i32 = arith.constant 0 : i32
    %c0_i32_0 = arith.constant 0 : i32
    return %arg0, %c0_i32 : i32, i32
  }
  func.func @transform_1(%arg0: i32) -> (i32, i32) {
    %c0_i32 = arith.constant 0 : i32
    %c0_i32_0 = arith.constant 0 : i32
    %c0_i32_1 = arith.constant 0 : i32
    return %c0_i32, %c0_i32_0 : i32, i32
  }
  func.func @transform_2(%arg0: i32) -> (i32, i32) {
    %c0_i32 = arith.constant 0 : i32
    %c0_i32_0 = arith.constant 0 : i32
    %c0_i32_1 = arith.constant 0 : i32
    return %c0_i32, %c0_i32_0 : i32, i32
  }
  func.func @transform_3(%arg0: i32) -> (i32, i32) {
    %c0_i32 = arith.constant 0 : i32
    %c0_i32_0 = arith.constant 0 : i32
    %c0_i32_1 = arith.constant 0 : i32
    return %c0_i32, %c0_i32_0 : i32, i32
  }
  func.func @transform_4(%arg0: i32) -> (i32, i32) {
    %c0_i32 = arith.constant 0 : i32
    %c0_i32_0 = arith.constant 0 : i32
    %c0_i32_1 = arith.constant 0 : i32
    return %c0_i32, %c0_i32_0 : i32, i32
  }
  func.func @transform_5(%arg0: i32) -> (i32, i32) {
    %c0_i32 = arith.constant 0 : i32
    %c0_i32_0 = arith.constant 0 : i32
    %c0_i32_1 = arith.constant 0 : i32
    return %c0_i32, %c0_i32_0 : i32, i32
  }
  func.func @transform_6(%arg0: i32) -> (i32, i32) {
    %c0_i32 = arith.constant 0 : i32
    %c0_i32_0 = arith.constant 0 : i32
    return %arg0, %c0_i32 : i32, i32
  }
}

</mosaic_0001>

<bundles_post_ra>
// kernel: protein_features_forward.3
= control target key start
LH: loop header
LB: loop body
LE: loop exit
PB: predicated region body
PF: predicated region fallthrough
CT: control target
= control target key end

     0   :  { %s838_s18 = smov 0   ;;  %s840_s19 = smov 0   ;;  %s957_s0 = inlined_call_operand.vmem [shape: f32[2,16,3], index: 0, kind: input, shape index: {}]   ;;  %s958_s1 = inlined_call_operand.vmem [shape: f32[2,3,16], index: 1, kind: input, shape index: {}]   ;;  %s959_s2 = inlined_call_operand.vmem [shape: f32[2,16,1], index: 2, kind: input, shape index: {}]   ;;  %s960_s3 = inlined_call_operand.vmem [shape: f32[2,1,16], index: 3, kind: input, shape index: {}]   ;;  %s961_s4 = inlined_call_operand.vmem [shape: s32[2,16,8], index: 4, kind: output, shape index: {0}]   ;;  %s962_s5 = inlined_call_operand.vmem [shape: f32[2,16,1], index: 5, kind: output, shape index: {1}]  }
   0x1   :  { %s842_s20 = smov 0  }
   0x2 LB: > { %s28_s21 = sadd.s32 1, %s795_s19  ;;  %p713_p0 = scmp.ge.s32.totalorder %s799_s20, 1  ;;  %s799_s20 = sphi %s842_s20, %s16_s20   ;;  %s795_s19 = sphi %s840_s19, %s964_s19   ;;  %s791_s18 = sphi %s838_s18, %s963_s18  }
   0x3   : > { %p30_p1 = scmp.ge.s32.totalorder %s28_s21, 2  ;;  %p247_p2 = scmp.lt.s32.totalorder %s799_s20, 3 }
   0x5   : > { %s966_s21 = smov (%p30_p1, %s28_s21), 0  ;;  %p248_p3 = pnand %p713_p0, %p247_p2 }
   0x6   : > { %p309_p4 = scmp.lt.s32.totalorder (!%p248_p3), %s791_s18, 1  ;;  %s889_s17 = smov (!%p248_p3), 0  }
   0x7   : > { %251 = sbr.rel (%p248_p3) target bundleno = 1256 (0x4e8), region = 36 }
   0xc   : > { %v355_v0 = vlaneseq  ;;  %s968_s18 = smov (!%p309_p4, %s791_s18), 1 }
   0xd   : > { %s861_s22 = sshll.u32 %s968_s18, 4  ;;  %s716_s23 = sshll.u32 %s968_s18, 2 }
   0xe   : > { %v858_v1 = vand.u32 127, %v355_v0  ;;  %s316_s26 = scalar_lea.vmem %s957_s0, %s861_s22  ;;  %s871_s29 = scalar_lea.vmem %s958_s1, %s716_s23 }
   0xf   : > { %s330_s7 = scalar_lea.vmem %s959_s2, %s861_s22  ;;  %s334_s10 = scalar_lea.vmem %s960_s3, %s968_s18 }
  0x10   : > { %s343_s13 = scalar_lea.vmem %s961_s4, %s861_s22  ;;  %s353_s16 = scalar_lea.vmem %s962_s5, %s861_s22 }
  0x11 LB: >> { %v805_v2 = vmov 0   ;;  %v806_v3 = vmov 2   ;;  %s895_s23 = sshll.u32 %s803_s17, 3  ;;  %v807_v6 = vmov 1   ;;  %v368_v8 = vld [vmem:[%s871_s29] sm:$0x7]  ;;  %s803_s17 = sphi %s889_s17, %s362_s17  }
  0x12   : >> { %765 = vset.pattern.permute.xlu0 %v805_v2  ;;  %767 = vset.pattern.permute.xlu1 %v806_v3  ;;  %s364_s27 = scalar_lea.vmem %s316_s26, %s895_s23  ;;  %s366_s6 = scalar_lea.vmem %s330_s7, %s895_s23  ;;  %v375_v9 = vperm.slane %v368_v8, 0  ;;  %v387_v10 = vperm.slane %v368_v8, 2  ;;  %v381_v12 = vperm.slane %v368_v8, 1  ;;  %v770_v27 = vld [vmem:[%s334_s10] ss:$0 sm:$0xff]  ;;  %vm417_vm2 = vcmask 130048  }
  0x13   : >> { %v365_v4 = vld [vmem:[%s364_s27] sm:$0xff]  ;;  %s517_s14 = scalar_lea.vmem %s353_s16, %s895_s23  ;;  %vm518_vm3 = vcmask 7168   ;;  %vm433_vm7 = vcmp.eq.s32.totalorder %v858_v1, 0  ;;  %vm444_vm8 = vcmp.eq.s32.totalorder %v858_v1, 1  ;;  %vm455_vm9 = vcmp.eq.s32.totalorder %v858_v1, 2  ;;  %s514_s25 = scalar_lea.vmem %s343_s13, %s895_s23 }
  0x14   : >> { %372 = vperm.xlu0 %765, %v365_v4   ;;  %384 = vperm.xlu1 %767, %v365_v4   ;;  %v367_v5 = vld [vmem:[%s366_s6] sm:$0xff]  ;;  %vm466_vm10 = vcmp.eq.s32.totalorder %v858_v1, 3  ;;  %vm477_vm15 = vcmp.eq.s32.totalorder %v858_v1, 4  ;;  %s362_s17 = sadd.s32 1, %s803_s17  }
  0x15   : >> { %p359_p5 = scmp.ge.s32.totalorder %s362_s17, 2  }
  0x1c   : >> { %766 = vset.pattern.permute.xlu0 %v807_v6  ;;  %768 = vset.pattern.permute.xlu1 %v805_v2 }
  0x1d   : >> { %378 = vperm.xlu0 %766, %v365_v4   ;;  %396 = vperm.xlu1 %768, %v367_v5  }
  0x25   : >> { %769 = vset.pattern.permute.xlu0 %v805_v2 }
  0x86   : >> { %v373_v7 = vpop.permute.xlu0 %372  ;;  %v385_v11 = vpop.permute.xlu1 %384 }
  0x87   : >> { %v376_v13 = vsub.f32 %v373_v7, %v375_v9  ;;  %v388_v14 = vsub.f32 %v385_v11, %v387_v10 }
  0x89   : >> { %v389_v17 = vmul.f32 %v376_v13, %v376_v13  ;;  %v392_v19 = vmul.f32 %v388_v14, %v388_v14 }
  0x8f   : >> { %v379_v15 = vpop.permute.xlu0 %378  ;;  %v397_v29 = vpop.permute.xlu1 %396 }
  0x90   : >> { %v382_v16 = vsub.f32 %v379_v15, %v381_v12  ;;  %v402_v31 = vmul.f32 %v770_v27, %v397_v29 }
  0x92   : >> { %v390_v18 = vmul.f32 %v382_v16, %v382_v16  ;;  %v421_v38 = vsub.f32 1.0, %v402_v31 }
  0x94   : >> { %v391_v20 = vadd.f32 %v390_v18, %v389_v17 }
  0x96   : >> { %v393_v21 = vadd.f32 %v392_v19, %v391_v20 }
  0x98   : >> { %v403_v22 = vadd.f32 1e-06, %v393_v21 }
  0x9a   : >> { %771 = vrsqrt.f32 %v403_v22  ;;  %vm411_vm0 = vcmp.eq.f32.partialorder %v403_v22, inf  ;;  %v414_v33 = vand.u32 2147483648, %v403_v22  ;;  %vm413_vm1 = vcmp.eq.f32.partialorder %v403_v22, 0.0 }
  0xa0   : >> { %v772_v23 = vpop.eup %771 }
  0xa1   : >> { %v405_v24 = vmul.f32 %v772_v23, %v403_v22 }
  0xa3   : >> { %v406_v25 = vmul.f32 %v772_v23, %v405_v24 }
  0xa5   : >> { %v407_v26 = vmul.f32 0.5, %v406_v25 }
  0xa7   : >> { %v408_v28 = vsub.f32 1.5, %v407_v26 }
  0xa9   : >> { %v409_v30 = vmul.f32 %v772_v23, %v408_v28 }
  0xab   : >> { %v410_v32 = vmul.f32 %v409_v30, %v403_v22 }
  0xad   : >> { %v412_v34 = vsel %vm411_vm0, %v403_v22, %v410_v32  ;;  %vm488_vm0 = vcmp.eq.s32.totalorder %v858_v1, 5 }
  0xae   : >> { %v415_v35 = vsel %vm413_vm1, %v414_v33, %v412_v34  ;;  %vm499_vm1 = vcmp.eq.s32.totalorder %v858_v1, 6 }
  0xaf   : >> { %v416_v36 = vmul.f32 %v415_v35, %v402_v31 }
  0xb1   : >> { %v418_v37 = vsel %vm417_vm2, %v416_v36, -inf }
  0xb2   : >> { %419 = vmax.xlane.f32.xlu2 %v418_v37 }
 0x125   : >> { %v420_v39 = vpop.xlane.xlu2 %419 }
 0x126   : >> { %v422_v40 = vmul.f32 %v421_v38, %v420_v39  ;;  %519 = vst.msk [vmem:[%s517_s14] sm:$0xff] %vm518_vm3, %v420_v39  ;;  %vm510_vm3 = vcmp.eq.s32.totalorder %v858_v1, 7 }
 0x128   : >> { %v423_v41 = vadd.f32 %v422_v40, %v416_v36 }
 0x12a   : >> { %v425_v42 = vand.u32 4294967280, %v423_v41 }
 0x12c   : >> { %v426_v43 = vor.u32 %v425_v42, %v858_v1 }
 0x12e   : >> { %v428_v44 = vsel %vm417_vm2, %v426_v43, inf }
 0x12f   : >> { %429 = vmin.xlane.f32.xlu2 %v428_v44 }
 0x1a2   : >> { %v430_v45 = vpop.xlane.xlu2 %429 }
 0x1a3   : >> { %vm437_vm4 = vcmp.eq.f32.partialorder %v426_v43, %v430_v45  ;;  %v432_v54 = vand.u32 15, %v430_v45 }
 0x1a4   : >> { %v438_v46 = vsel %vm437_vm4, inf, %v426_v43 }
 0x1a5   : >> { %v439_v47 = vsel %vm417_vm2, %v438_v46, inf  ;;  %v436_v57 = vsel %vm433_vm7, %v432_v54, 0 }
 0x1a6   : >> { %440 = vmin.xlane.f32.xlu1 %v439_v47 }
 0x219   : >> { %v441_v48 = vpop.xlane.xlu1 %440 }
 0x21a   : >> { %vm448_vm5 = vcmp.eq.f32.partialorder %v438_v46, %v441_v48  ;;  %v443_v55 = vand.u32 15, %v441_v48 }
 0x21b   : >> { %v449_v49 = vsel %vm448_vm5, inf, %v438_v46 }
 0x21c   : >> { %v450_v50 = vsel %vm417_vm2, %v449_v49, inf  ;;  %v447_v59 = vsel %vm444_vm8, %v443_v55, %v436_v57 }
 0x21d   : >> { %451 = vmin.xlane.f32.xlu2 %v450_v50 }
 0x290   : >> { %v452_v51 = vpop.xlane.xlu2 %451 }
 0x291   : >> { %vm459_vm6 = vcmp.eq.f32.partialorder %v449_v49, %v452_v51  ;;  %v454_v56 = vand.u32 15, %v452_v51 }
 0x292   : >> { %v460_v52 = vsel %vm459_vm6, inf, %v449_v49 }
 0x293   : >> { %v461_v53 = vsel %vm417_vm2, %v460_v52, inf  ;;  %v458_v61 = vsel %vm455_vm9, %v454_v56, %v447_v59 }
 0x294   : >> { %462 = vmin.xlane.f32.xlu0 %v461_v53 }
 0x307   : >> { %v463_v58 = vpop.xlane.xlu0 %462 }
 0x308   : >> { %v465_v60 = vand.u32 15, %v463_v58  ;;  %vm470_vm11 = vcmp.eq.f32.partialorder %v460_v52, %v463_v58 }
 0x309   : >> { %v471_v62 = vsel %vm470_vm11, inf, %v460_v52 }
 0x30a   : >> { %v469_v63 = vsel %vm466_vm10, %v465_v60, %v458_v61  ;;  %v472_v0 = vsel %vm417_vm2, %v471_v62, inf }
 0x30b   : >> { %473 = vmin.xlane.f32.xlu2 %v472_v0 }
 0x37e   : >> { %v474_v2 = vpop.xlane.xlu2 %473 }
 0x37f   : >> { %vm481_vm12 = vcmp.eq.f32.partialorder %v471_v62, %v474_v2  ;;  %v476_v11 = vand.u32 15, %v474_v2 }
 0x380   : >> { %v482_v3 = vsel %vm481_vm12, inf, %v471_v62 }
 0x381   : >> { %v483_v4 = vsel %vm417_vm2, %v482_v3, inf  ;;  %v480_v14 = vsel %vm477_vm15, %v476_v11, %v469_v63 }
 0x382   : >> { %484 = vmin.xlane.f32.xlu2 %v483_v4 }
 0x3f5   : >> { %v485_v5 = vpop.xlane.xlu2 %484 }
 0x3f6   : >> { %vm492_vm13 = vcmp.eq.f32.partialorder %v482_v3, %v485_v5  ;;  %v487_v12 = vand.u32 15, %v485_v5 }
 0x3f7   : >> { %v493_v6 = vsel %vm492_vm13, inf, %v482_v3 }
 0x3f8   : >> { %v494_v7 = vsel %vm417_vm2, %v493_v6, inf  ;;  %v491_v16 = vsel %vm488_vm0, %v487_v12, %v480_v14 }
 0x3f9   : >> { %495 = vmin.xlane.f32.xlu2 %v494_v7 }
 0x46c   : >> { %v496_v8 = vpop.xlane.xlu2 %495 }
 0x46d   : >> { %vm503_vm14 = vcmp.eq.f32.partialorder %v493_v6, %v496_v8  ;;  %v498_v13 = vand.u32 15, %v496_v8 }
 0x46e   : >> { %v504_v9 = vsel %vm503_vm14, inf, %v493_v6 }
 0x46f   : >> { %v505_v10 = vsel %vm417_vm2, %v504_v9, inf  ;;  %vm515_vm2 = vcmask 64512   ;;  %v502_v18 = vsel %vm499_vm1, %v498_v13, %v491_v16 }
 0x470   : >> { %506 = vmin.xlane.f32.xlu2 %v505_v10 }
 0x4e3   : >> { %v507_v15 = vpop.xlane.xlu2 %506  ;;  %361 = sbr.rel (!%p359_p5) target bundleno = 17 (0x11), region = 98 }
 0x4e4   : >> { %v509_v17 = vand.u32 15, %v507_v15 }
 0x4e6   : >> { %v513_v19 = vsel %vm510_vm3, %v509_v17, %v502_v18 }
 0x4e7   : >> { %516 = vst.msk [vmem:[%s514_s25] sm:$0xff] %vm515_vm2, %v513_v19 }
 0x4e8 PF: > { %s16_s20 = sadd.s32 1, %s799_s20   ;;  %s963_s18 = smov %s795_s19 }
 0x4e9   : > { %p13_p6 = scmp.ge.s32.totalorder %s16_s20, 4   ;;  %s964_s19 = smov %s966_s21 }
 0x4eb   :  { %15 = sbr.rel (!%p13_p6) target bundleno = 2 (0x2), region = 109 }

// kernel: protein_features_forward.4
= control target key start
LH: loop header
LB: loop body
LE: loop exit
PB: predicated region body
PF: predicated region fallthrough
CT: control target
= control target key end

     0   :  { %vm84_vm0 = vcmask 1043456   ;;  %vm59_vm1 = vcmask 31744   ;;  %v5512_v38 = vmov 1326507024   ;;  %v5510_v42 = vmov 920167782   ;;  %s5485_s3 = inlined_call_operand.vmem [shape: f32[4,32], index: 3, kind: input, shape index: {}]   ;;  %s5486_s0 = inlined_call_operand.vmem [shape: f32[64,4], index: 0, kind: input, shape index: {}]   ;;  %s5487_s10 = inlined_call_operand.vmem [shape: f32[1,32], index: 10, kind: input, shape index: {}]   ;;  %s5488_s4 = inlined_call_operand.vmem [shape: f32[4,64], index: 4, kind: input, shape index: {}]   ;;  %s5489_s1 = inlined_call_operand.vmem [shape: f32[64,4], index: 1, kind: input, shape index: {}]   ;;  %s5490_s11 = inlined_call_operand.vmem [shape: f32[1,64], index: 11, kind: input, shape index: {}]   ;;  %s5491_s7 = inlined_call_operand.vmem [shape: f32[64,128], index: 7, kind: input, shape index: {}]   ;;  %s5492_s8 = inlined_call_operand.vmem [shape: f32[28,128], index: 8, kind: input, shape index: {}]   ;;  %s5493_s6 = inlined_call_operand.vmem [shape: f32[32,128], index: 6, kind: input, shape index: {}]   ;;  %s5494_s5 = inlined_call_operand.vmem [shape: f32[32,128], index: 5, kind: input, shape index: {}]   ;;  %s5495_s2 = inlined_call_operand.vmem [shape: f32[64,28], index: 2, kind: input, shape index: {}]   ;;  %s5496_s12 = inlined_call_operand.vmem [shape: f32[1,128], index: 12, kind: input, shape index: {}]   ;;  %s5497_s9 = inlined_call_operand.vmem [shape: f32[128,128], index: 9, kind: input, shape index: {}]   ;;  %s5498_s13 = inlined_call_operand.vmem [shape: f32[1,128], index: 13, kind: input, shape index: {}]   ;;  %s5499_s14 = inlined_call_operand.vmem [shape: f32[1,128], index: 14, kind: input, shape index: {}]   ;;  %s5500_s15 = inlined_call_operand.vmem [shape: f32[64,128], index: 15, kind: output, shape index: {}]  }
   0x1   :  { %v58_v0 = vld [vmem:[%s5485_s3] sm:$0xf]  ;;  %v51_v2 = vld [vmem:[%s5486_s0 + $0x8] sm:$0xff]  ;;  %v52_v3 = vld [vmem:[%s5486_s0 + $0x10] sm:$0xff]  ;;  %v5508_v46 = vmov 2131351028  }
   0x2   :  { %v50_v1 = vld [vmem:[%s5486_s0] sm:$0xff]  ;;  %3358 = vmatpush.msk.msra.mxu0 %vm84_vm0, %v58_v0  ;;  %v53_v4 = vld [vmem:[%s5486_s0 + $0x18] sm:$0xff]  ;;  %v142_v8 = vld [vmem:[%s5489_s1 + $0x8] sm:$0xff]  ;;  %v5514_v48 = vmov 2102212464  }
   0x3   :  { %3359 = vmatmul.msk.f32.vlgmr.msra.gmra.mxu0 %vm59_vm1, %v50_v1  ;;  %v149_v5 = vld [vmem:[%s5488_s4] sm:$0xf]  ;;  %v55_v9 = vld [vmem:[%s5486_s0 + $0x28] sm:$0xff]  ;;  %v143_v10 = vld [vmem:[%s5489_s1 + $0x10] sm:$0xff]  ;;  %v5516_v54 = vmov 2475754826  }
   0x4   :  { %v141_v6 = vld [vmem:[%s5489_s1] sm:$0xff]  ;;  %3367 = vmatpush.msk.msra.mxu1 %vm84_vm0, %v149_v5  ;;  %v56_v11 = vld [vmem:[%s5486_s0 + $0x30] sm:$0xff]  ;;  %v144_v12 = vld [vmem:[%s5489_s1 + $0x18] sm:$0xff]  ;;  %v5520_v59 = vmov 683565275  }
   0x5   :  { %3368 = vmatmul.msk.f32.vlgmr.msra.gmra.mxu1 %vm59_vm1, %v141_v6  ;;  %v54_v7 = vld [vmem:[%s5486_s0 + $0x20] sm:$0xff]  ;;  %v57_v13 = vld [vmem:[%s5486_s0 + $0x38] sm:$0xff]  ;;  %v146_v15 = vld [vmem:[%s5489_s1 + $0x28] sm:$0xff] }
   0x6   :  { %v145_v14 = vld [vmem:[%s5489_s1 + $0x20] sm:$0xff]  ;;  %v147_v16 = vld [vmem:[%s5489_s1 + $0x30] sm:$0xff]  ;;  %v148_v23 = vld [vmem:[%s5489_s1 + $0x38] sm:$0xff] }
   0x7   :  { %v3676_v17 = vld [vmem:[%s5487_s10] ss:$0 sm:$0xff] }
   0xb   :  { %3360 = vmatmul.msk.f32.gmra.mxu0 %vm59_vm1, %v51_v2 }
   0xd   :  { %3369 = vmatmul.msk.f32.gmra.mxu1 %vm59_vm1, %v142_v8 }
  0x13   :  { %3361 = vmatmul.msk.f32.gmra.mxu0 %vm59_vm1, %v52_v3 }
  0x15   :  { %3370 = vmatmul.msk.f32.gmra.mxu1 %vm59_vm1, %v143_v10 }
  0x1b   :  { %3362 = vmatmul.msk.f32.gmra.mxu0 %vm59_vm1, %v53_v4 }
  0x1d   :  { %3371 = vmatmul.msk.f32.gmra.mxu1 %vm59_vm1, %v144_v12 }
  0x23   :  { %3363 = vmatmul.msk.f32.gmra.mxu0 %vm59_vm1, %v54_v7 }
  0x25   :  { %3372 = vmatmul.msk.f32.gmra.mxu1 %vm59_vm1, %v145_v14 }
  0x2b   :  { %3364 = vmatmul.msk.f32.gmra.mxu0 %vm59_vm1, %v55_v9 }
  0x2d   :  { %3373 = vmatmul.msk.f32.gmra.mxu1 %vm59_vm1, %v146_v15 }
  0x33   :  { %3365 = vmatmul.msk.f32.gmra.mxu0 %vm59_vm1, %v56_v11 }
  0x35   :  { %3374 = vmatmul.msk.f32.gmra.mxu1 %vm59_vm1, %v147_v16 }
  0x3b   :  { %3366 = vmatmul.msk.f32.gmra.mxu0 %vm59_vm1, %v57_v13 }
  0x3d   :  { %3375 = vmatmul.msk.f32.gmra.mxu1 %vm59_vm1, %v148_v23 }
  0x80   :  { %v105_v18 = vpop.f32.mrf.mxu0 }
  0x81   :  { %v3679_v19 = vmul.f32 %v3676_v17, %v105_v18 }
  0x83   :  { %5585 = vst [vmem:[#allocation2_spill] sm:$0xff] %v3679_v19  ;;  %v273_v20 = vand.u32 2139095040, %v3679_v19  ;;  %v5503_v32 = vand.u32 2147483647, %v3679_v19 }
  0x85   :  { %v274_v21 = vshrl.u32 %v273_v20, 23  ;;  %v277_v36 = vand.u32 8388607, %v5503_v32 }
  0x87   :  { %v3376_v22 = vadd.s32 4294967169, %v274_v21  ;;  %v278_v41 = vor.u32 8388608, %v277_v36 }
  0x88   :  { %v108_v24 = vpop.f32.mrf.mxu0 }
  0x89   :  { %v3687_v25 = vmul.f32 %v3676_v17, %v108_v24  ;;  %v280_v26 = vadd.s32 1, %v3376_v22  ;;  %v3710_v61 = vshll.u32 %v278_v41, 8 }
  0x8b   :  { %5586 = vst [vmem:[#allocation3_spill] sm:$0xff] %v3687_v25  ;;  %v427_v27 = vand.u32 2139095040, %v3687_v25  ;;  %vm281_vm2 = vcmp.gt.s32.totalorder %v280_v26, 0  ;;  %v5502_v52 = vand.u32 2147483647, %v3687_v25  ;;  %v3720_v7 = vand.u32 65535, %v3710_v61 }
  0x8c   :  { %v282_v29 = vsel %vm281_vm2, %v280_v26, 0  ;;  %5588 = vst [vmem:[#allocation5_spill] sm:$0xff] %v3710_v61  ;;  %v3723_v8 = vshrl.u32 %v3710_v61, 16 }
  0x8d   :  { %v428_v28 = vshrl.u32 %v427_v27, 23  ;;  %v284_v31 = vand.u32 31, %v282_v29  ;;  %v3699_v45 = vshrl.u32 %v282_v29, 5  ;;  %v431_v3 = vand.u32 8388607, %v5502_v52 }
  0x8f   :  { %v3379_v30 = vadd.s32 4294967169, %v428_v28  ;;  %v285_v35 = vsub.s32 32, %v284_v31  ;;  %v299_v43 = vshll.u32 %v5510_v42, %v284_v31  ;;  %v290_v56 = vshll.u32 %v5516_v54, %v284_v31 }
  0x90   :  { %v111_v34 = vpop.f32.mrf.mxu0  ;;  %v293_v57 = vshll.u32 %v5508_v46, %v284_v31  ;;  %v296_v58 = vshll.u32 %v5514_v48, %v284_v31  ;;  %v287_v60 = vshll.u32 %v5520_v59, %v284_v31  ;;  %vm305_vm4 = vcmp.lt.s32.totalorder %v3699_v45, 4 }
  0x91   :  { %v434_v33 = vadd.s32 1, %v3379_v30  ;;  %v3694_v37 = vmul.f32 %v3676_v17, %v111_v34  ;;  %v300_v39 = vshrl.u32 %v5512_v38, %v285_v35  ;;  %v291_v47 = vshrl.u32 %v5508_v46, %v285_v35 }
  0x92   :  { %v294_v49 = vshrl.u32 %v5514_v48, %v285_v35  ;;  %v297_v50 = vshrl.u32 %v5510_v42, %v285_v35  ;;  %v288_v55 = vshrl.u32 %v5516_v54, %v285_v35  ;;  %vm302_vm5 = vcmp.lt.s32.totalorder %v3699_v45, 1 }
  0x93   :  { %vm435_vm3 = vcmp.gt.s32.totalorder %v434_v33, 0  ;;  %5587 = vst [vmem:[#allocation4_spill] sm:$0xff] %v3694_v37  ;;  %v581_v44 = vand.u32 2139095040, %v3694_v37  ;;  %v301_v51 = vor.u32 %v300_v39, %v299_v43  ;;  %v292_v63 = vor.u32 %v291_v47, %v290_v56 }
  0x94   :  { %v436_v40 = vsel %vm435_vm3, %v434_v33, 0  ;;  %v295_v0 = vor.u32 %v294_v49, %v293_v57  ;;  %v298_v1 = vor.u32 %v297_v50, %v296_v58  ;;  %v289_v6 = vor.u32 %v288_v55, %v287_v60 }
  0x95   :  { %v438_v53 = vand.u32 31, %v436_v40  ;;  %v582_v62 = vshrl.u32 %v581_v44, 23  ;;  %v315_v2 = vsel %vm305_vm4, %v301_v51, 1326507024  ;;  %vm304_vm6 = vcmp.lt.s32.totalorder %v3699_v45, 3 }
  0x96   :  { %v286_v9 = vshrl.u32 %v5520_v59, %v285_v35  ;;  %vm303_vm7 = vcmp.lt.s32.totalorder %v3699_v45, 2  ;;  %v314_v10 = vsel %vm302_vm5, %v292_v63, %v295_v0  ;;  %v316_v11 = vsel %vm304_vm6, %v298_v1, %v315_v2 }
  0x97   :  { %v439_v4 = vsub.s32 32, %v438_v53  ;;  %v3382_v5 = vadd.s32 4294967169, %v582_v62  ;;  %v307_v13 = vsel %vm305_vm4, %v295_v0, 2102212464  ;;  %v432_v14 = vor.u32 8388608, %v431_v3 }
  0x98   :  { %v114_v12 = vpop.f32.mrf.mxu0  ;;  %v306_v18 = vsel %vm302_vm5, %v286_v9, %v289_v6  ;;  %v310_v20 = vsel %vm302_vm5, %v289_v6, %v292_v63  ;;  %v311_v21 = vsel %vm305_vm4, %v298_v1, 920167782  ;;  %v3737_v23 = vsel %vm303_vm7, %v314_v10, %v316_v11 }
  0x99   :  { %v454_v15 = vshrl.u32 %v5512_v38, %v439_v4  ;;  %v588_v16 = vadd.s32 1, %v3382_v5  ;;  %v448_v22 = vshrl.u32 %v5514_v48, %v439_v4  ;;  %v451_v24 = vshrl.u32 %v5510_v42, %v439_v4 }
  0x9a   :  { %v453_v26 = vshll.u32 %v5510_v42, %v438_v53  ;;  %v3742_v27 = vmul.f32 %v3676_v17, %v114_v12  ;;  %v308_v28 = vsel %vm304_vm6, %v292_v63, %v307_v13  ;;  %v437_v29 = vshrl.u32 %v436_v40, 5 }
  0x9b   :  { %v445_v30 = vshrl.u32 %v5508_v46, %v439_v4  ;;  %v447_v31 = vshll.u32 %v5508_v46, %v438_v53  ;;  %v442_v33 = vshrl.u32 %v5516_v54, %v439_v4  ;;  %v450_v34 = vshll.u32 %v5514_v48, %v438_v53 }
  0x9c   :  { %5589 = vst [vmem:[#allocation6_spill] sm:$0xff] %v3742_v27  ;;  %v455_v35 = vor.u32 %v454_v15, %v453_v26  ;;  %vm589_vm8 = vcmp.gt.s32.totalorder %v588_v16, 0  ;;  %v312_v36 = vsel %vm304_vm6, %v295_v0, %v311_v21  ;;  %v322_v39 = vshrl.u32 %v3737_v23, 16 }
  0x9d   :  { %v444_v41 = vshll.u32 %v5516_v54, %v438_v53  ;;  %v449_v43 = vor.u32 %v448_v22, %v447_v31  ;;  %v3756_v40 = vsel %vm303_vm7, %v306_v18, %v308_v28  ;;  %v441_v44 = vshll.u32 %v5520_v59, %v438_v53 }
  0x9e   :  { %5590 = vst [vmem:[#allocation7_spill] sm:$0xff] %v3756_v40  ;;  %v452_v47 = vor.u32 %v451_v24, %v450_v34  ;;  %v735_v49 = vand.u32 2139095040, %v3742_v27  ;;  %vm459_vm9 = vcmp.lt.s32.totalorder %v437_v29, 4  ;;  %v3760_v51 = vshll.u32 %v432_v14, 8 }
  0x9f   :  { %v446_v50 = vor.u32 %v445_v30, %v444_v41  ;;  %v590_v55 = vsel %vm589_vm8, %v588_v16, 0  ;;  %v3764_v56 = vsel %vm303_vm7, %v310_v20, %v312_v36  ;;  %v443_v57 = vor.u32 %v442_v33, %v441_v44 }
  0xa0   :  { %5591 = vst [vmem:[#allocation8_spill] sm:$0xff] %v3760_v51  ;;  %v469_v58 = vsel %vm459_vm9, %v455_v35, 1326507024  ;;  %v5501_v60 = vand.u32 2147483647, %v3694_v37  ;;  %v3768_v62 = vmul.u32 %v322_v39, %v3720_v7  ;;  %v440_v53 = vshrl.u32 %v5520_v59, %v439_v4  ;;  %v117_v15 = vpop.f32.mrf.mxu0 }
  0xa1   :  { %vm456_vm10 = vcmp.lt.s32.totalorder %v437_v29, 1  ;;  %v461_v63 = vsel %vm459_vm9, %v449_v43, 2102212464  ;;  %vm458_vm11 = vcmp.lt.s32.totalorder %v437_v29, 3  ;;  %v465_v0 = vsel %vm459_vm9, %v452_v47, 920167782 }
  0xa2   :  { %v592_v1 = vand.u32 31, %v590_v55  ;;  %v736_v2 = vshrl.u32 %v735_v49, 23  ;;  %v5507_v3 = vand.u32 65535, %v3737_v23  ;;  %v468_v5 = vsel %vm456_vm10, %v446_v50, %v449_v43 }
  0xa3   :  { %v470_v6 = vsel %vm458_vm11, %v452_v47, %v469_v58  ;;  %v460_v9 = vsel %vm456_vm10, %v440_v53, %v443_v57  ;;  %v462_v10 = vsel %vm458_vm11, %v446_v50, %v461_v63  ;;  %v585_v4 = vand.u32 8388607, %v5501_v60 }
  0xa4   :  { %v3385_v11 = vadd.s32 4294967169, %v736_v2  ;;  %v344_v12 = vshrl.u32 %v3764_v56, 16  ;;  %vm457_vm12 = vcmp.lt.s32.totalorder %v437_v29, 2  ;;  %v464_v13 = vsel %vm456_vm10, %v443_v57, %v446_v50 }
  0xa5   :  { %v466_v14 = vsel %vm458_vm11, %v449_v43, %v465_v0  ;;  %v5505_v16 = vshll.u32 %v3768_v62, 16  ;;  %v3781_v18 = vsel %vm457_vm12, %v468_v5, %v470_v6  ;;  %v593_v20 = vsub.s32 32, %v592_v1 }
  0xa6   :  { %v742_v21 = vadd.s32 1, %v3385_v11  ;;  %v3784_v24 = vsel %vm457_vm12, %v460_v9, %v462_v10  ;;  %v3787_v26 = vand.u32 65535, %v3760_v51  ;;  %v3790_v28 = vshrl.u32 %v3760_v51, 16 }
  0xa7   :  { %5592 = vst [vmem:[#allocation9_spill] sm:$0xff] %v3784_v24  ;;  %v3795_v29 = vmul.u32 %v5507_v3, %v3720_v7  ;;  %v3797_v30 = vsel %vm457_vm12, %v464_v13, %v466_v14  ;;  %v586_v31 = vor.u32 8388608, %v585_v4  ;;  %v3800_v33 = vmul.u32 %v322_v39, %v3723_v8 }
  0xa8   :  { %vm743_vm13 = vcmp.gt.s32.totalorder %v742_v21, 0  ;;  %v3803_v34 = vmul.u32 %v344_v12, %v3720_v7  ;;  %v3806_v35 = vmul.u32 %v344_v12, %v3723_v8  ;;  %v5504_v36 = vand.u32 65535, %v3781_v18 }
  0xa9   :  { %v3812_v41 = vadd.s32 %v5505_v16, %v3795_v29  ;;  %v608_v44 = vshrl.u32 %v5512_v38, %v593_v20  ;;  %v3818_v39 = vmul.f32 %v3676_v17, %v117_v15  ;;  %v476_v47 = vshrl.u32 %v3781_v18, 16 }
  0xaa   :  { %v498_v50 = vshrl.u32 %v3797_v30, 16  ;;  %v744_v57 = vsel %vm743_vm13, %v742_v21, 0  ;;  %v602_v58 = vshrl.u32 %v5514_v48, %v593_v20  ;;  %v607_v53 = vshll.u32 %v5510_v42, %v592_v1  ;;  %v120_v21 = vpop.f32.mrf.mxu0 }
  0xab   :  { %5593 = vst [vmem:[#allocation10_spill] sm:$0xff] %v3818_v39  ;;  %v3825_v63 = vshll.u32 %v586_v31, 8  ;;  %v5506_v0 = vand.u32 2147483647, %v3742_v27  ;;  %v3831_v2 = vmul.u32 %v5504_v36, %v3787_v26  ;;  %v3833_v5 = vshrl.u32 %v590_v55, 5 }
  0xac   :  { %v599_v6 = vshrl.u32 %v5508_v46, %v593_v20  ;;  %v605_v9 = vshrl.u32 %v5510_v42, %v593_v20  ;;  %v601_v10 = vshll.u32 %v5508_v46, %v592_v1  ;;  %v609_v4 = vor.u32 %v608_v44, %v607_v53 }
  0xad   :  { %5594 = vst [vmem:[#allocation11_spill] sm:$0xff] %v3825_v63  ;;  %v3838_v11 = vand.u32 31, %v744_v57  ;;  %v889_v12 = vand.u32 2139095040, %v3818_v39  ;;  %v3842_v13 = vmul.u32 %v476_v47, %v3787_v26  ;;  %v596_v14 = vshrl.u32 %v5516_v54, %v593_v20 }
  0xae   :  { %v598_v15 = vshll.u32 %v5516_v54, %v592_v1  ;;  %v604_v55 = vshll.u32 %v5514_v48, %v592_v1  ;;  %v3848_v31 = vmul.u32 %v476_v47, %v3790_v28  ;;  %v3851_v60 = vmul.u32 %v498_v50, %v3787_v26 }
  0xaf   :  { %v3854_v44 = vmul.u32 %v498_v50, %v3790_v28  ;;  %v603_v53 = vor.u32 %v602_v58, %v601_v10  ;;  %v595_v52 = vshll.u32 %v5520_v59, %v592_v1  ;;  %vm613_vm14 = vcmp.lt.s32.totalorder %v3833_v5, 4 }
  0xb0   :  { %v600_v32 = vor.u32 %v599_v6, %v598_v15  ;;  %v606_v43 = vor.u32 %v605_v9, %v604_v55  ;;  %v623_v45 = vsel %vm613_vm14, %v609_v4, 1326507024  ;;  %v747_v49 = vsub.s32 32, %v3838_v11 }
  0xb1   :  { %5595 = vst [vmem:[#allocation12_spill] sm:$0xff] %v3854_v44  ;;  %v890_v36 = vshrl.u32 %v889_v12, 23  ;;  %v3860_v47 = vmul.f32 %v3676_v17, %v120_v21  ;;  %v597_v22 = vor.u32 %v596_v14, %v595_v52  ;;  %v3863_v16 = vand.u32 65535, %v3825_v63 }
  0xb2   :  { %v3866_v50 = vshrl.u32 %v3825_v63, 16  ;;  %v3870_v1 = vand.u32 8388607, %v5506_v0  ;;  %vm610_vm15 = vcmp.lt.s32.totalorder %v3833_v5, 1  ;;  %vm612_vm1 = vcmp.lt.s32.totalorder %v3833_v5, 3 }
  0xb3   :  { %5596 = vst [vmem:[#allocation13_spill] sm:$0xff] %v3860_v47  ;;  %v615_v58 = vsel %vm613_vm14, %v603_v53, 2102212464  ;;  %v3388_v6 = vadd.s32 4294967169, %v890_v36  ;;  %v594_v9 = vshrl.u32 %v5520_v59, %v593_v20  ;;  %v619_v10 = vsel %vm613_vm14, %v606_v43, 920167782 }
  0xb4   :  { %5597 = vst [vmem:[#allocation14_spill] sm:$0xff] %v3863_v16  ;;  %v622_v52 = vsel %vm610_vm15, %v600_v32, %v603_v53  ;;  %v624_v4 = vsel %vm612_vm1, %v606_v43, %v623_v45  ;;  %vm611_vm2 = vcmp.lt.s32.totalorder %v3833_v5, 2  ;;  %v762_v12 = vshrl.u32 %v5512_v38, %v747_v49 }
  0xb5   :  { %v896_v14 = vadd.s32 1, %v3388_v6  ;;  %v1043_v15 = vand.u32 2139095040, %v3860_v47  ;;  %v614_v55 = vsel %vm610_vm15, %v594_v9, %v597_v22  ;;  %v616_v21 = vsel %vm612_vm1, %v600_v32, %v615_v58 }
  0xb6   :  { %v618_v0 = vsel %vm610_vm15, %v597_v22, %v600_v32  ;;  %v756_v36 = vshrl.u32 %v5514_v48, %v747_v49  ;;  %v620_v20 = vsel %vm612_vm1, %v603_v53, %v619_v10  ;;  %v3887_v45 = vsel %vm611_vm2, %v622_v52, %v624_v4  ;;  %v2888_v52 = vld [vmem:[%s5491_s7 + $0x38] sm:$0xff] }
  0xb7   :  { %5598 = vst [vmem:[#allocation15_spill] sm:$0xff] %v3887_v45  ;;  %v759_v43 = vshrl.u32 %v5510_v42, %v747_v49  ;;  %v761_v6 = vshll.u32 %v5510_v42, %v3838_v11  ;;  %v745_v3 = vshrl.u32 %v744_v57, 5  ;;  %v753_v9 = vshrl.u32 %v5508_v46, %v747_v49  ;;  %v2974_v57 = vld [vmem:[%s5492_s8 + $0x18] sm:$0xf]  ;;  %2922 = vmatpush.msrb.mxu0 %v2888_v52 }
  0xb8   :  { %v755_v32 = vshll.u32 %v5508_v46, %v3838_v11  ;;  %vm897_vm3 = vcmp.gt.s32.totalorder %v896_v14, 0  ;;  %v750_v22 = vshrl.u32 %v5516_v54, %v747_v49  ;;  %v758_v53 = vshll.u32 %v5514_v48, %v3838_v11  ;;  %3448 = vmatpush.msk.msrb.mxu1 %vm84_vm0, %v2974_v57 }
  0xb9   :  { %v763_v58 = vor.u32 %v762_v12, %v761_v6  ;;  %v1044_v10 = vshrl.u32 %v1043_v15, 23  ;;  %v630_v46 = vshrl.u32 %v3887_v45, 16  ;;  %v752_v42 = vshll.u32 %v5516_v54, %v3838_v11 }
  0xba   :  { %v757_v38 = vor.u32 %v756_v36, %v755_v32  ;;  %v3911_v12 = vsel %vm611_vm2, %v614_v55, %v616_v21  ;;  %v749_v15 = vshll.u32 %v5520_v59, %v3838_v11  ;;  %v760_v6 = vor.u32 %v759_v43, %v758_v53 }
  0xbb   :  { %5599 = vst [vmem:[#allocation16_spill] sm:$0xff] %v3911_v12  ;;  %v898_v48 = vsel %vm897_vm3, %v896_v14, 0  ;;  %v3918_v4 = vsel %vm611_vm2, %v618_v0, %v620_v20  ;;  %v740_v54 = vor.u32 8388608, %v3870_v1  ;;  %v754_v36 = vor.u32 %v753_v9, %v752_v42 }
  0xbc   :  { %5600 = vst [vmem:[#allocation17_spill] sm:$0xff] %v3918_v4  ;;  %vm767_vm4 = vcmp.lt.s32.totalorder %v745_v3, 4  ;;  %v751_v32 = vor.u32 %v750_v22, %v749_v15  ;;  %v5522_v57 = vand.u32 2147483647, %v3818_v39  ;;  %v3391_v55 = vadd.s32 4294967169, %v1044_v10  ;;  %v123_v39 = vpop.f32.mrf.mxu0 }
  0xbd   :  { %v777_v52 = vsel %vm767_vm4, %v763_v58, 1326507024  ;;  %v3924_v11 = vmul.u32 %v630_v46, %v3863_v16  ;;  %v769_v43 = vsel %vm767_vm4, %v757_v38, 2102212464  ;;  %v900_v14 = vand.u32 31, %v898_v48 }
  0xbe   :  { %v748_v5 = vshrl.u32 %v5520_v59, %v747_v49  ;;  %vm764_vm0 = vcmp.lt.s32.totalorder %v745_v3, 1  ;;  %vm766_vm5 = vcmp.lt.s32.totalorder %v745_v3, 3  ;;  %v773_v0 = vsel %vm767_vm4, %v760_v6, 920167782 }
  0xbf   :  { %v652_v42 = vshrl.u32 %v3918_v4, 16  ;;  %v776_v1 = vsel %vm764_vm0, %v754_v36, %v757_v38  ;;  %v778_v20 = vsel %vm766_vm5, %v760_v6, %v777_v52  ;;  %v3928_v9 = vshll.u32 %v740_v54, 8 }
  0xc0   :  { %v768_v22 = vsel %vm764_vm0, %v748_v5, %v751_v32  ;;  %v770_v53 = vsel %vm766_vm5, %v754_v36, %v769_v43  ;;  %v893_v58 = vand.u32 8388607, %v5522_v57  ;;  %v1050_v10 = vadd.s32 1, %v3391_v55 }
  0xc1   :  { %5601 = vst [vmem:[#allocation18_spill] sm:$0xff] %v3928_v9  ;;  %vm765_vm6 = vcmp.lt.s32.totalorder %v745_v3, 2  ;;  %v772_v15 = vsel %vm764_vm0, %v751_v32, %v754_v36  ;;  %v774_v21 = vsel %vm766_vm5, %v757_v38, %v773_v0  ;;  %v3932_v27 = vsub.s32 32, %v900_v14 }
  0xc2   :  { %v5602_v49 = vshll.u32 %v3842_v13, 16  ;;  %v5527_v6 = vshll.u32 %v3924_v11, 16  ;;  %v3942_v52 = vsel %vm765_vm6, %v776_v1, %v778_v20  ;;  %v5604_v55 = vand.u32 65535, %v3887_v45 }
  0xc3   :  { %5603 = vst [vmem:[#allocation19_spill] sm:$0xff] %v3942_v52  ;;  %v3950_v38 = vmul.u32 %v630_v46, %v3866_v50  ;;  %v3953_v32 = vsel %vm765_vm6, %v768_v22, %v770_v53  ;;  %v3956_v43 = vmul.u32 %v652_v42, %v3863_v16  ;;  %v3959_v5 = vmul.u32 %v652_v42, %v3866_v50 }
  0xc4   :  { %v3937_v59 = vadd.s32 %v5602_v49, %v3831_v2  ;;  %v3947_v3 = vmul.u32 %v5604_v55, %v3863_v16  ;;  %5606 = vst [vmem:[#allocation21_spill] sm:$0xff] %v3953_v32  ;;  %v3961_v0 = vsel %vm765_vm6, %v772_v15, %v774_v21  ;;  %vm1051_vm7 = vcmp.gt.s32.totalorder %v1050_v10, 0 }
  0xc5   :  { %5605 = vst [vmem:[#allocation20_spill] sm:$0xff] %v3950_v38  ;;  %v3964_v1 = vand.u32 65535, %v3928_v9  ;;  %v784_v20 = vshrl.u32 %v3942_v52, 16  ;;  %v894_v46 = vor.u32 8388608, %v893_v58  ;;  %v5611_v49 = vmov 1326507024  }
  0xc6   :  { %5607 = vst [vmem:[#allocation22_spill] sm:$0xff] %v3956_v43  ;;  %v916_v55 = vshrl.u32 %v5611_v49, %v3932_v27  ;;  %v3972_v22 = vadd.s32 %v5527_v6, %v3947_v3  ;;  %v3975_v42 = vshrl.u32 %v3928_v9, 16  ;;  %v806_v58 = vshrl.u32 %v3961_v0, 16 }
  0xc7   :  { %5608 = vst [vmem:[#allocation23_spill] sm:$0xff] %v3959_v5  ;;  %v5614_v57 = vmov 920167782   ;;  %v1052_v36 = vsel %vm1051_vm7, %v1050_v10, 0  ;;  %v3983_v37 = vshrl.u32 %v898_v48, 5  ;;  %v3992_v53 = vmul.u32 %v784_v20, %v3964_v1 }
  0xc8   :  { %5609 = vst [vmem:[#allocation24_spill] sm:$0xff] %v3961_v0  ;;  %v915_v54 = vshll.u32 %v5614_v57, %v900_v14  ;;  %v5615_v6 = vmov 2131351028   ;;  %v5616_v63 = vmov 2102212464   ;;  %v913_v21 = vshrl.u32 %v5614_v57, %v3932_v27 }
  0xc9   :  { %5610 = vst [vmem:[#allocation25_spill] sm:$0xff] %v3964_v1  ;;  %v907_v12 = vshrl.u32 %v5615_v6, %v3932_v27  ;;  %v910_v25 = vshrl.u32 %v5616_v63, %v3932_v27  ;;  %v5618_v15 = vmov 2475754826   ;;  %v3995_v24 = vshll.u32 %v894_v46, 8 }
  0xca   :  { %5612 = vst [vmem:[#allocation26_spill] sm:$0xff] %v3972_v22  ;;  %v906_v32 = vshll.u32 %v5618_v15, %v900_v14  ;;  %v917_v9 = vor.u32 %v916_v55, %v915_v54  ;;  %v904_v48 = vshrl.u32 %v5618_v15, %v3932_v27  ;;  %v909_v10 = vshll.u32 %v5615_v6, %v900_v14 }
  0xcb   :  { %5613 = vst [vmem:[#allocation27_spill] sm:$0xff] %v3975_v42  ;;  %v912_v51 = vshll.u32 %v5616_v63, %v900_v14  ;;  %v1054_v5 = vand.u32 31, %v1052_v36  ;;  %v5620_v19 = vand.u32 65535, %v3942_v52  ;;  %v5622_v38 = vmov 683565275  }
  0xcc   :  { %5617 = vst [vmem:[#allocation28_spill] sm:$0xff] %v3992_v53  ;;  %v903_v4 = vshll.u32 %v5622_v38, %v900_v14  ;;  %v5623_v54 = vand.u32 2147483647, %v3860_v47  ;;  %v908_v55 = vor.u32 %v907_v12, %v906_v32  ;;  %v911_v22 = vor.u32 %v910_v25, %v909_v10  ;;  %v126_v10 = vpop.f32.mrf.mxu0 }
  0xcd   :  { %5619 = vst [vmem:[#allocation29_spill] sm:$0xff] %v3995_v24  ;;  %v4004_v43 = vmul.u32 %v5620_v19, %v3964_v1  ;;  %v914_v40 = vor.u32 %v913_v21, %v912_v51  ;;  %vm921_vm8 = vcmp.lt.s32.totalorder %v3983_v37, 4  ;;  %v4014_v61 = vmul.u32 %v784_v20, %v3975_v42 }
  0xce   :  { %v4010_v46 = vand.u32 8388607, %v5623_v54  ;;  %v5548_v52 = vshll.u32 %v3992_v53, 16  ;;  %v4018_v19 = vmul.u32 %v806_v58, %v3964_v1  ;;  %v931_v14 = vsel %vm921_vm8, %v917_v9, 1326507024  ;;  %v2887_v9 = vld [vmem:[%s5491_s7 + $0x30] sm:$0xff] }
  0xcf   :  { %5621 = vst [vmem:[#allocation30_spill] sm:$0xff] %v4004_v43  ;;  %v4023_v16 = vmul.u32 %v806_v58, %v3975_v42  ;;  %v905_v54 = vor.u32 %v904_v48, %v903_v4  ;;  %v4026_v25 = vand.u32 65535, %v3995_v24  ;;  %v1055_v51 = vsub.s32 32, %v1054_v5  ;;  %2923 = vmatpush.msrb.mxu0 %v2887_v9 }
  0xd0   :  { %5624 = vst [vmem:[#allocation31_spill] sm:$0xff] %v4014_v61  ;;  %vm918_vm9 = vcmp.lt.s32.totalorder %v3983_v37, 1  ;;  %vm920_vm10 = vcmp.lt.s32.totalorder %v3983_v37, 3  ;;  %v4031_v12 = vshrl.u32 %v3995_v24, 16  ;;  %v4034_v32 = vmul.f32 %v3676_v17, %v123_v39 }
  0xd1   :  { %5625 = vst [vmem:[#allocation32_spill] sm:$0xff] %v4018_v19  ;;  %v927_v4 = vsel %vm921_vm8, %v914_v40, 920167782  ;;  %v930_v20 = vsel %vm918_vm9, %v908_v55, %v911_v22  ;;  %v932_v21 = vsel %vm920_vm10, %v914_v40, %v931_v14  ;;  %v4049_v39 = vadd.s32 %v5548_v52, %v4004_v43 }
  0xd2   :  { %5626 = vst [vmem:[#allocation33_spill] sm:$0xff] %v4023_v16  ;;  %v902_v48 = vshrl.u32 %v5622_v38, %v3932_v27  ;;  %v5629_v47 = vand.u32 65535, %v3737_v23  ;;  %vm919_vm11 = vcmp.lt.s32.totalorder %v3983_v37, 2  ;;  %v923_v40 = vsel %vm921_vm8, %v911_v22, 2102212464  ;;  %v2885_v37 = vld [vmem:[%s5491_s7 + $0x20] sm:$0xff] }
  0xd3   :  { %5627 = vst [vmem:[#allocation34_spill] sm:$0xff] %v4034_v32  ;;  %v926_v14 = vsel %vm918_vm9, %v905_v54, %v908_v55  ;;  %v1064_v9 = vshrl.u32 %v5616_v63, %v1055_v51  ;;  %v928_v27 = vsel %vm920_vm10, %v911_v22, %v927_v4  ;;  %v4069_v23 = vsel %vm919_vm11, %v930_v20, %v932_v21 }
  0xd4   :  { %5628 = vst [vmem:[#allocation35_spill] sm:$0xff] %v4049_v39  ;;  %v4056_v16 = vmul.u32 %v5629_v47, %v3723_v8  ;;  %v1070_v47 = vshrl.u32 %v5611_v49, %v1055_v51  ;;  %v1197_v52 = vand.u32 2139095040, %v4034_v32  ;;  %v4073_v19 = vshrl.u32 %v1052_v36, 5 }
  0xd5   :  { %v1058_v58 = vshrl.u32 %v5618_v15, %v1055_v51  ;;  %v1063_v61 = vshll.u32 %v5615_v6, %v1054_v5  ;;  %v4078_v39 = vmul.f32 %v3676_v17, %v126_v10  ;;  %v1061_v0 = vshrl.u32 %v5615_v6, %v1055_v51 }
  0xd6   :  { %v1067_v22 = vshrl.u32 %v5614_v57, %v1055_v51  ;;  %v1069_v4 = vshll.u32 %v5614_v57, %v1054_v5  ;;  %v1198_v20 = vshrl.u32 %v1197_v52, 23  ;;  %v4085_v21 = vsel %vm919_vm11, %v926_v14, %v928_v27 }
  0xd7   :  { %5630 = vst [vmem:[#allocation36_spill] sm:$0xff] %v4078_v39  ;;  %v1057_v1 = vshll.u32 %v5622_v38, %v1054_v5  ;;  %v1065_v42 = vor.u32 %v1064_v9, %v1063_v61  ;;  %v1060_v43 = vshll.u32 %v5618_v15, %v1054_v5  ;;  %v1066_v17 = vshll.u32 %v5616_v63, %v1054_v5 }
  0xd8   :  { %5631 = vst [vmem:[#allocation37_spill] sm:$0xff] %v4085_v21  ;;  %v1071_v10 = vor.u32 %v1070_v47, %v1069_v4  ;;  %v3394_v53 = vadd.s32 4294967169, %v1198_v20  ;;  %v922_v44 = vsel %vm918_vm9, %v902_v48, %v905_v54  ;;  %v924_v52 = vsel %vm920_vm10, %v908_v55, %v923_v40  ;;  %v2972_v48 = vld [vmem:[%s5492_s8 + $0x8] sm:$0xff] }
  0xd9   :  { %v1059_v45 = vor.u32 %v1058_v58, %v1057_v1  ;;  %v1351_v14 = vand.u32 2139095040, %v4078_v39  ;;  %v1062_v27 = vor.u32 %v1061_v0, %v1060_v43  ;;  %v1068_v36 = vor.u32 %v1067_v22, %v1066_v17  ;;  %v2973_v58 = vld [vmem:[%s5492_s8 + $0x10] sm:$0xff]  ;;  %v2884_v17 = vld [vmem:[%s5491_s7 + $0x18] sm:$0xff] }
  0xda   :  { %vm1075_vm12 = vcmp.lt.s32.totalorder %v4073_v19, 4  ;;  %v1204_v61 = vadd.s32 1, %v3394_v53  ;;  %v5558_v9 = vand.u32 65535, %v4069_v23  ;;  %v5632_v5 = vshrl.u32 %v4069_v23, 16  ;;  %v2886_v53 = vld [vmem:[%s5491_s7 + $0x28] sm:$0xff]  ;;  %3016 = vmatpush.msrb.mxu1 %v2973_v58 }
  0xdb   :  { %v960_v54 = vshrl.u32 %v4085_v21, 16  ;;  %v1077_v55 = vsel %vm1075_vm12, %v1065_v42, 2102212464  ;;  %v4108_v1 = vsel %vm919_vm11, %v922_v44, %v924_v52  ;;  %v1056_v43 = vshrl.u32 %v5622_v38, %v1055_v51  ;;  %2924 = vmatpush.msrb.mxu0 %v2886_v53  ;;  %v1504_v52 = vld [vmem:[%s5494_s5 + $0x10] sm:$0xff] }
  0xdc   :  { %v4101_v47 = vmul.u32 %v5632_v5, %v4026_v25  ;;  %5633 = vst [vmem:[#allocation38_spill] sm:$0xff] %v4108_v1  ;;  %v1085_v0 = vsel %vm1075_vm12, %v1071_v10, 1326507024  ;;  %vm1205_vm13 = vcmp.gt.s32.totalorder %v1204_v61, 0  ;;  %vm1072_vm14 = vcmp.lt.s32.totalorder %v4073_v19, 1  ;;  %3017 = vmatpush.msrb.mxu1 %v2972_v48  ;;  %v2883_v5 = vld [vmem:[%s5491_s7 + $0x10] sm:$0xff] }
  0xdd   :  { %vm1074_vm15 = vcmp.lt.s32.totalorder %v4073_v19, 3  ;;  %v1206_v44 = vsel %vm1205_vm13, %v1204_v61, 0  ;;  %v1352_v51 = vshrl.u32 %v1351_v14, 23  ;;  %v1076_v40 = vsel %vm1072_vm14, %v1056_v43, %v1059_v45  ;;  %2925 = vmatpush.msrb.mxu0 %v2885_v37  ;;  %v1505_v43 = vld [vmem:[%s5494_s5 + $0x18] sm:$0xff] }
  0xde   :  { %v1078_v22 = vsel %vm1074_vm15, %v1062_v27, %v1077_v55  ;;  %v1081_v4 = vsel %vm1075_vm12, %v1068_v36, 920167782  ;;  %v4133_v20 = vand.u32 31, %v1206_v44  ;;  %v1084_v14 = vsel %vm1072_vm14, %v1062_v27, %v1065_v42  ;;  %v2749_v55 = vld [vmem:[%s5493_s6 + $0x18] sm:$0xff]  ;;  %2852 = vmatpush.msra.mxu3 %v1505_v43 }
  0xdf   :  { %v1086_v61 = vsel %vm1074_vm15, %v1068_v36, %v1085_v0  ;;  %v5634_v53 = vshll.u32 %v3768_v62, 16  ;;  %v4164_v36 = vmul.u32 %v5558_v9, %v4026_v25  ;;  %vm1073_vm2 = vcmp.lt.s32.totalorder %v4073_v19, 2  ;;  %2787 = vmatpush.msra.mxu2 %v2749_v55  ;;  %2926 = vmatpush.msrb.mxu0 %v2884_v17  ;;  %v2747_v9 = vld [vmem:[%s5493_s6 + $0x8] sm:$0xff] }
  0xe0   :  { %v5637_v0 = vor.u32 8388608, %v4010_v46  ;;  %v4172_v48 = vsub.s32 32, %v4133_v20  ;;  %v4185_v46 = vsel %vm1073_vm2, %v1076_v40, %v1078_v22  ;;  %v1080_v55 = vsel %vm1072_vm14, %v1059_v45, %v1062_v27  ;;  %v1503_v27 = vld [vmem:[%s5494_s5 + $0x8] sm:$0xff]  ;;  %2853 = vmatpush.msra.mxu3 %v1504_v52  ;;  %v1502_v52 = vld [vmem:[%s5494_s5] sm:$0xff] }
  0xe1   :  { %vm4157_vm1 = vc.u32 %v3795_v29, %v5634_v53  ;;  %v2971_v29 = vld [vmem:[%s5492_s8] sm:$0xff]  ;;  %v2748_v53 = vld [vmem:[%s5493_s6 + $0x10] sm:$0xff]  ;;  %5639 = vst [vmem:[#allocation40_spill] sm:$0xff] %v4185_v46  ;;  %v1082_v43 = vsel %vm1074_vm15, %v1065_v42, %v1081_v4  ;;  %v5640_v10 = vshrl.u32 %v4069_v23, 16  ;;  %v4201_v22 = vmul.u32 %v960_v54, %v4026_v25  ;;  %v2882_v42 = vld [vmem:[%s5491_s7 + $0x8] sm:$0xff]  ;;  %2927 = vmatpush.msrb.mxu0 %v2883_v5 }
  0xe2   :  { %v4169_v37 = vshll.u32 %v5637_v0, 8  ;;  %v3397_v0 = vadd.s32 4294967169, %v1352_v51  ;;  %3018 = vmatpush.msrb.mxu1 %v2971_v29  ;;  %v4205_v45 = vsel %vm1073_vm2, %v1084_v14, %v1086_v61  ;;  %2788 = vmatpush.msra.mxu2 %v2748_v53  ;;  %v5642_v51 = vshll.u32 %v4101_v47, 16  ;;  %v2746_v61 = vld [vmem:[%s5493_s6] sm:$0xff] }
  0xe3   :  { %v4197_v1 = vmul.u32 %v5640_v10, %v4031_v12  ;;  %5641 = vst [vmem:[#allocation41_spill] sm:$0xff] %v4201_v22  ;;  %v4219_v17 = vmul.u32 %v960_v54, %v4031_v12  ;;  %v1224_v14 = vshrl.u32 %v5611_v49, %v4172_v48  ;;  %v4229_v29 = vsel %vm1073_vm2, %v1080_v55, %v1082_v43 }
  0xe4   :  { %5638 = vst [vmem:[#allocation39_spill] sm:$0xff] %v4169_v37  ;;  %v4216_v4 = vadd.s32 %v5642_v51, %v4164_v36  ;;  %v4232_v53 = vand.u32 65535, %v4169_v37  ;;  %v4235_v54 = vshrl.u32 %v4169_v37, 16  ;;  %2789 = vmatpush.msra.mxu2 %v2747_v9  ;;  %v1223_v19 = vshll.u32 %v5614_v57, %v4133_v20  ;;  %2928 = vmatpush.msrb.mxu0 %v2882_v42 }
  0xe5   :  { %5643 = vst [vmem:[#allocation42_spill] sm:$0xff] %v4219_v17  ;;  %v1358_v43 = vadd.s32 1, %v3397_v0  ;;  %2854 = vmatpush.msra.mxu3 %v1503_v27  ;;  %v4246_v40 = vshrl.u32 %v1206_v44, 5  ;;  %v1215_v51 = vshrl.u32 %v5615_v6, %v4172_v48  ;;  %v1218_v9 = vshrl.u32 %v5616_v63, %v4172_v48 }
  0xe6   :  { %5644 = vst [vmem:[#allocation43_spill] sm:$0xff] %v4229_v29  ;;  %v1221_v10 = vshrl.u32 %v5614_v57, %v4172_v48  ;;  %2790 = vmatpush.msra.mxu2 %v2746_v61  ;;  %v1092_v5 = vshrl.u32 %v4205_v45, 16  ;;  %v5646_v0 = vand.u32 2147483647, %v4034_v32  ;;  %v1225_v27 = vor.u32 %v1224_v14, %v1223_v19 }
  0xe7   :  { %5645 = vst [vmem:[#allocation44_spill] sm:$0xff] %v4232_v53  ;;  %2855 = vmatpush.msra.mxu3 %v1502_v52  ;;  %v1214_v44 = vshll.u32 %v5618_v15, %v4133_v20  ;;  %v1217_v55 = vshll.u32 %v5615_v6, %v4133_v20  ;;  %v1220_v37 = vshll.u32 %v5616_v63, %v4133_v20  ;;  %v5647_v24 = vand.u32 2147483647, %v4078_v39 }
  0xe8   :  { %v1201_v42 = vand.u32 8388607, %v5646_v0  ;;  %v1212_v61 = vshrl.u32 %v5618_v15, %v4172_v48  ;;  %vm1359_vm3 = vcmp.gt.s32.totalorder %v1358_v43, 0  ;;  %v329_v0 = vshll.u32 %v4056_v16, 16 }
  0xe9   :  { %v1355_v46 = vand.u32 8388607, %v5647_v24  ;;  %v1216_v14 = vor.u32 %v1215_v51, %v1214_v44  ;;  %v1219_v52 = vor.u32 %v1218_v9, %v1217_v55  ;;  %v1222_v19 = vor.u32 %v1221_v10, %v1220_v37 }
  0xea   :  { %vm1229_vm4 = vcmp.lt.s32.totalorder %v4246_v40, 4  ;;  %v4271_v32 = vmul.u32 %v1092_v5, %v4232_v53  ;;  %v1202_v17 = vor.u32 8388608, %v1201_v42  ;;  %v5570_v21 = vmov 0  }
  0xeb   :  { %v1239_v22 = vsel %vm1229_vm4, %v1225_v27, 1326507024  ;;  %v332_v24 = vsel %vm4157_vm1, 1, %v5570_v21  ;;  %v5648_v39 = vand.u32 65535, %v4205_v45  ;;  %v1114_v37 = vshrl.u32 %v4229_v29, 16 }
  0xec   :  { %v1211_v10 = vshll.u32 %v5622_v38, %v4133_v20  ;;  %vm335_vm0 = vc.u32 %v3812_v41, %v329_v0  ;;  %vm1226_vm5 = vcmp.lt.s32.totalorder %v4246_v40, 1  ;;  %vm1228_vm6 = vcmp.lt.s32.totalorder %v4246_v40, 3 }
  0xed   :  { %v4281_v51 = vmul.u32 %v5648_v39, %v4232_v53  ;;  %v1356_v55 = vor.u32 8388608, %v1355_v46  ;;  %v1360_v58 = vsel %vm1359_vm3, %v1358_v43, 0  ;;  %v1238_v42 = vsel %vm1226_vm5, %v1216_v14, %v1219_v52 }
  0xee   :  { %v1213_v9 = vor.u32 %v1212_v61, %v1211_v10  ;;  %v1240_v39 = vsel %vm1228_vm6, %v1222_v19, %v1239_v22  ;;  %v334_v27 = vadd.s32 %v332_v24, %v3800_v33  ;;  %v1231_v41 = vsel %vm1229_vm4, %v1219_v52, 2102212464 }
  0xef   :  { %v4298_v44 = vshll.u32 %v1202_v17, 8  ;;  %v336_v46 = vsel %vm335_vm0, 1, %v5570_v21  ;;  %v4302_v43 = vmul.u32 %v1092_v5, %v4235_v54  ;;  %v1210_v61 = vshrl.u32 %v5622_v38, %v4172_v48 }
  0xf0   :  { %vm1227_vm7 = vcmp.lt.s32.totalorder %v4246_v40, 2  ;;  %v1362_v22 = vand.u32 31, %v1360_v58  ;;  %v4308_v33 = vmul.u32 %v1114_v37, %v4232_v53  ;;  %v4311_v0 = vmul.u32 %v1114_v37, %v4235_v54 }
  0xf1   :  { %5649 = vst [vmem:[#allocation45_spill] sm:$0xff] %v4298_v44  ;;  %v1235_v17 = vsel %vm1229_vm4, %v1222_v19, 920167782  ;;  %v4317_v24 = vsel %vm1227_vm7, %v1238_v42, %v1240_v39  ;;  %v1230_v5 = vsel %vm1226_vm5, %v1210_v61, %v1213_v9  ;;  %v1232_v48 = vsel %vm1228_vm6, %v1216_v14, %v1231_v41 }
  0xf2   :  { %5650 = vst [vmem:[#allocation46_spill] sm:$0xff] %v4302_v43  ;;  %v4323_v10 = vshll.u32 %v1356_v55, 8  ;;  %v338_v21 = vadd.s32 %v336_v46, %v334_v27  ;;  %v5654_v20 = vshll.u32 %v3842_v13, 16  ;;  %v5657_v19 = vshll.u32 %v4271_v32, 16 }
  0xf3   :  { %5651 = vst [vmem:[#allocation47_spill] sm:$0xff] %v4308_v33  ;;  %v4338_v39 = vand.u32 65535, %v4298_v44  ;;  %v330_v41 = vshrl.u32 %v4056_v16, 16  ;;  %v5659_v55 = vand.u32 65535, %v3764_v56  ;;  %v4349_v61 = vsub.s32 32, %v1362_v22 }
  0xf4   :  { %5652 = vst [vmem:[#allocation48_spill] sm:$0xff] %v4311_v0  ;;  %vm4328_vm8 = vc.u32 %v3831_v2, %v5654_v20  ;;  %v4335_v42 = vadd.s32 %v5657_v19, %v4281_v51  ;;  %v1234_v2 = vsel %vm1226_vm5, %v1213_v9, %v1216_v14  ;;  %v1236_v20 = vsel %vm1228_vm6, %v1219_v52, %v1235_v17  ;;  %v4351_v19 = vpop.f32.mrf.mxu1 }
  0xf5   :  { %5653 = vst [vmem:[#allocation49_spill] sm:$0xff] %v4323_v10  ;;  %v347_v27 = vmul.u32 %v5659_v55, %v3723_v8  ;;  %v4355_v0 = vsel %vm1227_vm7, %v1230_v5, %v1232_v48  ;;  %v4358_v16 = vshrl.u32 %v4298_v44, 16  ;;  %v5661_v8 = vmov %v5659_v55 }
  0xf6   :  { %5658 = vst [vmem:[#allocation50_spill] sm:$0xff] %v4335_v42  ;;  %v345_v14 = vmul.u32 %v5661_v8, %v3720_v7  ;;  %v349_v9 = vshll.u32 %v3803_v34, 16  ;;  %v4365_v52 = vand.u32 65535, %v4323_v10  ;;  %v4368_v17 = vshrl.u32 %v4323_v10, 16 }
  0xf7   :  { %5660 = vst [vmem:[#allocation51_spill] sm:$0xff] %v4355_v0  ;;  %v5664_v55 = vshrl.u32 %v3768_v62, 16  ;;  %v350_v5 = vshrl.u32 %v3803_v34, 16  ;;  %v4375_v48 = vsel %vm1227_vm7, %v1234_v2, %v1236_v20  ;;  %v4377_v53 = vshrl.u32 %v1360_v58, 5 }
  0xf8   :  { %5662 = vst [vmem:[#allocation52_spill] sm:$0xff] %v4365_v52  ;;  %v1365_v7 = vshll.u32 %v5622_v38, %v1362_v22  ;;  %v351_v56 = vshll.u32 %v347_v27, 16  ;;  %v5665_v8 = vshrl.u32 %v4317_v24, 16  ;;  %v1366_v34 = vshrl.u32 %v5618_v15, %v4349_v61 }
  0xf9   :  { %5663 = vst [vmem:[#allocation53_spill] sm:$0xff] %v4368_v17  ;;  %v339_v46 = vadd.s32 %v338_v21, %v5664_v55  ;;  %v1369_v21 = vshrl.u32 %v5615_v6, %v4349_v61  ;;  %v4394_v58 = vshrl.u32 %v5622_v38, %v4349_v61  ;;  %vm353_vm9 = vc.u32 %v345_v14, %v349_v9 }
  0xfa   :  { %v4383_v52 = vmul.u32 %v5665_v8, %v4338_v39  ;;  %v355_v2 = vadd.s32 %v349_v9, %v345_v14  ;;  %v1368_v55 = vshll.u32 %v5618_v15, %v1362_v22  ;;  %v1372_v8 = vshrl.u32 %v5616_v63, %v4349_v61 }
  0xfb   :  { %5666 = vst [vmem:[#allocation54_spill] sm:$0xff] %v4394_v58  ;;  %v5667_v62 = vmov 0   ;;  %v1371_v44 = vshll.u32 %v5615_v6, %v1362_v22  ;;  %v5668_v38 = vshll.u32 %v3924_v11, 16  ;;  %v4412_v9 = vor.u32 %v1366_v34, %v1365_v7 }
  0xfc   :  { %v354_v10 = vsel %vm353_vm9, 1, %v5667_v62  ;;  %vm357_vm10 = vc.u32 %v355_v2, %v351_v56  ;;  %v4414_v20 = vor.u32 %v1369_v21, %v1368_v55  ;;  %v4418_v6 = vshll.u32 %v5616_v63, %v1362_v22  ;;  %v197_v55 = vpop.f32.mrf.mxu1 }
  0xfd   :  { %v356_v40 = vadd.s32 %v354_v10, %v3806_v35  ;;  %vm4407_vm11 = vc.u32 %v3947_v3, %v5668_v38  ;;  %5671 = vst [vmem:[#allocation55_spill] sm:$0xff] %v4412_v9  ;;  %v358_v0 = vsel %vm357_vm10, 1, %v5667_v62  ;;  %v4422_v35 = vshrl.u32 %v5614_v57, %v4349_v61  ;;  %v4427_v3 = vld [vmem:[%s5490_s11] ss:$0 sm:$0xff] }
  0xfe   :  { %5672 = vst [vmem:[#allocation56_spill] sm:$0xff] %v4414_v20  ;;  %v4429_v10 = vadd.s32 %v339_v46, %v330_v41  ;;  %v4431_v34 = vor.u32 %v1372_v8, %v1371_v44  ;;  %v4434_v21 = vshll.u32 %v5614_v57, %v1362_v22  ;;  %v5674_v63 = vand.u32 65535, %v3781_v18 }
  0xff   :  { %v360_v7 = vadd.s32 %v358_v0, %v356_v40  ;;  %v486_v15 = vsel %vm4328_vm8, 1, %v5667_v62  ;;  %v352_v58 = vshrl.u32 %v347_v27, 16  ;;  %v4442_v17 = vadd.s32 %v355_v2, %v351_v56  ;;  %v5677_v2 = vld [vmem:[#allocation15_spill] sm:$0xff] }
 0x100   :  { %5673 = vst [vmem:[#allocation57_spill] sm:$0xff] %v4431_v34  ;;  %v479_v38 = vmul.u32 %v5674_v63, %v3790_v28  ;;  %v5675_v44 = vand.u32 65535, %v3797_v30  ;;  %v488_v57 = vadd.s32 %v486_v15, %v3848_v31  ;;  %v503_v40 = vshll.u32 %v3851_v60, 16 }
 0x101   :  { %v361_v41 = vadd.s32 %v360_v7, %v350_v5  ;;  %v222_v37 = vsub.f32 %v4351_v19, %v4427_v3  ;;  %v223_v27 = vsub.f32 %v197_v55, %v4427_v3  ;;  %vm365_vm12 = vc.u32 %v4429_v10, %v4442_v17  ;;  %v5679_v7 = vld [vmem:[#allocation12_spill] sm:$0xff] }
 0x102   :  { %v501_v0 = vmul.u32 %v5675_v44, %v3790_v28  ;;  %v483_v46 = vshll.u32 %v479_v38, 16  ;;  %v5676_v22 = vmov %v5675_v44  ;;  %v5678_v8 = vand.u32 65535, %v5677_v2 }
 0x103   :  { %v499_v18 = vmul.u32 %v5676_v22, %v3787_v26  ;;  %v362_v56 = vadd.s32 %v361_v41, %v352_v58  ;;  %v482_v15 = vshrl.u32 %v3842_v13, 16  ;;  %v5681_v22 = vld [vmem:[#allocation7_spill] sm:$0xff]  ;;  %v504_v42 = vshrl.u32 %v3851_v60, 16 }
 0x104   :  { %vm489_vm13 = vc.u32 %v3937_v59, %v483_v46  ;;  %v505_v28 = vshll.u32 %v501_v0, 16  ;;  %v633_v19 = vmul.u32 %v5678_v8, %v3866_v50  ;;  %v484_v59 = vshrl.u32 %v479_v38, 16  ;;  %v5680_v46 = vld [vmem:[#allocation5_spill] sm:$0xff] }
 0x105   :  { %vm507_vm14 = vc.u32 %v499_v18, %v503_v40  ;;  %v509_v31 = vadd.s32 %v503_v40, %v499_v18  ;;  %v366_v5 = vadd.s32 1, %v362_v56  ;;  %v490_v30 = vsel %vm489_vm13, 1, %v5667_v62  ;;  %v5684_v38 = vld [vmem:[#allocation17_spill] sm:$0xff] }
 0x106   :  { %v508_v26 = vsel %vm507_vm14, 1, %v5667_v62  ;;  %v492_v58 = vadd.s32 %v490_v30, %v488_v57  ;;  %v637_v44 = vshll.u32 %v633_v19, 16  ;;  %v5682_v18 = vmul.u32 %v5680_v46, %v5681_v22  ;;  %v5683_v57 = vld [vmem:[#allocation26_spill] sm:$0xff] }
 0x107   :  { %v510_v55 = vadd.s32 %v508_v26, %v5679_v7  ;;  %vm511_vm15 = vc.u32 %v509_v31, %v505_v28  ;;  %v367_v63 = vsel %vm365_vm12, %v366_v5, %v362_v56  ;;  %v506_v8 = vshrl.u32 %v501_v0, 16  ;;  %v5687_v0 = vld [vmem:[#allocation14_spill] sm:$0xff] }
 0x108   :  { %v512_v41 = vsel %vm511_vm15, 1, %v5667_v62  ;;  %v368_v40 = vadd.s32 %v367_v63, %v5682_v18  ;;  %v493_v43 = vadd.s32 %v492_v58, %v482_v15  ;;  %v640_v13 = vsel %vm4407_vm11, 1, %v5667_v62  ;;  %v5686_v63 = vld [vmem:[#allocation20_spill] sm:$0xff] }
 0x109   :  { %v514_v2 = vadd.s32 %v512_v41, %v510_v55  ;;  %vm643_vm1 = vc.u32 %v5683_v57, %v637_v44  ;;  %v5685_v56 = vand.u32 65535, %v5684_v38  ;;  %v642_v15 = vadd.s32 %v640_v13, %v5686_v63  ;;  %v5689_v41 = vld [vmem:[#allocation22_spill] sm:$0xff] }
 0x10a   :  { %v369_v30 = vadd.s32 536870912, %v368_v40  ;;  %v4477_v26 = vadd.s32 %v493_v43, %v484_v59  ;;  %v4480_v58 = vadd.s32 %v509_v31, %v505_v28  ;;  %v644_v60 = vsel %vm643_vm1, 1, %v5667_v62  ;;  %v5690_v13 = vld [vmem:[#allocation2_spill] sm:$0xff] }
 0x10b   :  { %v655_v5 = vmul.u32 %v5685_v56, %v3866_v50  ;;  %v515_v7 = vadd.s32 %v514_v2, %v504_v42  ;;  %v5688_v14 = vmov %v5685_v56  ;;  %v657_v44 = vshll.u32 %v5689_v41, 16  ;;  %v5691_v56 = vld [vmem:[#allocation23_spill] sm:$0xff] }
 0x10c   :  { %v653_v55 = vmul.u32 %v5688_v14, %v5687_v0  ;;  %v370_v46 = vshrl.u32 %v369_v30, 30  ;;  %v636_v50 = vshrl.u32 %v3924_v11, 16  ;;  %vm519_vm2 = vc.u32 %v4477_v26, %v4480_v58 }
 0x10d   :  { %v516_v22 = vadd.s32 %v515_v7, %v506_v8  ;;  %v659_v18 = vshll.u32 %v655_v5, 16  ;;  %v646_v43 = vadd.s32 %v644_v60, %v642_v15  ;;  %v230_v28 = vmul.f32 0.8, %v222_v37  ;;  %v5692_v15 = vld [vmem:[#allocation8_spill] sm:$0xff]  ;;  %v5693_v60 = vld [vmem:[#allocation9_spill] sm:$0xff] }
 0x10e   :  { %vm661_vm3 = vc.u32 %v653_v55, %v657_v44  ;;  %v663_v42 = vadd.s32 %v657_v44, %v653_v55  ;;  %v371_v31 = vshll.u32 %v370_v46, 30  ;;  %vm272_vm4 = vcmp.lt.s32.totalorder %v5690_v13, 0 }
 0x10f   :  { %v520_v59 = vadd.s32 1, %v516_v22  ;;  %v662_v2 = vsel %vm661_vm3, 1, %v5667_v62  ;;  %v231_v57 = vmul.f32 0.8, %v223_v27  ;;  %v647_v38 = vadd.s32 %v646_v43, %v636_v50 }
 0x110   :  { %v664_v8 = vadd.s32 %v662_v2, %v5691_v56  ;;  %vm665_vm0 = vc.u32 %v663_v42, %v659_v18  ;;  %v4493_v11 = vsub.s32 %v368_v40, %v371_v31  ;;  %v638_v7 = vshrl.u32 %v633_v19, 16 }
 0x111   :  { %v521_v30 = vsel %vm519_vm2, %v520_v59, %v516_v22  ;;  %v666_v63 = vsel %vm665_vm0, 1, %v5667_v62  ;;  %v1378_v37 = vshrl.u32 %v5611_v49, %v4349_v61  ;;  %v5694_v0 = vmul.u32 %v5692_v15, %v5693_v60 }
 0x112   :  { %v658_v55 = vshrl.u32 %v5689_v41, 16  ;;  %v668_v27 = vadd.s32 %v666_v63, %v664_v8  ;;  %v238_v44 = vmul.f32 %v230_v28, %v230_v28  ;;  %v5695_v50 = vand.u32 2147483647, %v5690_v13 }
 0x113   :  { %v522_v14 = vadd.s32 %v521_v30, %v5694_v0  ;;  %vm373_vm6 = vcmp.lt.s32.totalorder %v4493_v11, 0  ;;  %v374_v19 = vsub.s32 0, %v4493_v11  ;;  %v4510_v22 = vadd.s32 %v647_v38, %v638_v7 }
 0x114   :  { %vm4504_vm5 = vcmp.le.f32.partialorder %v5695_v50, 0.7853982  ;;  %v4514_v49 = vor.u32 %v4422_v35, %v4418_v6  ;;  %v660_v41 = vshrl.u32 %v655_v5, 16  ;;  %v669_v43 = vadd.s32 %v668_v27, %v658_v55  ;;  %v5702_v50 = vld [vmem:[#allocation16_spill] sm:$0xff] }
 0x115   :  { %v523_v61 = vadd.s32 536870912, %v522_v14  ;;  %v239_v28 = vmul.f32 %v231_v57, %v231_v57  ;;  %v375_v31 = vsel %vm373_vm6, %v374_v19, %v4493_v11  ;;  %v394_v59 = vsub.s32 4, %v370_v46  ;;  %v5698_v57 = vld [vmem:[#allocation3_spill] sm:$0xff] }
 0x116   :  { %v667_v2 = vadd.s32 %v663_v42, %v659_v18  ;;  %vm5584_vm7 = vcmp.lt.s32.totalorder %v4377_v53, 1  ;;  %v376_v56 = vclz %v375_v31  ;;  %v670_v30 = vadd.s32 %v669_v43, %v660_v41  ;;  %v5706_v43 = vld [vmem:[#allocation30_spill] sm:$0xff] }
 0x117   :  { %v524_v8 = vshrl.u32 %v523_v61, 30  ;;  %v1379_v38 = vor.u32 %v1378_v37, %v4434_v21  ;;  %vm1382_vm8 = vcmp.lt.s32.totalorder %v4377_v53, 3  ;;  %v246_v7 = vsub.f32 0.0, %v238_v44  ;;  %v5701_v44 = vld [vmem:[#allocation11_spill] sm:$0xff] }
 0x118   :  { %vm673_vm9 = vc.u32 %v4510_v22, %v667_v2  ;;  %vm1383_vm10 = vcmp.lt.s32.totalorder %v4377_v53, 4  ;;  %v3377_v6 = vadd.s32 4294967294, %v376_v56  ;;  %v674_v5 = vadd.s32 1, %v670_v30 }
 0x119   :  { %v525_v35 = vshll.u32 %v524_v8, 30  ;;  %vm426_vm11 = vcmp.lt.s32.totalorder %v5698_v57, 0  ;;  %v4527_v18 = vsel %vm5584_vm7, %v4412_v9, %v4414_v20  ;;  %v1389_v21 = vsel %vm1383_vm10, %v4514_v49, 920167782 }
 0x11a   :  { %5699 = vst [vmem:[#allocation15_spill] sm:$0xff] %v4527_v18  ;;  %v247_v42 = vsub.f32 0.0, %v239_v28  ;;  %v395_v63 = vsel %vm272_vm4, %v394_v59, %v370_v46  ;;  %v4538_v37 = vsel %vm5584_vm7, %v4414_v20, %v4431_v34  ;;  %vm3378_vm12 = vcmp.lt.s32.totalorder %v3377_v6, 0  ;;  %v5704_v46 = vld [vmem:[#allocation28_spill] sm:$0xff] }
 0x11b   :  { %5700 = vst [vmem:[#allocation12_spill] sm:$0xff] %v4538_v37  ;;  %v4540_v15 = vsub.s32 %v522_v14, %v525_v35  ;;  %v675_v60 = vsel %vm673_vm9, %v674_v5, %v670_v30  ;;  %v254_v0 = vmul.f32 1.442695, %v246_v7  ;;  %v364_v55 = vadd.s32 %v4442_v17, %v4429_v10  ;;  %v5720_v20 = vld [vmem:[#allocation4_spill] sm:$0xff] }
 0x11c   :  { %v379_v27 = vsel %vm3378_vm12, 0, %v3377_v6  ;;  %v5703_v19 = vmul.u32 %v5701_v44, %v5702_v50  ;;  %v5705_v41 = vshll.u32 %v5704_v46, 16  ;;  %v397_v59 = vsel %vm4504_vm5, 0, %v395_v63 }
 0x11d   :  { %v380_v31 = vsub.s32 32, %v379_v27  ;;  %v384_v14 = vsub.s32 4294967266, %v379_v27  ;;  %vm527_vm14 = vcmp.lt.s32.totalorder %v4540_v15, 0  ;;  %v4560_v17 = vsel %vm1382_vm8, %v4431_v34, %v1389_v21  ;;  %v5721_v34 = vld [vmem:[#allocation31_spill] sm:$0xff] }
 0x11e   :  { %v676_v61 = vadd.s32 %v675_v60, %v5703_v19  ;;  %vm4550_vm13 = vc.u32 %v5706_v43, %v5705_v41  ;;  %5709 = vst [vmem:[#allocation5_spill] sm:$0xff] %v4560_v17  ;;  %v4564_v10 = vsel %vm1383_vm10, %v1379_v38, 1326507024  ;;  %v256_v56 = vmul.f32 1.442695, %v247_v42  ;;  %v5713_v43 = vld [vmem:[#allocation27_spill] sm:$0xff] }
 0x11f   :  { %v528_v30 = vsub.s32 0, %v4540_v15  ;;  %v381_v7 = vshll.u32 %v4493_v11, %v379_v27  ;;  %v382_v6 = vshrl.u32 %v364_v55, %v380_v31  ;;  %v385_v35 = vadd.s32 127, %v384_v14  ;;  %v2881_v11 = vld [vmem:[%s5491_s7] sm:$0xff]  ;;  %v200_v55 = vpop.f32.mrf.mxu1  ;;  %v5714_v31 = vld [vmem:[#allocation19_spill] sm:$0xff] }
 0x120   :  { %v548_v5 = vsub.s32 4, %v524_v8  ;;  %v1650_v63 = vadd.s32 3, %v397_v59  ;;  %v5710_v60 = vand.u32 2147483647, %v5698_v57  ;;  %v677_v50 = vadd.s32 536870912, %v676_v61  ;;  %2929 = vmatpush.msrb.mxu0 %v2881_v11 }
 0x121   :  { %v529_v21 = vsel %vm527_vm14, %v528_v30, %v4540_v15  ;;  %3469 = vpow2.f32 %v254_v0  ;;  %v383_v38 = vor.u32 %v382_v6, %v381_v7  ;;  %v386_v42 = vshll.u32 %v385_v35, 23 }
 0x122   :  { %vm4570_vm15 = vcmp.le.f32.partialorder %v5710_v60, 0.7853982  ;;  %v530_v19 = vclz %v529_v21  ;;  %3471 = vpow2.f32 %v256_v56  ;;  %v4575_v41 = vand.u32 3, %v397_v59 }
 0x123   :  { %v518_v27 = vadd.s32 %v4480_v58, %v4477_v26  ;;  %v5715_v14 = vand.u32 65535, %v5714_v31  ;;  %v387_v0 = vor.u32 4788187, %v386_v42  ;;  %v224_v7 = vsub.f32 %v200_v55, %v4427_v3  ;;  %v5717_v55 = vld [vmem:[#allocation24_spill] sm:$0xff] }
 0x124   :  { %v3380_v56 = vadd.s32 4294967294, %v530_v19  ;;  %v549_v59 = vsel %vm426_vm11, %v548_v5, %v524_v8  ;;  %v4590_v6 = vand.u32 3, %v1650_v63  ;;  %v4593_v35 = vadd.s32 %v667_v2, %v4510_v22 }
 0x125   :  { %v4585_v30 = vmul.u32 %v5715_v14, %v5713_v43  ;;  %v4595_v60 = vshrl.u32 %v677_v50, 30  ;;  %v388_v58 = vand.u32 2147483647, %v387_v0  ;;  %v390_v21 = vcvt.s32.f32 %v383_v38  ;;  %v5716_v50 = vld [vmem:[#allocation25_spill] sm:$0xff] }
 0x126   :  { %v232_v31 = vmul.f32 0.8, %v224_v7  ;;  %vm3381_vm1 = vcmp.lt.s32.totalorder %v3380_v56, 0  ;;  %v551_v19 = vsel %vm4570_vm15, 0, %v549_v59  ;;  %v5718_v14 = vand.u32 65535, %v5717_v55  ;;  %v5719_v59 = vld [vmem:[#allocation35_spill] sm:$0xff] }
 0x127   :  { %v533_v42 = vsel %vm3381_vm1, 0, %v3380_v56  ;;  %v679_v11 = vshll.u32 %v4595_v60, 30  ;;  %v791_v8 = vshll.u32 %v4585_v30, 16  ;;  %v3470_v5 = vpop.eup %3469  ;;  %v391_v63 = vmul.f32 %v390_v21, %v388_v58 }
 0x128   :  { %v240_v22 = vmul.f32 %v232_v31, %v232_v31  ;;  %v534_v2 = vsub.s32 32, %v533_v42  ;;  %v4605_v26 = vmul.u32 %v5718_v14, %v5716_v50  ;;  %v4607_v38 = vpop.eup %3471  ;;  %v538_v0 = vsub.s32 4294967266, %v533_v42 }
 0x129   :  { %v4609_v7 = vsub.s32 %v676_v61, %v679_v11  ;;  %v794_v56 = vsel %vm4550_vm13, 1, %v5667_v62  ;;  %vm797_vm2 = vc.u32 %v5719_v59, %v791_v8  ;;  %vm580_vm3 = vcmp.lt.s32.totalorder %v5720_v20, 0 }
 0x12a   :  { %v392_v58 = vxor.u32 2147483648, %v391_v63  ;;  %v536_v21 = vshrl.u32 %v518_v27, %v534_v2  ;;  %v1805_v31 = vadd.s32 3, %v551_v19  ;;  %v4616_v9 = vand.u32 3, %v551_v19 }
 0x12b   :  { %v535_v50 = vshll.u32 %v4540_v15, %v533_v42  ;;  %v539_v14 = vadd.s32 127, %v538_v0  ;;  %vm681_vm0 = vcmp.lt.s32.totalorder %v4609_v7, 0  ;;  %v682_v61 = vsub.s32 0, %v4609_v7 }
 0x12c   :  { %v393_v28 = vsel %vm272_vm4, %v392_v58, %v391_v63  ;;  %v248_v11 = vsub.f32 0.0, %v240_v22  ;;  %v796_v8 = vadd.s32 %v794_v56, %v5721_v34  ;;  %v798_v59 = vsel %vm797_vm2, 1, %v5667_v62  ;;  %v2963_v63 = vld [vmem:[%s5495_s2] sm:$0xff]  ;;  %v203_v34 = vpop.f32.mrf.mxu1 }
 0x12d   :  { %v4628_v27 = vsel %vm4504_vm5, %v5690_v13, %v393_v28  ;;  %v537_v19 = vor.u32 %v536_v21, %v535_v50  ;;  %v540_v15 = vshll.u32 %v539_v14, 23  ;;  %v683_v42 = vsel %vm681_vm0, %v682_v61, %v4609_v7 }
 0x12e   :  { %v398_v2 = vmul.f32 %v4628_v27, %v4628_v27  ;;  %vm2889_vm6 = vcmask 523264   ;;  %v702_v22 = vsub.s32 4, %v4595_v60  ;;  %vm2975_vm4 = vcmask 228352  }
 0x12f   :  { %v541_v40 = vor.u32 4788187, %v540_v15  ;;  %3440 = vmatmul.msk.f32.vlgmr.msrb.gmra.mxu0 %vm2889_vm6, %v3470_v5  ;;  %v225_v56 = vsub.f32 %v203_v34, %v4427_v3  ;;  %v684_v58 = vclz %v683_v42  ;;  %v258_v14 = vmul.f32 1.442695, %v248_v11  ;;  %3449 = vmatmul.msk.f32.vlgmr.msrb.gmra.mxu1 %vm2975_vm4, %v2963_v63 }
 0x130   :  { %v399_v21 = vmul.f32 -0.001358992, %v398_v2  ;;  %v406_v50 = vmul.f32 -0.00019511016, %v398_v2  ;;  %v5722_v61 = vand.u32 2147483647, %v5720_v20  ;;  %v800_v33 = vadd.s32 %v798_v59, %v796_v8 }
 0x131   :  { %v542_v0 = vand.u32 2147483647, %v541_v40  ;;  %v544_v15 = vcvt.s32.f32 %v537_v19  ;;  %v233_v29 = vmul.f32 0.8, %v225_v56  ;;  %v3383_v5 = vadd.s32 4294967294, %v684_v58 }
 0x132   :  { %vm4643_vm5 = vcmp.le.f32.partialorder %v5722_v61, 0.7853982  ;;  %v400_v37 = vadd.f32 0.041655596, %v399_v21  ;;  %v407_v18 = vadd.f32 0.008332121, %v406_v50  ;;  %v703_v8 = vsel %vm580_vm3, %v702_v22, %v4595_v60 }
 0x133   :  { %v4647_v34 = vand.u32 3, %v1805_v31  ;;  %v5725_v11 = vand.u32 65535, %v5717_v55  ;;  %v545_v63 = vmul.f32 %v544_v15, %v542_v0  ;;  %v241_v17 = vmul.f32 %v233_v29, %v233_v29 }
 0x134   :  { %vm3384_vm9 = vcmp.lt.s32.totalorder %v3383_v5, 0  ;;  %v401_v59 = vmul.f32 %v400_v37, %v398_v2  ;;  %v408_v19 = vmul.f32 %v407_v18, %v398_v2  ;;  %v5726_v56 = vshrl.u32 %v5704_v46, 16  ;;  %v5727_v46 = vld [vmem:[#allocation32_spill] sm:$0xff] }
 0x135   :  { %v4652_v42 = vmul.u32 %v5725_v11, %v5713_v43  ;;  %v687_v40 = vsel %vm3384_vm9, 0, %v3383_v5  ;;  %vm1656_vm12 = vcmp.eq.s32.totalorder %v4590_v6, 2  ;;  %vm419_vm13 = vcmp.eq.s32.totalorder %v4575_v41, 2 }
 0x136   :  { %v4659_v58 = vadd.s32 %v800_v33, %v5726_v56  ;;  %3473 = vpow2.f32 %v258_v14  ;;  %v546_v43 = vxor.u32 2147483648, %v545_v63  ;;  %v249_v55 = vsub.f32 0.0, %v241_v17  ;;  %v206_v56 = vpop.f32.mrf.mxu1 }
 0x137   :  { %v688_v29 = vsub.s32 32, %v687_v40  ;;  %v402_v31 = vadd.f32 -0.4999988, %v401_v59  ;;  %v409_v0 = vadd.f32 -0.16666654, %v408_v19  ;;  %v689_v21 = vshll.u32 %v4609_v7, %v687_v40  ;;  %3441 = vmatmul.msk.f32.gmra.mxu0 %vm2889_vm6, %v4607_v38 }
 0x138   :  { %v692_v60 = vsub.s32 4294967266, %v687_v40  ;;  %vm1653_vm14 = vcmp.eq.s32.totalorder %v4590_v6, 0  ;;  %vm416_vm1 = vcmp.eq.s32.totalorder %v4575_v41, 0  ;;  %v547_v33 = vsel %vm426_vm11, %v546_v43, %v545_v63  ;;  %v2964_v40 = vld [vmem:[%s5495_s2 + $0x8] sm:$0xff] }
 0x139   :  { %v260_v18 = vmul.f32 1.442695, %v249_v55  ;;  %v690_v37 = vshrl.u32 %v4593_v35, %v688_v29  ;;  %v811_v17 = vshll.u32 %v5727_v46, 16  ;;  %v403_v22 = vmul.f32 %v402_v31, %v398_v2  ;;  %3450 = vmatmul.msk.f32.gmra.mxu1 %vm2975_vm4, %v2964_v40 }
 0x13a   :  { %v410_v50 = vmul.f32 %v409_v0, %v398_v2  ;;  %vm1652_vm2 = vcmp.lt.s32.totalorder %v4590_v6, 2  ;;  %vm2750_vm0 = vcmask 261120   ;;  %vm415_vm9 = vcmp.lt.s32.totalorder %v4575_v41, 2 }
 0x13b   :  { %v4677_v7 = vsel %vm4570_vm15, %v5698_v57, %v547_v33  ;;  %v693_v14 = vadd.s32 127, %v692_v60  ;;  %vm413_vm11 = vweird.f32 %v5690_v13  ;;  %3475 = vpow2.f32 %v260_v18 }
 0x13c   :  { %v552_v35 = vmul.f32 %v4677_v7, %v4677_v7  ;;  %v691_v38 = vor.u32 %v690_v37, %v689_v21  ;;  %v4684_v2 = vsel %vm4643_vm5, 0, %v703_v8  ;;  %v404_v61 = vadd.f32 1.0, %v403_v22  ;;  %v3474_v44 = vpop.eup %3473 }
 0x13d   :  { %v411_v15 = vadd.f32 1.0, %v410_v50  ;;  %v694_v5 = vshll.u32 %v693_v14, 23  ;;  %v813_v11 = vshll.u32 %v4652_v42, 16  ;;  %vm815_vm15 = vc.u32 %v4605_v26, %v811_v17 }
 0x13e   :  { %v553_v63 = vmul.f32 -0.001358992, %v552_v35  ;;  %v560_v59 = vmul.f32 -0.00019511016, %v552_v35  ;;  %v698_v19 = vcvt.s32.f32 %v691_v38  ;;  %v420_v8 = vxor.u32 2147483648, %v404_v61 }
 0x13f   :  { %v412_v43 = vmul.f32 %v411_v15, %v4628_v27  ;;  %v695_v55 = vor.u32 4788187, %v694_v5  ;;  %v226_v29 = vsub.f32 %v206_v56, %v4427_v3  ;;  %v816_v21 = vsel %vm815_vm15, 1, %v5667_v62  ;;  %v5728_v15 = vld [vmem:[#allocation33_spill] sm:$0xff]  ;;  %3442 = vmatmul.msk.f32.gmra.mxu0 %vm2889_vm6, %v3474_v44 }
 0x140   :  { %v554_v31 = vadd.f32 0.041655596, %v553_v63  ;;  %v561_v0 = vadd.f32 0.008332121, %v560_v59  ;;  %v817_v60 = vadd.s32 %v811_v17, %v4605_v26  ;;  %v818_v5 = vadd.s32 %v816_v21, %v5728_v15 }
 0x141   :  { %v417_v33 = vxor.u32 2147483648, %v412_v43  ;;  %v1658_v18 = vsel %vm1656_vm12, %v420_v8, %v412_v43  ;;  %v421_v37 = vsel %vm419_vm13, %v420_v8, %v412_v43  ;;  %v696_v27 = vand.u32 2147483647, %v695_v55  ;;  %v3476_v22 = vpop.eup %3475 }
 0x142   :  { %v555_v50 = vmul.f32 %v554_v31, %v552_v35  ;;  %v562_v14 = vmul.f32 %v561_v0, %v552_v35  ;;  %v234_v38 = vmul.f32 0.8, %v226_v29  ;;  %v5729_v63 = vshll.u32 %v4101_v47, 16 }
 0x143   :  { %v1655_v17 = vsel %vm1653_vm14, %v404_v61, %v417_v33  ;;  %v418_v59 = vsel %vm416_vm1, %v404_v61, %v417_v33  ;;  %vm1811_vm12 = vcmp.eq.s32.totalorder %v4647_v34, 2  ;;  %v699_v40 = vmul.f32 %v698_v19, %v696_v27 }
 0x144   :  { %vm4705_vm15 = vc.u32 %v4164_v36, %v5729_v63  ;;  %vm4716_vm13 = vc.u32 %v817_v60, %v813_v11  ;;  %v1659_v36 = vsel %vm1652_vm2, %v1655_v17, %v1658_v18  ;;  %v422_v56 = vsel %vm415_vm9, %v418_v59, %v421_v37 }
 0x145   :  { %v556_v43 = vadd.f32 -0.4999988, %v555_v50  ;;  %v563_v8 = vadd.f32 -0.16666654, %v562_v14  ;;  %vm573_vm14 = vcmp.eq.s32.totalorder %v4616_v9, 2  ;;  %v1660_v61 = vsel %vm413_vm11, nan, %v1659_v36 }
 0x146   :  { %v423_v19 = vsel %vm413_vm11, nan, %v422_v56  ;;  %vm1808_vm1 = vcmp.eq.s32.totalorder %v4647_v34, 0  ;;  %vm570_vm7 = vcmp.eq.s32.totalorder %v4616_v9, 0  ;;  %v700_v55 = vxor.u32 2147483648, %v699_v40  ;;  %3424 = vmatmul.msk.f32.vlgmr.msra.gmra.mxu2 %vm2750_vm0, %v1660_v61 }
 0x147   :  { %v242_v6 = vmul.f32 %v234_v38, %v234_v38  ;;  %3432 = vmatmul.msk.f32.vlgmr.msra.gmra.mxu3 %vm2750_vm0, %v423_v19  ;;  %v557_v41 = vmul.f32 %v556_v43, %v552_v35  ;;  %v564_v29 = vmul.f32 %v563_v8, %v552_v35  ;;  %vm1807_vm2 = vcmp.lt.s32.totalorder %v4647_v34, 2  ;;  %3443 = vmatmul.msk.f32.gmra.mxu0 %vm2889_vm6, %v3476_v22 }
 0x148   :  { %vm569_vm9 = vcmp.lt.s32.totalorder %v4616_v9, 2  ;;  %v1960_v31 = vadd.s32 3, %v4684_v2  ;;  %v820_v13 = vsel %vm4716_vm13, 1, %v5667_v62  ;;  %vm567_vm11 = vweird.f32 %v5698_v57 }
 0x149   :  { %v701_v0 = vsel %vm580_vm3, %v700_v55, %v699_v40  ;;  %v250_v21 = vsub.f32 0.0, %v242_v6  ;;  %v812_v33 = vshrl.u32 %v5727_v46, 16  ;;  %v822_v18 = vadd.s32 %v820_v13, %v818_v5 }
 0x14a   :  { %v558_v35 = vadd.f32 1.0, %v557_v41  ;;  %v565_v37 = vadd.f32 1.0, %v564_v29  ;;  %v4746_v27 = vsel %vm4643_vm5, %v5720_v20, %v701_v0  ;;  %v5734_v50 = vshrl.u32 %v4585_v30, 16 }
 0x14b   :  { %v706_v38 = vmul.f32 %v4746_v27, %v4746_v27  ;;  %v262_v15 = vmul.f32 1.442695, %v250_v21  ;;  %v814_v63 = vshrl.u32 %v4652_v42, 16  ;;  %v823_v46 = vadd.s32 %v822_v18, %v812_v33  ;;  %v5736_v21 = vld [vmem:[#allocation18_spill] sm:$0xff]  ;;  %v5737_v33 = vld [vmem:[#allocation21_spill] sm:$0xff] }
 0x14c   :  { %v4751_v14 = vadd.s32 %v4659_v58, %v5734_v50  ;;  %v566_v5 = vmul.f32 %v565_v37, %v4677_v7  ;;  %v574_v17 = vxor.u32 2147483648, %v558_v35  ;;  %v4759_v28 = vadd.s32 %v817_v60, %v813_v11 }
 0x14d   :  { %v5735_v30 = vand.u32 65535, %v4069_v23  ;;  %v707_v58 = vmul.f32 -0.001358992, %v706_v38  ;;  %v714_v40 = vmul.f32 -0.00019511016, %v706_v38  ;;  %3477 = vpow2.f32 %v262_v15 }
 0x14e   :  { %v824_v44 = vadd.s32 %v823_v46, %v814_v63  ;;  %v571_v36 = vxor.u32 2147483648, %v566_v5  ;;  %v1813_v7 = vsel %vm1811_vm12, %v574_v17, %v566_v5  ;;  %v4770_v56 = vand.u32 3, %v4684_v2  ;;  %v5742_v46 = vld [vmem:[#allocation41_spill] sm:$0xff] }
 0x14f   :  { %v4764_v59 = vmul.u32 %v5735_v30, %v4031_v12  ;;  %vm827_vm3 = vc.u32 %v4751_v14, %v4759_v28  ;;  %v575_v23 = vsel %vm573_vm14, %v574_v17, %v566_v5  ;;  %v708_v42 = vadd.f32 0.041655596, %v707_v58 }
 0x150   :  { %v715_v11 = vadd.f32 0.008332121, %v714_v40  ;;  %v828_v60 = vadd.s32 1, %v824_v44  ;;  %v1810_v22 = vsel %vm1808_vm1, %v558_v35, %v571_v36  ;;  %v572_v43 = vsel %vm570_vm7, %v558_v35, %v571_v36 }
 0x151   :  { %v945_v8 = vshll.u32 %v4764_v59, 16  ;;  %v948_v2 = vsel %vm4705_vm15, 1, %v5667_v62  ;;  %v1814_v61 = vsel %vm1807_vm2, %v1810_v22, %v1813_v7  ;;  %v576_v19 = vsel %vm569_vm9, %v572_v43, %v575_v23  ;;  %v5746_v43 = vld [vmem:[#allocation42_spill] sm:$0xff] }
 0x152   :  { %v709_v55 = vmul.f32 %v708_v42, %v706_v38  ;;  %v716_v6 = vmul.f32 %v715_v11, %v706_v38  ;;  %v1815_v41 = vsel %vm567_vm11, nan, %v1814_v61  ;;  %v577_v29 = vsel %vm567_vm11, nan, %v576_v19 }
 0x153   :  { %v1961_v13 = vand.u32 3, %v1960_v31  ;;  %v829_v26 = vsel %vm827_vm3, %v828_v60, %v824_v44  ;;  %v3478_v0 = vpop.eup %3477  ;;  %3425 = vmatmul.msk.f32.gmra.mxu2 %vm2750_vm0, %v1815_v41  ;;  %3433 = vmatmul.msk.f32.gmra.mxu3 %vm2750_vm0, %v577_v29  ;;  %v5738_v18 = vmul.u32 %v5736_v21, %v5737_v33  ;;  %vm951_vm7 = vc.u32 %v4216_v4, %v945_v8  ;;  %v5739_v31 = vld [vmem:[#allocation37_spill] sm:$0xff] }
 0x154   :  { %v710_v9 = vadd.f32 -0.4999988, %v709_v55  ;;  %v717_v34 = vadd.f32 -0.16666654, %v716_v6  ;;  %v950_v57 = vadd.s32 %v948_v2, %v4197_v1  ;;  %v5740_v37 = vand.u32 65535, %v5739_v31  ;;  %3444 = vmatmul.msk.f32.gmra.mxu0 %vm2889_vm6, %v3478_v0 }
 0x155   :  { %v830_v35 = vadd.s32 %v829_v26, %v5738_v18  ;;  %v965_v5 = vshll.u32 %v5742_v46, 16  ;;  %v952_v4 = vsel %vm951_vm7, 1, %v5667_v62  ;;  %vm721_vm5 = vweird.f32 %v5720_v20 }
 0x156   :  { %v961_v50 = vmul.u32 %v5740_v37, %v4026_v25  ;;  %v5741_v15 = vmov %v5740_v37  ;;  %v711_v17 = vmul.f32 %v710_v9, %v706_v38  ;;  %v718_v30 = vmul.f32 %v717_v34, %v706_v38 }
 0x157   :  { %v4808_v63 = vmul.u32 %v5741_v15, %v4031_v12  ;;  %v831_v58 = vadd.s32 536870912, %v830_v35  ;;  %vm1962_vm15 = vcmp.lt.s32.totalorder %v1961_v13, 2  ;;  %vm1963_vm12 = vcmp.eq.s32.totalorder %v1961_v13, 0 }
 0x158   :  { %vm969_vm13 = vc.u32 %v961_v50, %v965_v5  ;;  %v712_v25 = vadd.f32 1.0, %v711_v17  ;;  %v719_v1 = vadd.f32 1.0, %v718_v30  ;;  %vm1966_vm14 = vcmp.eq.s32.totalorder %v1961_v13, 2 }
 0x159   :  { %v4814_v40 = vshrl.u32 %v831_v58, 30  ;;  %v954_v12 = vadd.s32 %v952_v4, %v950_v57  ;;  %v967_v44 = vshll.u32 %v4808_v63, 16  ;;  %v970_v36 = vsel %vm969_vm13, 1, %v5667_v62 }
 0x15a   :  { %v971_v7 = vadd.s32 %v965_v5, %v961_v50  ;;  %v5743_v38 = vshll.u32 %v4271_v32, 16  ;;  %v720_v42 = vmul.f32 %v719_v1, %v4746_v27  ;;  %v728_v11 = vxor.u32 2147483648, %v712_v25  ;;  %v5754_v1 = vld [vmem:[#allocation15_spill] sm:$0xff] }
 0x15b   :  { %vm723_vm2 = vcmp.lt.s32.totalorder %v4770_v56, 2  ;;  %v833_v60 = vshll.u32 %v4814_v40, 30  ;;  %vm724_vm9 = vcmp.eq.s32.totalorder %v4770_v56, 0  ;;  %v944_v22 = vshrl.u32 %v4101_v47, 16 }
 0x15c   :  { %vm4821_vm1 = vc.u32 %v4281_v51, %v5743_v38  ;;  %v972_v8 = vadd.s32 %v970_v36, %v5746_v43  ;;  %vm973_vm11 = vc.u32 %v971_v7, %v967_v44  ;;  %v725_v2 = vxor.u32 2147483648, %v720_v42 }
 0x15d   :  { %vm727_vm3 = vcmp.eq.s32.totalorder %v4770_v56, 2  ;;  %v4832_v51 = vsub.s32 %v830_v35, %v833_v60  ;;  %v946_v61 = vshrl.u32 %v4764_v59, 16  ;;  %v1968_v27 = vsel %vm1966_vm14, %v728_v11, %v720_v42 }
 0x15e   :  { %v729_v19 = vsel %vm727_vm3, %v728_v11, %v720_v42  ;;  %v955_v55 = vadd.s32 %v954_v12, %v944_v22  ;;  %v974_v6 = vsel %vm973_vm11, 1, %v5667_v62  ;;  %v1965_v41 = vsel %vm1963_vm12, %v712_v25, %v725_v2  ;;  %v5755_v12 = vld [vmem:[#allocation12_spill] sm:$0xff]  ;;  %v5756_v42 = vld [vmem:[#allocation6_spill] sm:$0xff]  ;;  %v5757_v22 = vld [vmem:[#allocation43_spill] sm:$0xff] }
 0x15f   :  { %v726_v29 = vsel %vm724_vm9, %v712_v25, %v725_v2  ;;  %vm835_vm7 = vcmp.lt.s32.totalorder %v4832_v51, 0  ;;  %v836_v47 = vsub.s32 0, %v4832_v51  ;;  %v1969_v26 = vsel %vm1962_vm15, %v1965_v41, %v1968_v27  ;;  %v5753_v25 = vld [vmem:[#allocation5_spill] sm:$0xff]  ;;  %v5759_v2 = vld [vmem:[#allocation47_spill] sm:$0xff] }
 0x160   :  { %v730_v0 = vsel %vm723_vm2, %v726_v29, %v729_v19  ;;  %v966_v59 = vshrl.u32 %v5742_v46, 16  ;;  %v976_v9 = vadd.s32 %v974_v6, %v972_v8  ;;  %v1394_v34 = vsel %vm1382_vm8, %v4514_v49, %v4564_v10  ;;  %v5760_v6 = vld [vmem:[#allocation50_spill] sm:$0xff] }
 0x161   :  { %v1970_v21 = vsel %vm721_vm5, nan, %v1969_v26  ;;  %v731_v33 = vsel %vm721_vm5, nan, %v730_v0  ;;  %v837_v13 = vsel %vm835_vm7, %v836_v47, %v4832_v51  ;;  %v4855_v18 = vadd.s32 %v955_v55, %v946_v61  ;;  %v5761_v29 = vld [vmem:[#allocation46_spill] sm:$0xff]  ;;  %v5762_v26 = vld [vmem:[#allocation44_spill] sm:$0xff] }
 0x162   :  { %3426 = vmatmul.msk.f32.gmra.mxu2 %vm2750_vm0, %v1970_v21  ;;  %3434 = vmatmul.msk.f32.gmra.mxu3 %vm2750_vm0, %v731_v33  ;;  %v838_v56 = vclz %v837_v13  ;;  %v977_v35 = vadd.s32 %v976_v9, %v966_v59  ;;  %v5747_v57 = vand.u32 65535, %v4205_v45  ;;  %v5748_v10 = vand.u32 65535, %v4317_v24  ;;  %v5765_v21 = vld [vmem:[#allocation38_spill] sm:$0xff] }
 0x163   :  { %v5749_v31 = vshrl.u32 %v4317_v24, 16  ;;  %v5750_v50 = vshrl.u32 %v4375_v48, 16  ;;  %v968_v46 = vshrl.u32 %v4808_v63, 16  ;;  %vm1381_vm5 = vcmp.lt.s32.totalorder %v4377_v53, 2 }
 0x164   :  { %v4860_v49 = vmul.u32 %v5747_v57, %v4235_v54  ;;  %v4865_v20 = vmul.u32 %v5748_v10, %v4338_v39  ;;  %v3386_v17 = vadd.s32 4294967294, %v838_v56  ;;  %v4884_v30 = vadd.s32 %v971_v7, %v967_v44 }
 0x165   :  { %v4870_v37 = vmul.u32 %v5749_v31, %v4358_v16  ;;  %v4875_v15 = vmul.u32 %v5750_v50, %v4338_v39  ;;  %v5751_v45 = vmov %v5750_v50  ;;  %v5752_v58 = vshll.u32 %v4383_v52, 16 }
 0x166   :  { %v4881_v5 = vmul.u32 %v5751_v45, %v4358_v16  ;;  %v4895_v63 = vsel %vm1381_vm5, %v5754_v1, %v5753_v25  ;;  %v4900_v36 = vsel %vm1381_vm5, %v5755_v12, %v1394_v34  ;;  %v978_v38 = vadd.s32 %v977_v35, %v968_v46  ;;  %v5764_v34 = vld [vmem:[#allocation29_spill] sm:$0xff]  ;;  %v2965_v46 = vld [vmem:[%s5495_s2 + $0x10] sm:$0xff]  ;;  %v209_v45 = vpop.f32.mrf.mxu1 }
 0x167   :  { %v4889_v4 = vadd.s32 %v5752_v58, %v4865_v20  ;;  %vm734_vm15 = vcmp.lt.s32.totalorder %v5756_v42, 0  ;;  %vm3387_vm12 = vcmp.lt.s32.totalorder %v3386_v17, 0  ;;  %vm981_vm13 = vc.u32 %v4855_v18, %v4884_v30  ;;  %3451 = vmatmul.msk.f32.gmra.mxu1 %vm2975_vm4, %v2965_v46 }
 0x168   :  { %v1099_v44 = vshll.u32 %v4860_v49, 16  ;;  %v1102_v7 = vsel %vm4821_vm1, 1, %v5667_v62  ;;  %v841_v11 = vsel %vm3387_vm12, 0, %v3386_v17  ;;  %v982_v60 = vadd.s32 1, %v978_v38 }
 0x169   :  { %v5758_v43 = vand.u32 65535, %v5757_v22  ;;  %v1119_v61 = vshll.u32 %v5759_v2, 16  ;;  %v826_v27 = vadd.s32 %v4759_v28, %v4751_v14  ;;  %v842_v19 = vsub.s32 32, %v841_v11 }
 0x16a   :  { %v846_v55 = vsub.s32 4294967266, %v841_v11  ;;  %vm1105_vm14 = vc.u32 %v5760_v6, %v1099_v44  ;;  %v843_v41 = vshll.u32 %v4832_v51, %v841_v11  ;;  %v983_v23 = vsel %vm981_vm13, %v982_v60, %v978_v38  ;;  %v5767_v11 = vld [vmem:[#allocation48_spill] sm:$0xff] }
 0x16b   :  { %v4912_v8 = vmul.u32 %v5758_v43, %v4235_v54  ;;  %v1104_v47 = vadd.s32 %v1102_v7, %v5761_v29  ;;  %v5763_v0 = vmov %v5758_v43  ;;  %v844_v54 = vshrl.u32 %v826_v27, %v842_v19 }
 0x16c   :  { %v1115_v59 = vmul.u32 %v5763_v0, %v5762_v26  ;;  %v847_v9 = vadd.s32 127, %v846_v55  ;;  %v5766_v33 = vmul.u32 %v5764_v34, %v5765_v21  ;;  %v1106_v14 = vsel %vm1105_vm14, 1, %v5667_v62  ;;  %v5768_v55 = vld [vmem:[#allocation52_spill] sm:$0xff] }
 0x16d   :  { %v856_v28 = vsub.s32 4, %v4814_v40  ;;  %v1121_v56 = vshll.u32 %v4912_v8, 16  ;;  %v1422_v35 = vshrl.u32 %v4895_v63, 16  ;;  %v845_v57 = vor.u32 %v844_v54, %v843_v41 }
 0x16e   :  { %v984_v13 = vadd.s32 %v983_v23, %v5766_v33  ;;  %vm1123_vm1 = vc.u32 %v1115_v59, %v1119_v61  ;;  %v1125_v51 = vadd.s32 %v1119_v61, %v1115_v59  ;;  %v848_v10 = vshll.u32 %v847_v9, 23 }
 0x16f   :  { %v1400_v50 = vshrl.u32 %v4900_v36, 16  ;;  %v1108_v17 = vadd.s32 %v1106_v14, %v1104_v47  ;;  %v1124_v58 = vsel %vm1123_vm1, 1, %v5667_v62  ;;  %v1399_v25 = vand.u32 65535, %v4900_v36  ;;  %v5775_v14 = vld [vmem:[#allocation57_spill] sm:$0xff] }
 0x170   :  { %v985_v31 = vadd.s32 536870912, %v984_v13  ;;  %vm1127_vm2 = vc.u32 %v1125_v51, %v1121_v56  ;;  %v849_v1 = vor.u32 4788187, %v848_v10  ;;  %v227_v12 = vsub.f32 %v209_v45, %v4427_v3 }
 0x171   :  { %v857_v44 = vsel %vm734_vm15, %v856_v28, %v4814_v40  ;;  %v1098_v7 = vshrl.u32 %v4271_v32, 16  ;;  %v1126_v60 = vadd.s32 %v1124_v58, %v5767_v11  ;;  %v1128_v22 = vsel %vm1127_vm2, 1, %v5667_v62 }
 0x172   :  { %v4938_v38 = vshrl.u32 %v985_v31, 30  ;;  %v850_v43 = vand.u32 2147483647, %v849_v1  ;;  %v852_v61 = vcvt.s32.f32 %v845_v57  ;;  %v235_v27 = vmul.f32 0.8, %v227_v12  ;;  %v5776_v12 = vld [vmem:[#allocation10_spill] sm:$0xff] }
 0x173   :  { %v4948_v6 = vmul.u32 %v1400_v50, %v5768_v55  ;;  %v1109_v3 = vadd.s32 %v1108_v17, %v1098_v7  ;;  %v1120_v41 = vshrl.u32 %v5759_v2, 16  ;;  %v1130_v23 = vadd.s32 %v1128_v22, %v1126_v60  ;;  %v5777_v60 = vld [vmem:[#allocation53_spill] sm:$0xff] }
 0x174   :  { %v987_v19 = vshll.u32 %v4938_v38, 30  ;;  %v5769_v40 = vand.u32 2147483647, %v5756_v42  ;;  %v853_v29 = vmul.f32 %v852_v61, %v850_v43  ;;  %v243_v47 = vmul.f32 %v235_v27, %v235_v27 }
 0x175   :  { %v5772_v0 = vshll.u32 %v4383_v52, 16  ;;  %v1100_v54 = vshrl.u32 %v4860_v49, 16  ;;  %v1122_v9 = vshrl.u32 %v4912_v8, 16  ;;  %v1131_v34 = vadd.s32 %v1130_v23, %v1120_v41 }
 0x176   :  { %vm4953_vm9 = vcmp.le.f32.partialorder %v5769_v40, 0.7853982  ;;  %v4957_v26 = vsub.s32 %v984_v13, %v987_v19  ;;  %v854_v21 = vxor.u32 2147483648, %v853_v29  ;;  %v251_v33 = vsub.f32 0.0, %v243_v47 }
 0x177   :  { %vm4962_vm11 = vc.u32 %v4865_v20, %v5772_v0  ;;  %v859_v2 = vsel %vm4953_vm9, 0, %v857_v44  ;;  %v4975_v20 = vsel %vm1383_vm10, %v5775_v14, 2102212464  ;;  %v4980_v28 = vmul.u32 %v1399_v25, %v5768_v55 }
 0x178   :  { %vm989_vm3 = vcmp.lt.s32.totalorder %v4957_v26, 0  ;;  %v990_v13 = vsub.s32 0, %v4957_v26  ;;  %v1405_v49 = vshll.u32 %v4948_v6, 16  ;;  %v4983_v8 = vadd.s32 %v1109_v3, %v1100_v54 }
 0x179   :  { %v855_v57 = vsel %vm734_vm15, %v854_v21, %v853_v29  ;;  %v264_v10 = vmul.f32 1.442695, %v251_v33  ;;  %v1132_v46 = vadd.s32 %v1131_v34, %v1122_v9  ;;  %v2115_v17 = vadd.s32 3, %v859_v2  ;;  %v5783_v21 = vld [vmem:[#allocation40_spill] sm:$0xff] }
 0x17a   :  { %v991_v31 = vsel %vm989_vm3, %v990_v13, %v4957_v26  ;;  %v4991_v45 = vsel %vm4953_vm9, %v5756_v42, %v855_v57  ;;  %v4993_v1 = vadd.s32 %v1125_v51, %v1121_v56  ;;  %vm888_vm10 = vcmp.lt.s32.totalorder %v5776_v12, 0 }
 0x17b   :  { %v992_v58 = vclz %v991_v31  ;;  %v1421_v44 = vand.u32 65535, %v4895_v63  ;;  %v5000_v7 = vmul.u32 %v1422_v35, %v5768_v55  ;;  %v860_v11 = vmul.f32 %v4991_v45, %v4991_v45 }
 0x17c   :  { %3479 = vpow2.f32 %v264_v10  ;;  %v5005_v22 = vmul.u32 %v1400_v50, %v5777_v60  ;;  %v5010_v56 = vadd.s32 %v1405_v49, %v4980_v28  ;;  %vm1135_vm7 = vc.u32 %v4983_v8, %v4993_v1 }
 0x17d   :  { %v3389_v51 = vadd.s32 4294967294, %v992_v58  ;;  %v861_v43 = vmul.f32 -0.001358992, %v860_v11  ;;  %v868_v61 = vmul.f32 -0.00019511016, %v860_v11  ;;  %v1136_v27 = vadd.s32 1, %v1132_v46 }
 0x17e   :  { %v5778_v19 = vand.u32 65535, %v4317_v24  ;;  %v5019_v41 = vand.u32 3, %v2115_v17  ;;  %v5021_v50 = vand.u32 3, %v859_v2  ;;  %v980_v23 = vadd.s32 %v4884_v30, %v4855_v18  ;;  %v5782_v2 = vld [vmem:[#allocation39_spill] sm:$0xff] }
 0x17f   :  { %vm3390_vm15 = vcmp.lt.s32.totalorder %v3389_v51, 0  ;;  %v862_v40 = vadd.f32 0.041655596, %v861_v43  ;;  %v869_v32 = vadd.f32 0.008332121, %v868_v61  ;;  %v1137_v47 = vsel %vm1135_vm7, %v1136_v27, %v1132_v46 }
 0x180   :  { %v5017_v3 = vmul.u32 %v5778_v19, %v4358_v16  ;;  %v995_v29 = vsel %vm3390_vm15, 0, %v3389_v51  ;;  %v5779_v0 = vand.u32 2147483647, %v5776_v12  ;;  %v1010_v34 = vsub.s32 4, %v4938_v38 }
 0x181   :  { %v996_v24 = vsub.s32 32, %v995_v29  ;;  %v1000_v9 = vsub.s32 4294967266, %v995_v29  ;;  %v5784_v33 = vmul.u32 %v5782_v2, %v5783_v21  ;;  %v863_v30 = vmul.f32 %v862_v40, %v860_v11 }
 0x182   :  { %vm5027_vm12 = vcmp.le.f32.partialorder %v5779_v0, 0.7853982  ;;  %v3480_v18 = vpop.eup %3479  ;;  %v870_v14 = vmul.f32 %v869_v32, %v860_v11  ;;  %v1253_v57 = vshll.u32 %v5017_v3, 16  ;;  %v1256_v10 = vsel %vm4962_vm11, 1, %v5667_v62  ;;  %v2966_v32 = vld [vmem:[%s5495_s2 + $0x18] sm:$0xff] }
 0x183   :  { %v1138_v13 = vadd.s32 %v1137_v47, %v5784_v33  ;;  %v997_v31 = vshll.u32 %v4957_v26, %v995_v29  ;;  %v998_v46 = vshrl.u32 %v980_v23, %v996_v24  ;;  %v1001_v17 = vadd.s32 127, %v1000_v9  ;;  %3445 = vmatmul.msk.f32.gmra.mxu0 %vm2889_vm6, %v3480_v18  ;;  %v212_v29 = vpop.f32.mrf.mxu1  ;;  %3452 = vmatmul.msk.f32.gmra.mxu1 %vm2975_vm4, %v2966_v32 }
 0x184   :  { %v864_v51 = vadd.f32 -0.4999988, %v863_v30  ;;  %v871_v43 = vadd.f32 -0.16666654, %v870_v14  ;;  %vm2121_vm13 = vcmp.eq.s32.totalorder %v5019_v41, 2  ;;  %vm5043_vm14 = vc.u32 %v4889_v4, %v1253_v57 }
 0x185   :  { %v1139_v58 = vadd.s32 536870912, %v1138_v13  ;;  %v1273_v27 = vshll.u32 %v4875_v15, 16  ;;  %vm2118_vm1 = vcmp.eq.s32.totalorder %v5019_v41, 0  ;;  %vm878_vm2 = vcmp.eq.s32.totalorder %v5021_v50, 0 }
 0x186   :  { %vm881_vm9 = vcmp.eq.s32.totalorder %v5021_v50, 2  ;;  %v999_v26 = vor.u32 %v998_v46, %v997_v31  ;;  %v1002_v59 = vshll.u32 %v1001_v17, 23  ;;  %v1011_v19 = vsel %vm888_vm10, %v1010_v34, %v4938_v38 }
 0x187   :  { %v5054_v23 = vshrl.u32 %v1139_v58, 30  ;;  %v865_v4 = vmul.f32 %v864_v51, %v860_v11  ;;  %v872_v40 = vmul.f32 %v871_v43, %v860_v11  ;;  %vm2117_vm11 = vcmp.lt.s32.totalorder %v5019_v41, 2  ;;  %v5070_v11 = vld [vmem:[%s5490_s11] ss:$0 sm:$0xff] }
 0x188   :  { %vm877_vm3 = vcmp.lt.s32.totalorder %v5021_v50, 2  ;;  %v1258_v47 = vadd.s32 %v1256_v10, %v4870_v37  ;;  %v5787_v0 = vand.u32 65535, %v4375_v48  ;;  %vm875_vm7 = vweird.f32 %v5756_v42 }
 0x189   :  { %v1003_v38 = vor.u32 4788187, %v1002_v59  ;;  %v228_v9 = vsub.f32 %v212_v29, %v5070_v11  ;;  %v1141_v34 = vshll.u32 %v5054_v23, 30  ;;  %v1260_v37 = vsel %vm5043_vm14, 1, %v5667_v62 }
 0x18a   :  { %v1269_v24 = vmul.u32 %v5787_v0, %v4338_v39  ;;  %v866_v2 = vadd.f32 1.0, %v865_v4  ;;  %v873_v39 = vadd.f32 1.0, %v872_v40  ;;  %v5788_v21 = vmov %v5787_v0 }
 0x18b   :  { %v5080_v33 = vmul.u32 %v5788_v21, %v4358_v16  ;;  %v1004_v18 = vand.u32 2147483647, %v1003_v38  ;;  %v1006_v30 = vcvt.s32.f32 %v999_v26  ;;  %v236_v14 = vmul.f32 0.8, %v228_v9 }
 0x18c   :  { %vm1277_vm15 = vc.u32 %v1269_v24, %v1273_v27  ;;  %v5082_v57 = vsub.s32 %v1138_v13, %v1141_v34  ;;  %v874_v10 = vmul.f32 %v873_v39, %v4991_v45  ;;  %v882_v31 = vxor.u32 2147483648, %v866_v2 }
 0x18d   :  { %v1013_v46 = vsel %vm5027_vm12, 0, %v1011_v19  ;;  %v1262_v17 = vadd.s32 %v1260_v37, %v1258_v47  ;;  %v1007_v58 = vmul.f32 %v1006_v30, %v1004_v18  ;;  %v244_v51 = vmul.f32 %v236_v14, %v236_v14  ;;  %v5789_v14 = vld [vmem:[#allocation13_spill] sm:$0xff] }
 0x18e   :  { %vm1143_vm14 = vcmp.lt.s32.totalorder %v5082_v57, 0  ;;  %v1144_v16 = vsub.s32 0, %v5082_v57  ;;  %v879_v48 = vxor.u32 2147483648, %v874_v10  ;;  %v1275_v43 = vshll.u32 %v5080_v33, 16 }
 0x18f   :  { %v1278_v61 = vsel %vm1277_vm15, 1, %v5667_v62  ;;  %v1279_v13 = vadd.s32 %v1273_v27, %v1269_v24  ;;  %v2123_v45 = vsel %vm2121_vm13, %v882_v31, %v874_v10  ;;  %v1008_v26 = vxor.u32 2147483648, %v1007_v58 }
 0x190   :  { %v252_v59 = vsub.f32 0.0, %v244_v51  ;;  %v1145_v19 = vsel %vm1143_vm14, %v1144_v16, %v5082_v57  ;;  %v2120_v4 = vsel %vm2118_vm1, %v866_v2, %v879_v48  ;;  %v880_v40 = vsel %vm878_vm2, %v866_v2, %v879_v48 }
 0x191   :  { %v883_v32 = vsel %vm881_vm9, %v882_v31, %v874_v10  ;;  %v1146_v29 = vclz %v1145_v19  ;;  %v2124_v27 = vsel %vm2117_vm11, %v2120_v4, %v2123_v45  ;;  %v1009_v0 = vsel %vm888_vm10, %v1008_v26, %v1007_v58 }
 0x192   :  { %v884_v47 = vsel %vm877_vm3, %v880_v40, %v883_v32  ;;  %v266_v24 = vmul.f32 1.442695, %v252_v59  ;;  %v2125_v38 = vsel %vm875_vm7, nan, %v2124_v27  ;;  %v5113_v34 = vsel %vm5027_vm12, %v5776_v12, %v1009_v0  ;;  %v215_v0 = vpop.f32.mrf.mxu1 }
 0x193   :  { %v885_v9 = vsel %vm875_vm7, nan, %v884_v47  ;;  %v3392_v41 = vadd.s32 4294967294, %v1146_v29  ;;  %3427 = vmatmul.msk.f32.gmra.mxu2 %vm2750_vm0, %v2125_v38  ;;  %v1014_v50 = vmul.f32 %v5113_v34, %v5113_v34  ;;  %v1134_v37 = vadd.s32 %v4993_v1, %v4983_v8  ;;  %v2967_v47 = vld [vmem:[%s5495_s2 + $0x20] sm:$0xff] }
 0x194   :  { %3435 = vmatmul.msk.f32.gmra.mxu3 %vm2750_vm0, %v885_v9  ;;  %3481 = vpow2.f32 %v266_v24  ;;  %v1252_v42 = vshrl.u32 %v4383_v52, 16  ;;  %v2270_v2 = vadd.s32 3, %v1013_v46  ;;  %v1280_v54 = vadd.s32 %v1278_v61, %v4881_v5  ;;  %3453 = vmatmul.msk.f32.gmra.mxu1 %vm2975_vm4, %v2967_v47 }
 0x195   :  { %vm3393_vm10 = vcmp.lt.s32.totalorder %v3392_v41, 0  ;;  %vm1281_vm12 = vc.u32 %v1279_v13, %v1275_v43  ;;  %v1015_v39 = vmul.f32 -0.001358992, %v1014_v50  ;;  %v1022_v21 = vmul.f32 -0.00019511016, %v1014_v50 }
 0x196   :  { %v1149_v18 = vsel %vm3393_vm10, 0, %v3392_v41  ;;  %v1263_v30 = vadd.s32 %v1262_v17, %v1252_v42  ;;  %vm1042_vm13 = vcmp.lt.s32.totalorder %v5789_v14, 0  ;;  %v5126_v10 = vand.u32 3, %v1013_v46 }
 0x197   :  { %v1150_v31 = vsub.s32 32, %v1149_v18  ;;  %v1154_v58 = vsub.s32 4294967266, %v1149_v18  ;;  %v1254_v8 = vshrl.u32 %v5017_v3, 16  ;;  %v1016_v52 = vadd.f32 0.041655596, %v1015_v39 }
 0x198   :  { %v1023_v1 = vadd.f32 0.008332121, %v1022_v21  ;;  %v1274_v51 = vshrl.u32 %v4875_v15, 16  ;;  %v1282_v5 = vsel %vm1281_vm12, 1, %v5667_v62  ;;  %vm5134_vm1 = vc.u32 %v4980_v28, %v1405_v49 }
 0x199   :  { %v1151_v46 = vshll.u32 %v5082_v57, %v1149_v18  ;;  %v1152_v17 = vshrl.u32 %v1134_v37, %v1150_v31  ;;  %v1155_v48 = vadd.s32 127, %v1154_v58  ;;  %v1284_v61 = vadd.s32 %v1282_v5, %v1280_v54  ;;  %v5795_v31 = vld [vmem:[#allocation45_spill] sm:$0xff]  ;;  %v5796_v58 = vld [vmem:[#allocation51_spill] sm:$0xff] }
 0x19a   :  { %v3482_v45 = vpop.eup %3481  ;;  %v1017_v3 = vmul.f32 %v1016_v52, %v1014_v50  ;;  %v1024_v26 = vmul.f32 %v1023_v1, %v1014_v50  ;;  %v2271_v59 = vand.u32 3, %v2270_v2  ;;  %v5792_v15 = vand.u32 2147483647, %v5789_v14 }
 0x19b   :  { %v5145_v4 = vadd.s32 %v1263_v30, %v1254_v8  ;;  %v1153_v28 = vor.u32 %v1152_v17, %v1151_v46  ;;  %v1156_v49 = vshll.u32 %v1155_v48, 23  ;;  %v1276_v40 = vshrl.u32 %v5080_v33, 16  ;;  %3446 = vmatmul.msk.f32.gmra.mxu0 %vm2889_vm6, %v3482_v45 }
 0x19c   :  { %vm5141_vm2 = vcmp.le.f32.partialorder %v5792_v15, 0.7853982  ;;  %v1285_v57 = vadd.s32 %v1284_v61, %v1274_v51  ;;  %v1018_v32 = vadd.f32 -0.4999988, %v1017_v3  ;;  %v1025_v29 = vadd.f32 -0.16666654, %v1024_v26 }
 0x19d   :  { %v1164_v27 = vsub.s32 4, %v5054_v23  ;;  %v5155_v24 = vadd.s32 %v1279_v13, %v1275_v43  ;;  %vm1032_vm9 = vcmp.eq.s32.totalorder %v5126_v10, 0  ;;  %vm1035_vm11 = vcmp.eq.s32.totalorder %v5126_v10, 2 }
 0x19e   :  { %v1157_v38 = vor.u32 4788187, %v1156_v49  ;;  %v229_v9 = vsub.f32 %v215_v0, %v5070_v11  ;;  %v1286_v41 = vadd.s32 %v1285_v57, %v1276_v40  ;;  %v1019_v37 = vmul.f32 %v1018_v32, %v1014_v50 }
 0x19f   :  { %v1026_v42 = vmul.f32 %v1025_v29, %v1014_v50  ;;  %vm1031_vm3 = vcmp.lt.s32.totalorder %v5126_v10, 2  ;;  %vm1289_vm7 = vc.u32 %v5145_v4, %v5155_v24  ;;  %v5167_v33 = vmul.u32 %v1399_v25, %v5777_v60 }
 0x1a0   :  { %vm1029_vm15 = vweird.f32 %v5776_v12  ;;  %v1158_v43 = vand.u32 2147483647, %v1157_v38  ;;  %v1160_v13 = vcvt.s32.f32 %v1153_v28  ;;  %v237_v2 = vmul.f32 0.8, %v229_v9  ;;  %v5800_v38 = vld [vmem:[#allocation55_spill] sm:$0xff]  ;;  %v5801_v9 = vld [vmem:[#allocation54_spill] sm:$0xff] }
 0x1a1   :  { %v1290_v54 = vadd.s32 1, %v1286_v41  ;;  %v1020_v11 = vadd.f32 1.0, %v1019_v37  ;;  %v1027_v39 = vadd.f32 1.0, %v1026_v42  ;;  %vm2272_vm14 = vcmp.lt.s32.totalorder %v2271_v59, 2 }
 0x1a2   :  { %v1165_v50 = vsel %vm1042_vm13, %v1164_v27, %v5054_v23  ;;  %vm2273_vm10 = vcmp.eq.s32.totalorder %v2271_v59, 0  ;;  %v1161_v21 = vmul.f32 %v1160_v13, %v1158_v43  ;;  %v245_v18 = vmul.f32 %v237_v2, %v237_v2 }
 0x1a3   :  { %v1291_v30 = vsel %vm1289_vm7, %v1290_v54, %v1286_v41  ;;  %v1028_v36 = vmul.f32 %v1027_v39, %v5113_v34  ;;  %v1036_v25 = vxor.u32 2147483648, %v1020_v11  ;;  %v5797_v8 = vmul.u32 %v5795_v31, %v5796_v58  ;;  %v5803_v41 = vld [vmem:[#allocation56_spill] sm:$0xff] }
 0x1a4   :  { %v1407_v1 = vshll.u32 %v5167_v33, 16  ;;  %vm2276_vm12 = vcmp.eq.s32.totalorder %v2271_v59, 2  ;;  %v1162_v51 = vxor.u32 2147483648, %v1161_v21  ;;  %v1167_v5 = vsel %vm5141_vm2, 0, %v1165_v50 }
 0x1a5   :  { %v1292_v52 = vadd.s32 %v1291_v30, %v5797_v8  ;;  %v253_v46 = vsub.f32 0.0, %v245_v18  ;;  %v1033_v23 = vxor.u32 2147483648, %v1028_v36  ;;  %v1410_v48 = vsel %vm5134_vm1, 1, %v5667_v62 }
 0x1a6   :  { %vm5184_vm7 = vc.u32 %v5010_v56, %v1407_v1  ;;  %v2278_v61 = vsel %vm2276_vm12, %v1036_v25, %v1028_v36  ;;  %v1037_v45 = vsel %vm1035_vm11, %v1036_v25, %v1028_v36  ;;  %v1163_v3 = vsel %vm1042_vm13, %v1162_v51, %v1161_v21 }
 0x1a7   :  { %v1293_v17 = vadd.s32 536870912, %v1292_v52  ;;  %v268_v26 = vmul.f32 1.442695, %v253_v46  ;;  %v2275_v15 = vsel %vm2273_vm10, %v1020_v11, %v1033_v23  ;;  %v1034_v28 = vsel %vm1032_vm9, %v1020_v11, %v1033_v23 }
 0x1a8   :  { %v5198_v56 = vsel %vm5141_vm2, %v5789_v14, %v1163_v3  ;;  %v2279_v49 = vsel %vm2272_vm14, %v2275_v15, %v2278_v61  ;;  %v1038_v40 = vsel %vm1031_vm3, %v1034_v28, %v1037_v45  ;;  %v1412_v27 = vadd.s32 %v1410_v48, %v5005_v22 }
 0x1a9   :  { %v5200_v16 = vshrl.u32 %v1293_v17, 30  ;;  %v1168_v57 = vmul.f32 %v5198_v56, %v5198_v56  ;;  %3483 = vpow2.f32 %v268_v26  ;;  %v2280_v32 = vsel %vm1029_vm15, nan, %v2279_v49 }
 0x1aa   :  { %v1039_v29 = vsel %vm1029_vm15, nan, %v1038_v40  ;;  %3428 = vmatmul.msk.f32.gmra.mxu2 %vm2750_vm0, %v2280_v32  ;;  %v1414_v47 = vsel %vm5184_vm7, 1, %v5667_v62  ;;  %v1427_v0 = vshll.u32 %v5000_v7, 16  ;;  %vm5802_vm13 = vcmp.lt.s32.totalorder %v4377_v53, 1 }
 0x1ab   :  { %v1295_v19 = vshll.u32 %v5200_v16, 30  ;;  %3436 = vmatmul.msk.f32.gmra.mxu3 %vm2750_vm0, %v1039_v29  ;;  %v1169_v10 = vmul.f32 -0.001358992, %v1168_v57  ;;  %v1176_v59 = vmul.f32 -0.00019511016, %v1168_v57  ;;  %v1384_v12 = vsel %vm5802_vm13, %v5801_v9, %v5800_v38  ;;  %v5804_v9 = vld [vmem:[#allocation49_spill] sm:$0xff] }
 0x1ac   :  { %v1386_v22 = vsel %vm1382_vm8, %v5803_v41, %v4975_v20  ;;  %v2425_v37 = vadd.s32 3, %v1167_v5  ;;  %v5229_v2 = vand.u32 3, %v1167_v5  ;;  %v1423_v54 = vmul.u32 %v1421_v44, %v5768_v55 }
 0x1ad   :  { %v5227_v42 = vsub.s32 %v1292_v52, %v1295_v19  ;;  %v1170_v43 = vadd.f32 0.041655596, %v1169_v10  ;;  %v1177_v13 = vadd.f32 0.008332121, %v1176_v59  ;;  %v1416_v39 = vadd.s32 %v1414_v47, %v1412_v27 }
 0x1ae   :  { %v1425_v20 = vmul.u32 %v1421_v44, %v5777_v60  ;;  %v5241_v21 = vsel %vm1381_vm5, %v1384_v12, %v1386_v22  ;;  %vm1431_vm8 = vc.u32 %v1423_v54, %v1427_v0  ;;  %v2426_v36 = vand.u32 3, %v2425_v37  ;;  %v2968_v37 = vld [vmem:[%s5495_s2 + $0x28] sm:$0xff] }
 0x1af   :  { %vm1297_vm1 = vcmp.lt.s32.totalorder %v5227_v42, 0  ;;  %v1298_v11 = vsub.s32 0, %v5227_v42  ;;  %v3484_v50 = vpop.eup %3483  ;;  %v1171_v18 = vmul.f32 %v1170_v43, %v1168_v57  ;;  %v1178_v30 = vmul.f32 %v1177_v13, %v1168_v57  ;;  %3454 = vmatmul.msk.f32.gmra.mxu1 %vm2975_vm4, %v2968_v37 }
 0x1b0   :  { %v1406_v25 = vshrl.u32 %v4948_v6, 16  ;;  %v1433_v31 = vadd.s32 %v1427_v0, %v1423_v54  ;;  %3447 = vmatmul.msk.f32.gmra.mxu0 %vm2889_vm6, %v3484_v50  ;;  %v1426_v44 = vmul.u32 %v1422_v35, %v5777_v60  ;;  %vm1186_vm5 = vcmp.eq.s32.totalorder %v5229_v2, 0  ;;  %v5805_v50 = vld [vmem:[#allocation34_spill] sm:$0xff] }
 0x1b1   :  { %v1299_v55 = vsel %vm1297_vm1, %v1298_v11, %v5227_v42  ;;  %v1172_v58 = vadd.f32 -0.4999988, %v1171_v18  ;;  %v1179_v8 = vadd.f32 -0.16666654, %v1178_v30  ;;  %vm1189_vm2 = vcmp.eq.s32.totalorder %v5229_v2, 2 }
 0x1b2   :  { %v1300_v53 = vclz %v1299_v55  ;;  %v1417_v52 = vadd.s32 %v1416_v39, %v1406_v25  ;;  %v1429_v1 = vshll.u32 %v1425_v20, 16  ;;  %v1432_v51 = vsel %vm1431_vm8, 1, %v5667_v62 }
 0x1b3   :  { %v1173_v5 = vmul.f32 %v1172_v58, %v1168_v57  ;;  %v1180_v6 = vmul.f32 %v1179_v8, %v1168_v57  ;;  %vm1185_vm9 = vcmp.lt.s32.totalorder %v5229_v2, 2  ;;  %v1434_v23 = vadd.s32 %v1432_v51, %v1426_v44 }
 0x1b4   :  { %v3395_v46 = vadd.s32 4294967294, %v1300_v53  ;;  %vm1183_vm6 = vweird.f32 %v5789_v14  ;;  %vm2427_vm11 = vcmp.lt.s32.totalorder %v2426_v36, 2  ;;  %vm2428_vm3 = vcmp.eq.s32.totalorder %v2426_v36, 0 }
 0x1b5   :  { %v1408_v63 = vshrl.u32 %v5167_v33, 16  ;;  %vm1435_vm15 = vc.u32 %v1433_v31, %v1429_v1  ;;  %v1174_v35 = vadd.f32 1.0, %v1173_v5  ;;  %v1181_v60 = vadd.f32 1.0, %v1180_v6 }
 0x1b6   :  { %vm3396_vm14 = vcmp.lt.s32.totalorder %v3395_v46, 0  ;;  %v1436_v17 = vsel %vm1435_vm15, 1, %v5667_v62  ;;  %v1428_v61 = vshrl.u32 %v5000_v7, 16  ;;  %v1288_v15 = vadd.s32 %v5155_v24, %v5145_v4 }
 0x1b7   :  { %v1303_v48 = vsel %vm3396_vm14, 0, %v3395_v46  ;;  %v5256_v34 = vadd.s32 %v1417_v52, %v1408_v63  ;;  %v1438_v45 = vadd.s32 %v1436_v17, %v1434_v23  ;;  %v1182_v3 = vmul.f32 %v1181_v60, %v5198_v56 }
 0x1b8   :  { %v1190_v26 = vxor.u32 2147483648, %v1174_v35  ;;  %v1304_v28 = vsub.s32 32, %v1303_v48  ;;  %v1308_v33 = vsub.s32 4294967266, %v1303_v48  ;;  %v1430_v49 = vshrl.u32 %v1425_v20, 16 }
 0x1b9   :  { %v1437_v40 = vadd.s32 %v1433_v31, %v1429_v1  ;;  %v1439_v57 = vadd.s32 %v1438_v45, %v1428_v61  ;;  %v1187_v32 = vxor.u32 2147483648, %v1182_v3  ;;  %vm2431_vm10 = vcmp.eq.s32.totalorder %v2426_v36, 2 }
 0x1ba   :  { %v1305_v62 = vshll.u32 %v5227_v42, %v1303_v48  ;;  %v1306_v29 = vshrl.u32 %v1288_v15, %v1304_v28  ;;  %v2433_v19 = vsel %vm2431_vm10, %v1190_v26, %v1182_v3  ;;  %v1309_v27 = vadd.s32 127, %v1308_v33 }
 0x1bb   :  { %v1440_v7 = vadd.s32 %v1439_v57, %v1430_v49  ;;  %vm1443_vm12 = vc.u32 %v5256_v34, %v1437_v40  ;;  %v2430_v56 = vsel %vm2428_vm3, %v1174_v35, %v1187_v32  ;;  %v1188_v4 = vsel %vm1186_vm5, %v1174_v35, %v1187_v32 }
 0x1bc   :  { %v1191_v24 = vsel %vm1189_vm2, %v1190_v26, %v1182_v3  ;;  %v1307_v10 = vor.u32 %v1306_v29, %v1305_v62  ;;  %v2434_v59 = vsel %vm2427_vm11, %v2430_v56, %v2433_v19  ;;  %v1310_v0 = vshll.u32 %v1309_v27, 23 }
 0x1bd   :  { %v1192_v47 = vsel %vm1185_vm9, %v1188_v4, %v1191_v24  ;;  %v1444_v38 = vadd.s32 1, %v1440_v7  ;;  %v1441_v12 = vmul.u32 %v5804_v9, %v5241_v21  ;;  %v2435_v41 = vsel %vm1183_vm6, nan, %v2434_v59  ;;  %v3078_v24 = vld [vmem:[%s5497_s9 + $0x70] sm:$0xff] }
 0x1be   :  { %v1193_v22 = vsel %vm1183_vm6, nan, %v1192_v47  ;;  %3429 = vmatmul.msk.f32.gmra.mxu2 %vm2750_vm0, %v2435_v41  ;;  %v1311_v42 = vor.u32 4788187, %v1310_v0  ;;  %v1314_v54 = vcvt.s32.f32 %v1307_v10  ;;  %vm1196_vm7 = vcmp.lt.s32.totalorder %v5805_v50, 0 }
 0x1bf   :  { %3437 = vmatmul.msk.f32.gmra.mxu3 %vm2750_vm0, %v1193_v22  ;;  %v1445_v43 = vsel %vm1443_vm12, %v1444_v38, %v1440_v7  ;;  %v5806_v18 = vand.u32 2147483647, %v5805_v50  ;;  %v1318_v36 = vsub.s32 4, %v5200_v16  ;;  %v1442_v3 = vadd.s32 %v1437_v40, %v5256_v34  ;;  %v2969_v34 = vld [vmem:[%s5495_s2 + $0x30] sm:$0xff]  ;;  %v3079_v40 = vld [vmem:[%s5497_s9 + $0x78] sm:$0xff]  ;;  %v3077_v22 = vld [vmem:[%s5497_s9 + $0x68] sm:$0xff] }
 0x1c0   :  { %v1446_v13 = vadd.s32 %v1445_v43, %v1441_v12  ;;  %v1312_v2 = vand.u32 2147483647, %v1311_v42  ;;  %vm1337_vm5 = vweird.f32 %v5805_v50  ;;  %3455 = vmatmul.msk.f32.gmra.mxu1 %vm2975_vm4, %v2969_v34  ;;  %3080 = vmatpush.msrb.mxu2 %v3079_v40 }
 0x1c1   :  { %vm1195_vm13 = vcmp.le.f32.partialorder %v5806_v18, 0.7853982  ;;  %v1319_v53 = vsel %vm1196_vm7, %v1318_v36, %v5200_v16  ;;  %3145 = vmatpush.msrb.mxu3 %v3079_v40  ;;  %v3074_v18 = vld [vmem:[%s5497_s9 + $0x50] sm:$0xff] }
 0x1c2   :  { %v1447_v11 = vadd.s32 536870912, %v1446_v13  ;;  %v1315_v14 = vmul.f32 %v1314_v54, %v1312_v2  ;;  %v1321_v6 = vsel %vm1195_vm13, 0, %v1319_v53  ;;  %3081 = vmatpush.msrb.mxu2 %v3078_v24  ;;  %v2970_v2 = vld [vmem:[%s5495_s2 + $0x38] sm:$0xff] }
 0x1c3   :  { %v2580_v17 = vadd.s32 3, %v1321_v6  ;;  %v1338_v33 = vand.u32 3, %v1321_v6  ;;  %3146 = vmatpush.msrb.mxu3 %v3078_v24 }
 0x1c4   :  { %v5286_v39 = vshrl.u32 %v1447_v11, 30  ;;  %v1316_v20 = vxor.u32 2147483648, %v1315_v14  ;;  %3082 = vmatpush.msrb.mxu2 %v3077_v22  ;;  %v3075_v11 = vld [vmem:[%s5497_s9 + $0x58] sm:$0xff] }
 0x1c5   :  { %v2581_v57 = vand.u32 3, %v2580_v17  ;;  %vm1339_vm2 = vcmp.lt.s32.totalorder %v1338_v33, 2  ;;  %vm1340_vm9 = vcmp.eq.s32.totalorder %v1338_v33, 0  ;;  %vm1343_vm6 = vcmp.eq.s32.totalorder %v1338_v33, 2  ;;  %3147 = vmatpush.msrb.mxu3 %v3077_v22  ;;  %v5385_v22 = vld [vmem:[%s5496_s12] ss:$0 sm:$0xff] }
 0x1c6   :  { %v1449_v21 = vshll.u32 %v5286_v39, 30  ;;  %v1317_v30 = vsel %vm1196_vm7, %v1316_v20, %v1315_v14  ;;  %v5807_v14 = vld [vmem:[#allocation36_spill] sm:$0xff] }
 0x1c7   :  { %v1320_v55 = vsel %vm1195_vm13, %v5805_v50, %v1317_v30  ;;  %vm2582_vm11 = vcmp.lt.s32.totalorder %v2581_v57, 2  ;;  %vm2583_vm3 = vcmp.eq.s32.totalorder %v2581_v57, 0  ;;  %vm2586_vm15 = vcmp.eq.s32.totalorder %v2581_v57, 2 }
 0x1c8   :  { %v1450_v25 = vsub.s32 %v1446_v13, %v1449_v21  ;;  %v1322_v31 = vmul.f32 %v1320_v55, %v1320_v55  ;;  %v3076_v13 = vld [vmem:[%s5497_s9 + $0x60] sm:$0xff]  ;;  %vm1350_vm14 = vcmp.lt.s32.totalorder %v5807_v14, 0  ;;  %v5808_v20 = vand.u32 2147483647, %v5807_v14  ;;  %3456 = vmatmul.msk.f32.gmra.mxu1 %vm2975_vm4, %v2970_v2 }
 0x1c9   :  { %3083 = vmatpush.msrb.mxu2 %v3076_v13  ;;  %3148 = vmatpush.msrb.mxu3 %v3076_v13  ;;  %v1472_v30 = vsub.s32 4, %v5286_v39 }
 0x1ca   :  { %vm1451_vm1 = vcmp.lt.s32.totalorder %v1450_v25, 0  ;;  %v1452_v44 = vsub.s32 0, %v1450_v25  ;;  %v1323_v58 = vmul.f32 -0.001358992, %v1322_v31  ;;  %v1330_v8 = vmul.f32 -0.00019511016, %v1322_v31 }
 0x1cb   :  { %vm5329_vm10 = vcmp.le.f32.partialorder %v5808_v20, 0.7853982  ;;  %3084 = vmatpush.msrb.mxu2 %v3075_v11  ;;  %3149 = vmatpush.msrb.mxu3 %v3075_v11 }
 0x1cc   :  { %v1453_v52 = vsel %vm1451_vm1, %v1452_v44, %v1450_v25  ;;  %v1324_v1 = vadd.f32 0.041655596, %v1323_v58  ;;  %v1331_v51 = vadd.f32 0.008332121, %v1330_v8  ;;  %v3072_v58 = vld [vmem:[%s5497_s9 + $0x40] sm:$0xff]  ;;  %v1473_v8 = vsel %vm1350_vm14, %v1472_v30, %v5286_v39  ;;  %v2792_v39 = vpop.f32.mrf.mxu2 }
 0x1cd   :  { %v1454_v5 = vclz %v1453_v52  ;;  %3085 = vmatpush.msrb.mxu2 %v3074_v18  ;;  %3150 = vmatpush.msrb.mxu3 %v3074_v18 }
 0x1ce   :  { %v1325_v46 = vmul.f32 %v1324_v1, %v1322_v31  ;;  %v1332_v23 = vmul.f32 %v1331_v51, %v1322_v31  ;;  %v3071_v1 = vld [vmem:[%s5497_s9 + $0x38] sm:$0xff]  ;;  %v1475_v51 = vsel %vm5329_vm10, 0, %v1473_v8 }
 0x1cf   :  { %v3398_v63 = vadd.s32 4294967294, %v1454_v5  ;;  %v2735_v17 = vadd.s32 3, %v1475_v51 }
 0x1d0   :  { %v1326_v35 = vadd.f32 -0.4999988, %v1325_v46  ;;  %v1333_v60 = vadd.f32 -0.16666654, %v1332_v23  ;;  %v3070_v46 = vld [vmem:[%s5497_s9 + $0x30] sm:$0xff]  ;;  %v2857_v23 = vpop.f32.mrf.mxu3 }
 0x1d1   :  { %vm3399_vm8 = vcmp.lt.s32.totalorder %v3398_v63, 0  ;;  %v2736_v33 = vand.u32 3, %v2735_v17 }
 0x1d2   :  { %v1457_v48 = vsel %vm3399_vm8, 0, %v3398_v63  ;;  %v1327_v61 = vmul.f32 %v1326_v35, %v1322_v31  ;;  %v1334_v45 = vmul.f32 %v1333_v60, %v1322_v31  ;;  %v3069_v60 = vld [vmem:[%s5497_s9 + $0x28] sm:$0xff] }
 0x1d3   :  { %v1458_v26 = vsub.s32 32, %v1457_v48  ;;  %v1462_v15 = vsub.s32 4294967266, %v1457_v48  ;;  %v1459_v32 = vshll.u32 %v1450_v25, %v1457_v48  ;;  %v3073_v25 = vld [vmem:[%s5497_s9 + $0x48] sm:$0xff]  ;;  %vm2737_vm13 = vcmp.lt.s32.totalorder %v2736_v33, 2 }
 0x1d4   :  { %v1328_v16 = vadd.f32 1.0, %v1327_v61  ;;  %v1335_v28 = vadd.f32 1.0, %v1334_v45  ;;  %3086 = vmatpush.msrb.mxu2 %v3073_v25  ;;  %3151 = vmatpush.msrb.mxu3 %v3073_v25  ;;  %v3068_v45 = vld [vmem:[%s5497_s9 + $0x20] sm:$0xff]  ;;  %vm2738_vm1 = vcmp.eq.s32.totalorder %v2736_v33, 0  ;;  %vm2741_vm8 = vcmp.eq.s32.totalorder %v2736_v33, 2 }
 0x1d5   :  { %v1460_v49 = vshrl.u32 %v1442_v3, %v1458_v26  ;;  %v1463_v62 = vadd.s32 127, %v1462_v15  ;;  %v2931_v3 = vpop.f32.mrf.mxu0 }
 0x1d6   :  { %v1336_v29 = vmul.f32 %v1335_v28, %v1320_v55  ;;  %v1344_v19 = vxor.u32 2147483648, %v1328_v16  ;;  %3087 = vmatpush.msrb.mxu2 %v3072_v58  ;;  %3152 = vmatpush.msrb.mxu3 %v3072_v58  ;;  %v3067_v28 = vld [vmem:[%s5497_s9 + $0x18] sm:$0xff] }
 0x1d7   :  { %v1461_v27 = vor.u32 %v1460_v49, %v1459_v32  ;;  %v1464_v7 = vshll.u32 %v1463_v62, 23  ;;  %v2858_v49 = vadd.f32 %v2857_v23, %v2792_v39  ;;  %v3066_v62 = vld [vmem:[%s5497_s9 + $0x10] sm:$0xff] }
 0x1d8   :  { %v1341_v56 = vxor.u32 2147483648, %v1336_v29  ;;  %v2588_v59 = vsel %vm2586_vm15, %v1344_v19, %v1336_v29  ;;  %v1345_v0 = vsel %vm1343_vm6, %v1344_v19, %v1336_v29  ;;  %3088 = vmatpush.msrb.mxu2 %v3071_v1  ;;  %3153 = vmatpush.msrb.mxu3 %v3071_v1  ;;  %v3020_v29 = vpop.f32.mrf.mxu1 }
 0x1d9   :  { %v1465_v4 = vor.u32 4788187, %v1464_v7  ;;  %v1468_v41 = vcvt.s32.f32 %v1461_v27  ;;  %v3065_v27 = vld [vmem:[%s5497_s9 + $0x8] sm:$0xff]  ;;  %v2795_v7 = vpop.f32.mrf.mxu2  ;;  %v2955_v34 = vadd.f32 %v2931_v3, %v2858_v49 }
 0x1da   :  { %v2585_v10 = vsel %vm2583_vm3, %v1328_v16, %v1341_v56  ;;  %v1342_v47 = vsel %vm1340_vm9, %v1328_v16, %v1341_v56  ;;  %3089 = vmatpush.msrb.mxu2 %v3070_v46  ;;  %3154 = vmatpush.msrb.mxu3 %v3070_v46  ;;  %v1492_v16 = vand.u32 3, %v1475_v51  ;;  %v2860_v56 = vpop.f32.mrf.mxu3 }
 0x1db   :  { %v2589_v38 = vsel %vm2582_vm11, %v2585_v10, %v2588_v59  ;;  %v1346_v9 = vsel %vm1339_vm2, %v1342_v47, %v1345_v0  ;;  %v1466_v12 = vand.u32 2147483647, %v1465_v4  ;;  %v3064_v0 = vld [vmem:[%s5497_s9] sm:$0xff] }
 0x1dc   :  { %v2590_v37 = vsel %vm1337_vm5, nan, %v2589_v38  ;;  %v1347_v42 = vsel %vm1337_vm5, nan, %v1346_v9  ;;  %3090 = vmatpush.msrb.mxu2 %v3069_v60  ;;  %3155 = vmatpush.msrb.mxu3 %v3069_v60  ;;  %vm1493_vm4 = vcmp.lt.s32.totalorder %v1492_v16, 2  ;;  %vm1494_vm12 = vcmp.eq.s32.totalorder %v1492_v16, 0 }
 0x1dd   :  { %3430 = vmatmul.msk.f32.gmra.mxu2 %vm2750_vm0, %v2590_v37  ;;  %3438 = vmatmul.msk.f32.gmra.mxu3 %vm2750_vm0, %v1347_v42  ;;  %v1469_v43 = vmul.f32 %v1468_v41, %v1466_v12  ;;  %vm1497_vm7 = vcmp.eq.s32.totalorder %v1492_v16, 2  ;;  %vm1491_vm5 = vweird.f32 %v5807_v14  ;;  %v2934_v12 = vpop.f32.mrf.mxu0  ;;  %v3044_v41 = vadd.f32 %v3020_v29, %v2955_v34 }
 0x1de   :  { %3091 = vmatpush.msrb.mxu2 %v3068_v45  ;;  %3156 = vmatpush.msrb.mxu3 %v3068_v45  ;;  %v2861_v37 = vadd.f32 %v2860_v56, %v2795_v7 }
 0x1df   :  { %v1470_v54 = vxor.u32 2147483648, %v1469_v43 }
 0x1e0   :  { %3092 = vmatpush.msrb.mxu2 %v3067_v28  ;;  %3157 = vmatpush.msrb.mxu3 %v3067_v28  ;;  %v3023_v42 = vpop.f32.mrf.mxu1  ;;  %v2956_v13 = vadd.f32 %v2934_v12, %v2861_v37 }
 0x1e1   :  { %v1471_v21 = vsel %vm1350_vm14, %v1470_v54, %v1469_v43  ;;  %v3056_v43 = vadd.f32 %v5385_v22, %v3044_v41 }
 0x1e2   :  { %v1474_v36 = vsel %vm5329_vm10, %v5807_v14, %v1471_v21  ;;  %3093 = vmatpush.msrb.mxu2 %v3066_v62  ;;  %3158 = vmatpush.msrb.mxu3 %v3066_v62  ;;  %v3045_v11 = vadd.f32 %v3023_v42, %v2956_v13 }
 0x1e3   :  { %v1476_v55 = vmul.f32 %v1474_v36, %v1474_v36 }
 0x1e4   :  { %3094 = vmatpush.msrb.mxu2 %v3065_v27  ;;  %3159 = vmatpush.msrb.mxu3 %v3065_v27  ;;  %v3057_v50 = vadd.f32 %v5385_v22, %v3045_v11 }
 0x1e5   :  { %v1477_v31 = vmul.f32 -0.001358992, %v1476_v55  ;;  %v1484_v44 = vmul.f32 -0.00019511016, %v1476_v55  ;;  %v2798_v2 = vpop.f32.mrf.mxu2  ;;  %v2863_v54 = vpop.f32.mrf.mxu3 }
 0x1e6   :  { %3095 = vmatpush.msrb.mxu2 %v3064_v0  ;;  %3160 = vmatpush.msrb.mxu3 %v3064_v0  ;;  %v2864_v14 = vadd.f32 %v2863_v54, %v2798_v2  ;;  %v2937_v20 = vpop.f32.mrf.mxu0 }
 0x1e7   :  { %v1478_v53 = vadd.f32 0.041655596, %v1477_v31  ;;  %v1485_v52 = vadd.f32 0.008332121, %v1484_v44 }
 0x1e8   :  { %v2957_v21 = vadd.f32 %v2937_v20, %v2864_v14  ;;  %v3026_v18 = vpop.f32.mrf.mxu1 }
 0x1e9   :  { %v1479_v5 = vmul.f32 %v1478_v53, %v1476_v55  ;;  %v1486_v6 = vmul.f32 %v1485_v52, %v1476_v55 }
 0x1ea   :  { %v3046_v30 = vadd.f32 %v3026_v18, %v2957_v21 }
 0x1eb   :  { %v1480_v63 = vadd.f32 -0.4999988, %v1479_v5  ;;  %v1487_v35 = vadd.f32 -0.16666654, %v1486_v6 }
 0x1ed   :  { %v1481_v48 = vmul.f32 %v1480_v63, %v1476_v55  ;;  %v1488_v61 = vmul.f32 %v1487_v35, %v1476_v55 }
 0x1ee   :  { %v2940_v55 = vpop.f32.mrf.mxu0 }
 0x1ef   :  { %v1482_v26 = vadd.f32 1.0, %v1481_v48  ;;  %v1489_v15 = vadd.f32 1.0, %v1488_v61 }
 0x1f1   :  { %v1490_v57 = vmul.f32 %v1489_v15, %v1474_v36  ;;  %v1498_v32 = vxor.u32 2147483648, %v1482_v26  ;;  %v3058_v36 = vadd.f32 %v5385_v22, %v3046_v30 }
 0x1f3   :  { %v1495_v19 = vxor.u32 2147483648, %v1490_v57  ;;  %v2743_v4 = vsel %vm2741_vm8, %v1498_v32, %v1490_v57  ;;  %v1499_v10 = vsel %vm1497_vm7, %v1498_v32, %v1490_v57 }
 0x1f5   :  { %v2740_v40 = vsel %vm2738_vm1, %v1482_v26, %v1495_v19  ;;  %v1496_v24 = vsel %vm1494_vm12, %v1482_v26, %v1495_v19 }
 0x1f6   :  { %v2744_v59 = vsel %vm2737_vm13, %v2740_v40, %v2743_v4  ;;  %v1500_v47 = vsel %vm1493_vm4, %v1496_v24, %v1499_v10  ;;  %v2943_v1 = vpop.f32.mrf.mxu0 }
 0x1f7   :  { %v2745_v38 = vsel %vm1491_vm5, nan, %v2744_v59  ;;  %v1501_v9 = vsel %vm1491_vm5, nan, %v1500_v47 }
 0x1f8   :  { %3431 = vmatmul.msk.f32.gmra.mxu2 %vm2750_vm0, %v2745_v38  ;;  %3439 = vmatmul.msk.f32.gmra.mxu3 %vm2750_vm0, %v1501_v9 }
 0x200   :  { %3096 = vmatmul.f32.vlgmr.msrb.gmra.mxu2 %v3056_v43  ;;  %v3029_v58 = vpop.f32.mrf.mxu1  ;;  %v2946_v35 = vpop.f32.mrf.mxu0 }
 0x208   :  { %3099 = vmatmul.f32.gmra.mxu2 %v3057_v50 }
 0x210   :  { %3102 = vmatmul.f32.gmra.mxu2 %v3058_v36 }
 0x211   :  { %v3032_v46 = vpop.f32.mrf.mxu1 }
 0x216   :  { %v2801_v25 = vpop.f32.mrf.mxu2 }
 0x217   :  { %v2866_v31 = vpop.f32.mrf.mxu3 }
 0x218   :  { %v2867_v44 = vadd.f32 %v2866_v31, %v2801_v25  ;;  %v2949_v15 = vpop.f32.mrf.mxu0 }
 0x21a   :  { %v2958_v8 = vadd.f32 %v2940_v55, %v2867_v44 }
 0x21c   :  { %v3047_v53 = vadd.f32 %v3029_v58, %v2958_v8 }
 0x21e   :  { %v3059_v52 = vadd.f32 %v5385_v22, %v3047_v53 }
 0x220   :  { %3105 = vmatmul.f32.gmra.mxu2 %v3059_v52 }
 0x22c   :  { %v3035_v61 = vpop.f32.mrf.mxu1 }
 0x22d   :  { %v2804_v51 = vpop.f32.mrf.mxu2  ;;  %v2952_v29 = vpop.f32.mrf.mxu0 }
 0x22e   :  { %v2869_v5 = vpop.f32.mrf.mxu3 }
 0x22f   :  { %v2870_v6 = vadd.f32 %v2869_v5, %v2804_v51 }
 0x231   :  { %v2959_v39 = vadd.f32 %v2943_v1, %v2870_v6 }
 0x233   :  { %v3048_v23 = vadd.f32 %v3032_v46, %v2959_v39 }
 0x235   :  { %v3060_v63 = vadd.f32 %v5385_v22, %v3048_v23 }
 0x237   :  { %3108 = vmatmul.f32.gmra.mxu2 %v3060_v63 }
 0x23d   :  { %v3038_v49 = vpop.f32.mrf.mxu1 }
 0x241   :  { %v2807_v60 = vpop.f32.mrf.mxu2 }
 0x242   :  { %v2872_v17 = vpop.f32.mrf.mxu3 }
 0x243   :  { %v2873_v48 = vadd.f32 %v2872_v17, %v2807_v60 }
 0x245   :  { %v2960_v45 = vadd.f32 %v2946_v35, %v2873_v48  ;;  %v3041_v56 = vpop.f32.mrf.mxu1 }
 0x247   :  { %v3049_v3 = vadd.f32 %v3035_v61, %v2960_v45 }
 0x249   :  { %v3061_v26 = vadd.f32 %v5385_v22, %v3049_v3 }
 0x24b   :  { %3111 = vmatmul.f32.gmra.mxu2 %v3061_v26 }
 0x260   :  { %v2810_v16 = vpop.f32.mrf.mxu2  ;;  %v2875_v28 = vpop.f32.mrf.mxu3 }
 0x261   :  { %v2876_v33 = vadd.f32 %v2875_v28, %v2810_v16 }
 0x263   :  { %v2961_v57 = vadd.f32 %v2949_v15, %v2876_v33 }
 0x265   :  { %v3050_v32 = vadd.f32 %v3038_v49, %v2961_v57 }
 0x267   :  { %v3062_v62 = vadd.f32 %v5385_v22, %v3050_v32 }
 0x269   :  { %3114 = vmatmul.f32.gmra.mxu2 %v3062_v62 }
 0x27b   :  { %v2813_v19 = vpop.f32.mrf.mxu2  ;;  %v2878_v27 = vpop.f32.mrf.mxu3 }
 0x27c   :  { %v2879_v7 = vadd.f32 %v2878_v27, %v2813_v19 }
 0x27e   :  { %v2962_v34 = vadd.f32 %v2952_v29, %v2879_v7 }
 0x280   :  { %v3051_v40 = vadd.f32 %v3041_v56, %v2962_v34  ;;  %v5430_v56 = vld [vmem:[%s5498_s13] ss:$0 sm:$0xff] }
 0x282   :  { %v3063_v4 = vadd.f32 %v5385_v22, %v3051_v40 }
 0x283   :  { %v3097_v24 = vpop.f32.mrf.mxu2 }
 0x284   :  { %3117 = vmatmul.f32.gmra.mxu2 %v3063_v4  ;;  %v3121_v10 = vmul.f32 0.03125, %v3097_v24 }
 0x286   :  { %v5395_v59 = vsub.f32 %v3056_v43, %v3121_v10 }
 0x288   :  { %v3137_v47 = vmul.f32 %v5395_v59, %v5395_v59 }
 0x28a   :  { %3161 = vmatmul.f32.vlgmr.msrb.gmra.mxu3 %v3137_v47 }
 0x28b   :  { %v3100_v0 = vpop.f32.mrf.mxu2 }
 0x28c   :  { %v3122_v38 = vmul.f32 0.03125, %v3100_v0 }
 0x28e   :  { %v5399_v9 = vsub.f32 %v3057_v50, %v3122_v38 }
 0x290   :  { %v3138_v12 = vmul.f32 %v5399_v9, %v5399_v9 }
 0x292   :  { %3164 = vmatmul.f32.gmra.mxu3 %v3138_v12 }
 0x293   :  { %v3103_v41 = vpop.f32.mrf.mxu2 }
 0x294   :  { %v3123_v37 = vmul.f32 0.03125, %v3103_v41  ;;  %v5436_v41 = vld [vmem:[%s5499_s14] ss:$0 sm:$0xff] }
 0x296   :  { %v5403_v22 = vsub.f32 %v3058_v36, %v3123_v37 }
 0x298   :  { %v3139_v42 = vmul.f32 %v5403_v22, %v5403_v22 }
 0x29a   :  { %3167 = vmatmul.f32.gmra.mxu3 %v3139_v42 }
 0x2a3   :  { %v3106_v43 = vpop.f32.mrf.mxu2 }
 0x2a4   :  { %v3124_v13 = vmul.f32 0.03125, %v3106_v43 }
 0x2a6   :  { %v5407_v2 = vsub.f32 %v3059_v52, %v3124_v13 }
 0x2a8   :  { %v3140_v54 = vmul.f32 %v5407_v2, %v5407_v2 }
 0x2aa   :  { %3170 = vmatmul.f32.gmra.mxu3 %v3140_v54 }
 0x2ba   :  { %v3109_v11 = vpop.f32.mrf.mxu2 }
 0x2bb   :  { %v3125_v14 = vmul.f32 0.03125, %v3109_v11 }
 0x2bd   :  { %v5411_v20 = vsub.f32 %v3060_v63, %v3125_v14 }
 0x2bf   :  { %v3141_v50 = vmul.f32 %v5411_v20, %v5411_v20 }
 0x2c1   :  { %3173 = vmatmul.f32.gmra.mxu3 %v3141_v50 }
 0x2ce   :  { %v3112_v21 = vpop.f32.mrf.mxu2 }
 0x2cf   :  { %v3126_v18 = vmul.f32 0.03125, %v3112_v21 }
 0x2d1   :  { %v5415_v30 = vsub.f32 %v3061_v26, %v3126_v18 }
 0x2d3   :  { %v3142_v36 = vmul.f32 %v5415_v30, %v5415_v30 }
 0x2d5   :  { %3176 = vmatmul.f32.gmra.mxu3 %v3142_v36 }
 0x2ec   :  { %v3115_v55 = vpop.f32.mrf.mxu2 }
 0x2ed   :  { %v3127_v25 = vmul.f32 0.03125, %v3115_v55 }
 0x2ef   :  { %v5419_v31 = vsub.f32 %v3062_v62, %v3127_v25 }
 0x2f1   :  { %v3143_v44 = vmul.f32 %v5419_v31, %v5419_v31 }
 0x2f3   :  { %3179 = vmatmul.f32.gmra.mxu3 %v3143_v44 }
 0x307   :  { %v3118_v58 = vpop.f32.mrf.mxu2 }
 0x308   :  { %v3128_v8 = vmul.f32 0.03125, %v3118_v58 }
 0x30a   :  { %v5423_v53 = vsub.f32 %v3063_v4, %v3128_v8 }
 0x30c   :  { %v3144_v52 = vmul.f32 %v5423_v53, %v5423_v53 }
 0x30d   :  { %v3162_v1 = vpop.f32.mrf.mxu3 }
 0x30e   :  { %3182 = vmatmul.f32.gmra.mxu3 %v3144_v52  ;;  %v3186_v51 = vmul.f32 0.032258064, %v3162_v1 }
 0x310   :  { %v3194_v5 = vadd.f32 1e-06, %v3186_v51 }
 0x312   :  { %3485 = vrsqrt.f32 %v3194_v5  ;;  %vm3209_vm0 = vcmp.eq.f32.partialorder %v3194_v5, inf  ;;  %v3212_v28 = vand.u32 2147483648, %v3194_v5  ;;  %vm3211_vm2 = vcmp.eq.f32.partialorder %v3194_v5, 0.0 }
 0x315   :  { %v3165_v6 = vpop.f32.mrf.mxu3 }
 0x316   :  { %v3187_v46 = vmul.f32 0.032258064, %v3165_v6 }
 0x318   :  { %v3486_v39 = vpop.eup %3485  ;;  %v3195_v63 = vadd.f32 1e-06, %v3187_v46 }
 0x319   :  { %v3203_v23 = vmul.f32 %v3486_v39, %v3194_v5 }
 0x31a   :  { %3487 = vrsqrt.f32 %v3195_v63  ;;  %vm3221_vm9 = vcmp.eq.f32.partialorder %v3195_v63, inf  ;;  %v3224_v40 = vand.u32 2147483648, %v3195_v63  ;;  %vm3223_vm6 = vcmp.eq.f32.partialorder %v3195_v63, 0.0 }
 0x31b   :  { %v3204_v35 = vmul.f32 %v3486_v39, %v3203_v23 }
 0x31d   :  { %v3205_v60 = vmul.f32 0.5, %v3204_v35  ;;  %v3168_v48 = vpop.f32.mrf.mxu3 }
 0x31e   :  { %v3188_v61 = vmul.f32 0.032258064, %v3168_v48 }
 0x31f   :  { %v3206_v17 = vsub.f32 1.5, %v3205_v60 }
 0x320   :  { %v3488_v45 = vpop.eup %3487  ;;  %v3196_v15 = vadd.f32 1e-06, %v3188_v61 }
 0x321   :  { %v3207_v3 = vmul.f32 %v3486_v39, %v3206_v17  ;;  %v3215_v26 = vmul.f32 %v3488_v45, %v3195_v63 }
 0x322   :  { %3489 = vrsqrt.f32 %v3196_v15  ;;  %vm3233_vm11 = vcmp.eq.f32.partialorder %v3196_v15, inf  ;;  %v3236_v21 = vand.u32 2147483648, %v3196_v15  ;;  %vm3235_vm3 = vcmp.eq.f32.partialorder %v3196_v15, 0.0 }
 0x323   :  { %v3208_v16 = vmul.f32 %v3207_v3, %v3194_v5  ;;  %v3216_v33 = vmul.f32 %v3488_v45, %v3215_v26 }
 0x325   :  { %v3210_v49 = vsel %vm3209_vm0, %v3194_v5, %v3208_v16  ;;  %v3217_v32 = vmul.f32 0.5, %v3216_v33 }
 0x326   :  { %v3213_v57 = vsel %vm3211_vm2, %v3212_v28, %v3210_v49 }
 0x327   :  { %v3298_v62 = vadd.f32 1e-06, %v3213_v57  ;;  %v3218_v29 = vsub.f32 1.5, %v3217_v32 }
 0x328   :  { %v3490_v19 = vpop.eup %3489 }
 0x329   :  { %3491 = vrcp.f32 %v3298_v62  ;;  %v3219_v27 = vmul.f32 %v3488_v45, %v3218_v29  ;;  %v3227_v7 = vmul.f32 %v3490_v19, %v3196_v15 }
 0x32b   :  { %v3220_v34 = vmul.f32 %v3219_v27, %v3195_v63  ;;  %v3228_v4 = vmul.f32 %v3490_v19, %v3227_v7 }
 0x32d   :  { %v3222_v24 = vsel %vm3221_vm9, %v3195_v63, %v3220_v34  ;;  %v3229_v0 = vmul.f32 0.5, %v3228_v4  ;;  %v3171_v38 = vpop.f32.mrf.mxu3 }
 0x32e   :  { %v3225_v47 = vsel %vm3223_vm6, %v3224_v40, %v3222_v24  ;;  %v3189_v42 = vmul.f32 0.032258064, %v3171_v38 }
 0x32f   :  { %v3492_v10 = vpop.eup %3491  ;;  %v3299_v37 = vadd.f32 1e-06, %v3225_v47  ;;  %v3230_v43 = vsub.f32 1.5, %v3229_v0 }
 0x330   :  { %v3318_v12 = vmul.f32 %v3492_v10, %v5430_v56  ;;  %v3197_v54 = vadd.f32 1e-06, %v3189_v42 }
 0x331   :  { %3493 = vrcp.f32 %v3299_v37  ;;  %v3231_v11 = vmul.f32 %v3490_v19, %v3230_v43 }
 0x332   :  { %v3326_v13 = vmul.f32 %v3318_v12, %v5395_v59  ;;  %3495 = vrsqrt.f32 %v3197_v54  ;;  %vm3245_vm15 = vcmp.eq.f32.partialorder %v3197_v54, inf  ;;  %v3248_v17 = vand.u32 2147483648, %v3197_v54 }
 0x333   :  { %v3232_v50 = vmul.f32 %v3231_v11, %v3196_v15  ;;  %vm3247_vm14 = vcmp.eq.f32.partialorder %v3197_v54, 0.0 }
 0x334   :  { %v3338_v14 = vadd.f32 %v5436_v41, %v3326_v13 }
 0x335   :  { %v3234_v18 = vsel %vm3233_vm11, %v3196_v15, %v3232_v50 }
 0x336   :  { %3346 = vst [vmem:[%s5500_s15] sm:$0xff] %v3338_v14  ;;  %v3237_v55 = vsel %vm3235_vm3, %v3236_v21, %v3234_v18 }
 0x337   :  { %v3494_v36 = vpop.eup %3493  ;;  %v3300_v59 = vadd.f32 1e-06, %v3237_v55 }
 0x338   :  { %v3319_v25 = vmul.f32 %v3494_v36, %v5430_v56  ;;  %v3496_v44 = vpop.eup %3495 }
 0x339   :  { %3497 = vrcp.f32 %v3300_v59  ;;  %v3239_v8 = vmul.f32 %v3496_v44, %v3197_v54 }
 0x33a   :  { %v3327_v58 = vmul.f32 %v3319_v25, %v5399_v9 }
 0x33b   :  { %v3240_v1 = vmul.f32 %v3496_v44, %v3239_v8 }
 0x33c   :  { %v3339_v52 = vadd.f32 %v5436_v41, %v3327_v58 }
 0x33d   :  { %v3241_v51 = vmul.f32 0.5, %v3240_v1 }
 0x33e   :  { %3347 = vst [vmem:[%s5500_s15 + $0x8] sm:$0xff] %v3339_v52 }
 0x33f   :  { %v3498_v5 = vpop.eup %3497  ;;  %v3242_v6 = vsub.f32 1.5, %v3241_v51 }
 0x340   :  { %v3320_v46 = vmul.f32 %v3498_v5, %v5430_v56 }
 0x341   :  { %v3243_v39 = vmul.f32 %v3496_v44, %v3242_v6 }
 0x342   :  { %v3328_v23 = vmul.f32 %v3320_v46, %v5403_v22 }
 0x343   :  { %v3244_v35 = vmul.f32 %v3243_v39, %v3197_v54 }
 0x344   :  { %v3174_v63 = vpop.f32.mrf.mxu3  ;;  %v3340_v60 = vadd.f32 %v5436_v41, %v3328_v23 }
 0x345   :  { %v3190_v9 = vmul.f32 0.032258064, %v3174_v63  ;;  %v3246_v48 = vsel %vm3245_vm15, %v3197_v54, %v3244_v35 }
 0x346   :  { %3348 = vst [vmem:[%s5500_s15 + $0x10] sm:$0xff] %v3340_v60  ;;  %v3249_v45 = vsel %vm3247_vm14, %v3248_v17, %v3246_v48 }
 0x347   :  { %v3198_v61 = vadd.f32 1e-06, %v3190_v9  ;;  %v3301_v3 = vadd.f32 1e-06, %v3249_v45 }
 0x349   :  { %3499 = vrsqrt.f32 %v3198_v61  ;;  %vm3257_vm10 = vcmp.eq.f32.partialorder %v3198_v61, inf  ;;  %v3260_v34 = vand.u32 2147483648, %v3198_v61  ;;  %vm3259_vm4 = vcmp.eq.f32.partialorder %v3198_v61, 0.0 }
 0x34a   :  { %3501 = vrcp.f32 %v3301_v3 }
 0x34f   :  { %v3500_v26 = vpop.eup %3499 }
 0x350   :  { %v3251_v22 = vmul.f32 %v3500_v26, %v3198_v61  ;;  %v3502_v15 = vpop.eup %3501 }
 0x351   :  { %v3321_v16 = vmul.f32 %v3502_v15, %v5430_v56 }
 0x352   :  { %v3252_v28 = vmul.f32 %v3500_v26, %v3251_v22 }
 0x353   :  { %v3329_v33 = vmul.f32 %v3321_v16, %v5407_v2 }
 0x354   :  { %v3253_v49 = vmul.f32 0.5, %v3252_v28 }
 0x355   :  { %v3341_v57 = vadd.f32 %v5436_v41, %v3329_v33 }
 0x356   :  { %v3254_v32 = vsub.f32 1.5, %v3253_v49 }
 0x357   :  { %3349 = vst [vmem:[%s5500_s15 + $0x18] sm:$0xff] %v3341_v57 }
 0x358   :  { %v3177_v62 = vpop.f32.mrf.mxu3  ;;  %v3255_v29 = vmul.f32 %v3500_v26, %v3254_v32 }
 0x359   :  { %v3191_v19 = vmul.f32 0.032258064, %v3177_v62 }
 0x35a   :  { %v3256_v27 = vmul.f32 %v3255_v29, %v3198_v61 }
 0x35b   :  { %v3199_v7 = vadd.f32 1e-06, %v3191_v19 }
 0x35c   :  { %v3258_v40 = vsel %vm3257_vm10, %v3198_v61, %v3256_v27 }
 0x35d   :  { %3503 = vrsqrt.f32 %v3199_v7  ;;  %v3261_v4 = vsel %vm3259_vm4, %v3260_v34, %v3258_v40  ;;  %vm3269_vm12 = vcmp.eq.f32.partialorder %v3199_v7, inf  ;;  %v3272_v11 = vand.u32 2147483648, %v3199_v7 }
 0x35e   :  { %v3302_v2 = vadd.f32 1e-06, %v3261_v4  ;;  %vm3271_vm7 = vcmp.eq.f32.partialorder %v3199_v7, 0.0 }
 0x360   :  { %3505 = vrcp.f32 %v3302_v2 }
 0x363   :  { %v3504_v24 = vpop.eup %3503 }
 0x364   :  { %v3263_v10 = vmul.f32 %v3504_v24, %v3199_v7 }
 0x366   :  { %v3264_v47 = vmul.f32 %v3504_v24, %v3263_v10  ;;  %v3506_v0 = vpop.eup %3505 }
 0x367   :  { %v3322_v38 = vmul.f32 %v3506_v0, %v5430_v56 }
 0x368   :  { %v3265_v12 = vmul.f32 0.5, %v3264_v47 }
 0x369   :  { %v3330_v37 = vmul.f32 %v3322_v38, %v5411_v20 }
 0x36a   :  { %v3266_v42 = vsub.f32 1.5, %v3265_v12 }
 0x36b   :  { %v3342_v43 = vadd.f32 %v5436_v41, %v3330_v37 }
 0x36c   :  { %v3267_v13 = vmul.f32 %v3504_v24, %v3266_v42 }
 0x36d   :  { %3350 = vst [vmem:[%s5500_s15 + $0x20] sm:$0xff] %v3342_v43 }
 0x36e   :  { %v3268_v54 = vmul.f32 %v3267_v13, %v3199_v7 }
 0x370   :  { %v3270_v14 = vsel %vm3269_vm12, %v3199_v7, %v3268_v54 }
 0x371   :  { %v3273_v50 = vsel %vm3271_vm7, %v3272_v11, %v3270_v14 }
 0x372   :  { %v3303_v21 = vadd.f32 1e-06, %v3273_v50 }
 0x374   :  { %3507 = vrcp.f32 %v3303_v21 }
 0x376   :  { %v3180_v18 = vpop.f32.mrf.mxu3 }
 0x377   :  { %v3192_v36 = vmul.f32 0.032258064, %v3180_v18 }
 0x379   :  { %v3200_v20 = vadd.f32 1e-06, %v3192_v36 }
 0x37a   :  { %v3508_v55 = vpop.eup %3507 }
 0x37b   :  { %v3323_v25 = vmul.f32 %v3508_v55, %v5430_v56  ;;  %3509 = vrsqrt.f32 %v3200_v20  ;;  %vm3281_vm13 = vcmp.eq.f32.partialorder %v3200_v20, inf  ;;  %v3284_v46 = vand.u32 2147483648, %v3200_v20 }
 0x37c   :  { %vm3283_vm1 = vcmp.eq.f32.partialorder %v3200_v20, 0.0 }
 0x37d   :  { %v3331_v59 = vmul.f32 %v3323_v25, %v5415_v30 }
 0x37f   :  { %v3343_v44 = vadd.f32 %v5436_v41, %v3331_v59 }
 0x381   :  { %3351 = vst [vmem:[%s5500_s15 + $0x28] sm:$0xff] %v3343_v44  ;;  %v3510_v58 = vpop.eup %3509 }
 0x382   :  { %v3275_v8 = vmul.f32 %v3510_v58, %v3200_v20 }
 0x384   :  { %v3276_v52 = vmul.f32 %v3510_v58, %v3275_v8 }
 0x386   :  { %v3277_v1 = vmul.f32 0.5, %v3276_v52 }
 0x388   :  { %v3278_v51 = vsub.f32 1.5, %v3277_v1 }
 0x38a   :  { %v3279_v5 = vmul.f32 %v3510_v58, %v3278_v51 }
 0x38c   :  { %v3280_v6 = vmul.f32 %v3279_v5, %v3200_v20 }
 0x38e   :  { %v3282_v39 = vsel %vm3281_vm13, %v3200_v20, %v3280_v6 }
 0x38f   :  { %v3285_v23 = vsel %vm3283_vm1, %v3284_v46, %v3282_v39 }
 0x390   :  { %v3304_v63 = vadd.f32 1e-06, %v3285_v23 }
 0x391   :  { %v3183_v30 = vpop.f32.mrf.mxu3 }
 0x392   :  { %3511 = vrcp.f32 %v3304_v63  ;;  %v3193_v35 = vmul.f32 0.032258064, %v3183_v30 }
 0x394   :  { %v3201_v9 = vadd.f32 1e-06, %v3193_v35 }
 0x396   :  { %3513 = vrsqrt.f32 %v3201_v9  ;;  %vm3293_vm8 = vcmp.eq.f32.partialorder %v3201_v9, inf  ;;  %v3296_v33 = vand.u32 2147483648, %v3201_v9  ;;  %vm3295_vm5 = vcmp.eq.f32.partialorder %v3201_v9, 0.0 }
 0x398   :  { %v3512_v60 = vpop.eup %3511 }
 0x399   :  { %v3324_v17 = vmul.f32 %v3512_v60, %v5430_v56 }
 0x39b   :  { %v3332_v48 = vmul.f32 %v3324_v17, %v5419_v31 }
 0x39c   :  { %v3514_v61 = vpop.eup %3513 }
 0x39d   :  { %v3344_v45 = vadd.f32 %v5436_v41, %v3332_v48  ;;  %v3287_v3 = vmul.f32 %v3514_v61, %v3201_v9 }
 0x39f   :  { %3352 = vst [vmem:[%s5500_s15 + $0x30] sm:$0xff] %v3344_v45  ;;  %v3288_v26 = vmul.f32 %v3514_v61, %v3287_v3 }
 0x3a1   :  { %v3289_v22 = vmul.f32 0.5, %v3288_v26 }
 0x3a3   :  { %v3290_v15 = vsub.f32 1.5, %v3289_v22 }
 0x3a5   :  { %v3291_v16 = vmul.f32 %v3514_v61, %v3290_v15 }
 0x3a7   :  { %v3292_v28 = vmul.f32 %v3291_v16, %v3201_v9 }
 0x3a9   :  { %v3294_v49 = vsel %vm3293_vm8, %v3201_v9, %v3292_v28 }
 0x3aa   :  { %v3297_v57 = vsel %vm3295_vm5, %v3296_v33, %v3294_v49 }
 0x3ab   :  { %v3305_v32 = vadd.f32 1e-06, %v3297_v57 }
 0x3ad   :  { %3515 = vrcp.f32 %v3305_v32 }
 0x3b3   :  { %v3516_v31 = vpop.eup %3515 }
 0x3b4   :  { %v3325_v62 = vmul.f32 %v3516_v31, %v5430_v56 }
 0x3b6   :  { %v3333_v29 = vmul.f32 %v3325_v62, %v5423_v53 }
 0x3b8   :  { %v3345_v19 = vadd.f32 %v5436_v41, %v3333_v29 }
 0x3ba   :  { %3353 = vst [vmem:[%s5500_s15 + $0x38] sm:$0xff] %v3345_v19 }

// kernel: protein_features_forward.5
= control target key start
LH: loop header
LB: loop body
LE: loop exit
PB: predicated region body
PF: predicated region fallthrough
CT: control target
= control target key end

     0   :  { %vm31_vm0 = vcmask 195584   ;;  %s261_s1 = inlined_call_operand.vmem [shape: f32[24,128], index: 1, kind: input, shape index: {}]   ;;  %s262_s2 = inlined_call_operand.vmem [shape: f32[128,128], index: 2, kind: input, shape index: {}]   ;;  %s263_s0 = inlined_call_operand.vmem [shape: f32[8,24], index: 0, kind: input, shape index: {}]   ;;  %s264_s3 = inlined_call_operand.vmem [shape: f32[1,128], index: 3, kind: input, shape index: {}]   ;;  %s265_s4 = inlined_call_operand.vmem [shape: f32[1,128], index: 4, kind: input, shape index: {}]   ;;  %s266_s5 = inlined_call_operand.vmem [shape: f32[1,128], index: 5, kind: input, shape index: {}]   ;;  %s267_s6 = inlined_call_operand.vmem [shape: f32[8,128], index: 6, kind: output, shape index: {}]  }
   0x1   :  { %v26_v0 = vld [vmem:[%s261_s1 + $0x10] sm:$0xff]  ;;  %v25_v1 = vld [vmem:[%s261_s1 + $0x8] sm:$0xff]  ;;  %v70_v2 = vld [vmem:[%s262_s2 + $0x78] sm:$0xff] }
   0x2   :  { %48 = vmatpush.msra.mxu0 %v26_v0  ;;  %v69_v3 = vld [vmem:[%s262_s2 + $0x70] sm:$0xff]  ;;  %v24_v4 = vld [vmem:[%s261_s1] sm:$0xff]  ;;  %71 = vmatpush.msra.mxu1 %v70_v2  ;;  %v68_v6 = vld [vmem:[%s262_s2 + $0x68] sm:$0xff] }
   0x3   :  { %94 = vmatpush.msra.mxu2 %v70_v2  ;;  %v23_v5 = vld [vmem:[%s263_s0] sm:$0xff]  ;;  %v66_v8 = vld [vmem:[%s262_s2 + $0x58] sm:$0xff]  ;;  %v65_v9 = vld [vmem:[%s262_s2 + $0x50] sm:$0xff] }
   0x4   :  { %49 = vmatpush.msra.mxu0 %v25_v1  ;;  %72 = vmatpush.msra.mxu1 %v69_v3  ;;  %v67_v7 = vld [vmem:[%s262_s2 + $0x60] sm:$0xff]  ;;  %v64_v10 = vld [vmem:[%s262_s2 + $0x48] sm:$0xff]  ;;  %v62_v12 = vld [vmem:[%s262_s2 + $0x38] sm:$0xff] }
   0x5   :  { %95 = vmatpush.msra.mxu2 %v69_v3  ;;  %v63_v11 = vld [vmem:[%s262_s2 + $0x40] sm:$0xff]  ;;  %v61_v13 = vld [vmem:[%s262_s2 + $0x30] sm:$0xff]  ;;  %v60_v14 = vld [vmem:[%s262_s2 + $0x28] sm:$0xff] }
   0x6   :  { %50 = vmatpush.msra.mxu0 %v24_v4  ;;  %73 = vmatpush.msra.mxu1 %v68_v6  ;;  %v59_v15 = vld [vmem:[%s262_s2 + $0x20] sm:$0xff]  ;;  %v58_v16 = vld [vmem:[%s262_s2 + $0x18] sm:$0xff]  ;;  %v57_v17 = vld [vmem:[%s262_s2 + $0x10] sm:$0xff] }
   0x7   :  { %146 = vmatmul.msk.f32.vlgmr.msra.gmra.mxu0 %vm31_vm0, %v23_v5  ;;  %96 = vmatpush.msra.mxu2 %v68_v6  ;;  %v56_v18 = vld [vmem:[%s262_s2 + $0x8] sm:$0xff]  ;;  %v55_v19 = vld [vmem:[%s262_s2] sm:$0xff] }
   0x8   :  { %74 = vmatpush.msra.mxu1 %v67_v7  ;;  %v147_v20 = vld [vmem:[%s264_s3] ss:$0 sm:$0xff] }
   0x9   :  { %97 = vmatpush.msra.mxu2 %v67_v7  ;;  %v148_v41 = vld [vmem:[%s265_s4] ss:$0 sm:$0xff] }
   0xa   :  { %75 = vmatpush.msra.mxu1 %v66_v8  ;;  %v149_v44 = vld [vmem:[%s266_s5] ss:$0 sm:$0xff] }
   0xb   :  { %98 = vmatpush.msra.mxu2 %v66_v8 }
   0xc   :  { %76 = vmatpush.msra.mxu1 %v65_v9 }
   0xd   :  { %99 = vmatpush.msra.mxu2 %v65_v9 }
   0xe   :  { %77 = vmatpush.msra.mxu1 %v64_v10 }
   0xf   :  { %100 = vmatpush.msra.mxu2 %v64_v10 }
  0x10   :  { %78 = vmatpush.msra.mxu1 %v63_v11 }
  0x11   :  { %101 = vmatpush.msra.mxu2 %v63_v11 }
  0x12   :  { %79 = vmatpush.msra.mxu1 %v62_v12 }
  0x13   :  { %102 = vmatpush.msra.mxu2 %v62_v12 }
  0x14   :  { %80 = vmatpush.msra.mxu1 %v61_v13 }
  0x15   :  { %103 = vmatpush.msra.mxu2 %v61_v13 }
  0x16   :  { %81 = vmatpush.msra.mxu1 %v60_v14 }
  0x17   :  { %104 = vmatpush.msra.mxu2 %v60_v14 }
  0x18   :  { %82 = vmatpush.msra.mxu1 %v59_v15 }
  0x19   :  { %105 = vmatpush.msra.mxu2 %v59_v15 }
  0x1a   :  { %83 = vmatpush.msra.mxu1 %v58_v16 }
  0x1b   :  { %106 = vmatpush.msra.mxu2 %v58_v16 }
  0x1c   :  { %84 = vmatpush.msra.mxu1 %v57_v17 }
  0x1d   :  { %107 = vmatpush.msra.mxu2 %v57_v17 }
  0x1e   :  { %85 = vmatpush.msra.mxu1 %v56_v18 }
  0x1f   :  { %108 = vmatpush.msra.mxu2 %v56_v18 }
  0x20   :  { %86 = vmatpush.msra.mxu1 %v55_v19 }
  0x21   :  { %109 = vmatpush.msra.mxu2 %v55_v19 }
  0x84   :  { %v52_v21 = vpop.f32.mrf.mxu0 }
  0x85   :  { %v53_v22 = vadd.f32 %v147_v20, %v52_v21 }
  0x87   :  { %87 = vmatmul.f32.vlgmr.msra.gmra.mxu1 %v53_v22 }
 0x104   :  { %v88_v23 = vpop.f32.mrf.mxu1 }
 0x105   :  { %v91_v24 = vmul.f32 0.03125, %v88_v23 }
 0x107   :  { %v92_v25 = vsub.f32 %v53_v22, %v91_v24 }
 0x109   :  { %v93_v26 = vmul.f32 %v92_v25, %v92_v25 }
 0x10b   :  { %110 = vmatmul.f32.vlgmr.msra.gmra.mxu2 %v93_v26 }
 0x18e   :  { %v111_v27 = vpop.f32.mrf.mxu2 }
 0x18f   :  { %v114_v28 = vmul.f32 0.032258064, %v111_v27 }
 0x191   :  { %v115_v29 = vadd.f32 1e-06, %v114_v28 }
 0x193   :  { %150 = vrsqrt.f32 %v115_v29  ;;  %vm123_vm1 = vcmp.eq.f32.partialorder %v115_v29, inf  ;;  %v126_v37 = vand.u32 2147483648, %v115_v29  ;;  %vm125_vm2 = vcmp.eq.f32.partialorder %v115_v29, 0.0 }
 0x199   :  { %v151_v30 = vpop.eup %150 }
 0x19a   :  { %v117_v31 = vmul.f32 %v151_v30, %v115_v29 }
 0x19c   :  { %v118_v32 = vmul.f32 %v151_v30, %v117_v31 }
 0x19e   :  { %v119_v33 = vmul.f32 0.5, %v118_v32 }
 0x1a0   :  { %v120_v34 = vsub.f32 1.5, %v119_v33 }
 0x1a2   :  { %v121_v35 = vmul.f32 %v151_v30, %v120_v34 }
 0x1a4   :  { %v122_v36 = vmul.f32 %v121_v35, %v115_v29 }
 0x1a6   :  { %v124_v38 = vsel %vm123_vm1, %v115_v29, %v122_v36 }
 0x1a7   :  { %v127_v39 = vsel %vm125_vm2, %v126_v37, %v124_v38 }
 0x1a8   :  { %v128_v40 = vadd.f32 1e-06, %v127_v39 }
 0x1aa   :  { %152 = vrcp.f32 %v128_v40 }
 0x1b0   :  { %v153_v42 = vpop.eup %152 }
 0x1b1   :  { %v134_v43 = vmul.f32 %v153_v42, %v148_v41 }
 0x1b3   :  { %v135_v45 = vmul.f32 %v134_v43, %v92_v25 }
 0x1b5   :  { %v140_v46 = vadd.f32 %v149_v44, %v135_v45 }
 0x1b7   :  { %141 = vst [vmem:[%s267_s6] sm:$0xff] %v140_v46 }

</bundles_post_ra>
